<compile_context>
chip_gen: v6e
topology: v6e:2x2x1
jax: 0.10.0
libtpu: 0.0.40
codegen_flags: <defaults>
</compile_context>

<pallas_src>
import jax
import jax.numpy as jnp
from jax.experimental import pallas as pl
from jax.experimental.pallas import tpu as pltpu


# ------------------------------ geometry helpers ------------------------------

def _round_up(x, m):
    return ((x + m - 1) // m) * m


def _geom(H2, W2):
    """Static row-layout geometry shared by the kernel and the weight preprocessing."""
    Wp1 = W2 + 1                       # conv1 padded width (top/left pad only, s2d input)
    Wp = W2 + 2                        # conv2/conv3 padded width (pad=1 both sides)
    L1 = _round_up((H2 - 1) * Wp1 + W2, 8)      # conv1 accumulator rows
    L = _round_up((H2 - 1) * Wp + W2, 8)        # conv2/conv3 accumulator rows
    R1 = max((H2 + 1) * Wp1, (Wp1 + 1) + L1)    # rows of the (padded) s2d kernel input
    PB = _round_up(max((H2 + 2) * Wp, (2 * Wp + 2) + L), 8)  # padded-buffer rows
    return {"Wp1": Wp1, "Wp": Wp, "L1": L1, "L": L, "R1": R1, "PB": PB}


# --------------------------------- the kernel ---------------------------------

def _make_encoder_kernel(H2, W2):
    g = _geom(H2, W2)
    Wp1, Wp, L1, L = g["Wp1"], g["Wp"], g["L1"], g["L"]

    def kernel(x_ref, w1_ref, b1_ref, w2_ref, b2_ref, w3_ref, b3_ref,
               wh_ref, bh_ref, out_ref, a1_ref, p2_ref, a2_ref, p3_ref):
        O1 = w1_ref.shape[2]
        O2 = w2_ref.shape[2]
        O3 = w3_ref.shape[2]
        n_out = wh_ref.shape[0]

        # ---- conv1: 2x2 stride-1 conv over the space-to-depth input (4 taps) ----
        acc = jnp.zeros((L1, O1), jnp.float32)
        for ap in range(2):
            for bp in range(2):
                d = ap * Wp1 + bp
                acc = acc + jnp.dot(x_ref[0, d:d + L1, :], w1_ref[ap * 2 + bp],
                                    preferred_element_type=jnp.float32)
        a1_ref[...] = jnp.maximum(acc + b1_ref[...], 0.0).astype(jnp.bfloat16)

        # ---- scatter valid conv1 rows into the zero-padded conv2 input buffer ----
        p2_ref[...] = jnp.zeros_like(p2_ref)
        for h in range(H2):
            p2_ref[(h + 1) * Wp + 1:(h + 1) * Wp + 1 + W2, :] = \
                a1_ref[h * Wp1:h * Wp1 + W2, :]

        # ---- conv2: 3x3 stride-1, pad 1 (9 shifted-slab matmuls, f32 accumulate) ----
        acc = jnp.zeros((L, O2), jnp.float32)
        for kh in range(3):
            for kw in range(3):
                d = kh * Wp + kw
                acc = acc + jnp.dot(p2_ref[d:d + L, :], w2_ref[kh * 3 + kw],
                                    preferred_element_type=jnp.float32)
        a2_ref[...] = jnp.maximum(acc + b2_ref[...], 0.0).astype(jnp.bfloat16)

        # ---- scatter valid conv2 rows into the zero-padded conv3 input buffer ----
        p3_ref[...] = jnp.zeros_like(p3_ref)
        for h in range(H2):
            p3_ref[(h + 1) * Wp + 1:(h + 1) * Wp + 1 + W2, :] = \
                a2_ref[h * Wp:h * Wp + W2, :]

        # ---- conv3: 3x3 stride-1, pad 1; keep result in f32 for the heads ----
        acc = jnp.zeros((L, O3), jnp.float32)
        for kh in range(3):
            for kw in range(3):
                d = kh * Wp + kw
                acc = acc + jnp.dot(p3_ref[d:d + L, :], w3_ref[kh * 3 + kw],
                                    preferred_element_type=jnp.float32)
        h3 = jnp.maximum(acc + b3_ref[...], 0.0)                    # (L, O3) f32

        # ---- fused flatten + both linear heads (mu ‖ log_sigma) ----
        # Head weights were pre-permuted to the kernel's padded row layout, with zeros on
        # padding/garbage rows, so this is a plain two-axis contraction in VMEM.
        lane = jax.lax.broadcasted_iota(jnp.int32, (1, n_out), 1)
        row = jnp.zeros((1, n_out), jnp.float32)
        for o in range(n_out):
            s = jnp.sum(h3 * wh_ref[o], axis=1, keepdims=True)      # (L, 1)
            s = jnp.sum(s, axis=0, keepdims=True)                   # (1, 1)
            row = row + jnp.where(lane == o, s, 0.0)
        out_ref[0] = row + bh_ref[...]

    return kernel


# --------------------------- wrapper-side preprocessing ---------------------------

def _preprocess_input(x_nchw):
    """NCHW -> space-to-depth (factor 2) NHWC, top/left padded, row-flattened, bf16."""
    N, C, H, W = x_nchw.shape
    H2, W2 = H // 2, W // 2
    g = _geom(H2, W2)
    x = jnp.transpose(x_nchw, (0, 2, 3, 1))                         # NHWC
    x = x.reshape(N, H2, 2, W2, 2, C)
    x = jnp.transpose(x, (0, 1, 3, 2, 4, 5)).reshape(N, H2, W2, 4 * C)
    x = jnp.pad(x, ((0, 0), (1, 0), (1, 0), (0, 0)))                # pad 1 block top/left
    x = x.reshape(N, (H2 + 1) * (W2 + 1), 4 * C)
    extra = g["R1"] - (H2 + 1) * (W2 + 1)
    if extra > 0:
        x = jnp.pad(x, ((0, 0), (0, extra), (0, 0)))                # alignment rows (zero)
    return x.astype(jnp.bfloat16)


def prepare_params(params, image_size):
    """Convert PyTorch-layout parameters to the kernel's layouts (done once)."""
    H2 = W2 = image_size // 2
    g = _geom(H2, W2)
    w1, w2, w3 = params["w1"], params["w2"], params["w3"]
    O1, Cin = w1.shape[0], w1.shape[1]

    # conv1: fold the stride-2 3x3 conv into a 2x2 stride-1 conv over the s2d input.
    w1p = jnp.zeros((2, 2, 4 * Cin, O1), jnp.float32)
    for ap in range(2):
        for bp in range(2):
            for p in range(2):
                for q in range(2):
                    kh, kw = 2 * ap + p - 1, 2 * bp + q - 1
                    if 0 <= kh < 3 and 0 <= kw < 3:
                        blk = jnp.transpose(w1[:, :, kh, kw], (1, 0))   # (Cin, O1)
                        w1p = w1p.at[ap, bp,
                                     (2 * p + q) * Cin:(2 * p + q + 1) * Cin, :].set(blk)
    w1p = w1p.reshape(4, 4 * Cin, O1)

    # conv2/conv3: (O, C, kh, kw) -> (kh*3+kw, C, O)
    w2p = jnp.transpose(w2, (2, 3, 1, 0)).reshape(9, w2.shape[1], w2.shape[0])
    w3p = jnp.transpose(w3, (2, 3, 1, 0)).reshape(9, w3.shape[1], w3.shape[0])

    # heads: merge mu / log_sigma and permute the flatten (NCHW) ordering into the
    # kernel's padded-NHWC row layout; padding / alignment rows get zero weights.
    wc = jnp.concatenate([params["wm"], params["wl"]], axis=0)          # (2O, C*H2*W2)
    n_out = wc.shape[0]
    C3 = w3.shape[0]
    w4 = jnp.transpose(wc.reshape(n_out, C3, H2, W2), (0, 2, 3, 1))     # (2O, h, w, c)
    wh = jnp.zeros((n_out, g["L"], C3), jnp.float32)
    for h in range(H2):
        wh = wh.at[:, h * g["Wp"]:h * g["Wp"] + W2, :].set(w4[:, h, :, :])
    bh = jnp.concatenate([params["bm"], params["bl"]], axis=0).reshape(1, n_out)

    return {
        "w1": w1p.astype(jnp.bfloat16), "b1": params["b1"].reshape(1, -1).astype(jnp.float32),
        "w2": w2p.astype(jnp.bfloat16), "b2": params["b2"].reshape(1, -1).astype(jnp.float32),
        "w3": w3p.astype(jnp.bfloat16), "b3": params["b3"].reshape(1, -1).astype(jnp.float32),
        "wh": wh.astype(jnp.float32), "bh": bh.astype(jnp.float32),
    }


# --------------------------------- forward pass ---------------------------------

def encoder_forward(x_nchw, kp):
    N, _, H, W = x_nchw.shape
    H2, W2 = H // 2, W // 2
    g = _geom(H2, W2)
    xs = _preprocess_input(x_nchw)                                   # (N, R1, 4*Cin) bf16
    O1, O2 = kp["w1"].shape[2], kp["w2"].shape[2]
    n_out = kp["wh"].shape[0]

    out = pl.pallas_call(
        _make_encoder_kernel(H2, W2),
        out_shape=jax.ShapeDtypeStruct((N, 1, n_out), jnp.float32),
        grid=(N,),
        in_specs=[
            pl.BlockSpec((1, xs.shape[1], xs.shape[2]), lambda n: (n, 0, 0)),
            pl.BlockSpec(kp["w1"].shape, lambda n: (0, 0, 0)),
            pl.BlockSpec(kp["b1"].shape, lambda n: (0, 0)),
            pl.BlockSpec(kp["w2"].shape, lambda n: (0, 0, 0)),
            pl.BlockSpec(kp["b2"].shape, lambda n: (0, 0)),
            pl.BlockSpec(kp["w3"].shape, lambda n: (0, 0, 0)),
            pl.BlockSpec(kp["b3"].shape, lambda n: (0, 0)),
            pl.BlockSpec(kp["wh"].shape, lambda n: (0, 0, 0)),
            pl.BlockSpec(kp["bh"].shape, lambda n: (0, 0)),
        ],
        out_specs=pl.BlockSpec((1, 1, n_out), lambda n: (n, 0, 0)),
        scratch_shapes=[
            pltpu.VMEM((g["L1"], O1), jnp.bfloat16),    # conv1 activations
            pltpu.VMEM((g["PB"], O1), jnp.bfloat16),    # zero-padded conv2 input
            pltpu.VMEM((g["L"], O2), jnp.bfloat16),     # conv2 activations
            pltpu.VMEM((g["PB"], O2), jnp.bfloat16),    # zero-padded conv3 input
        ],
        compiler_params=pltpu.CompilerParams(
            dimension_semantics=("parallel",),
            vmem_limit_bytes=32 * 1024 * 1024),
    )(xs, kp["w1"], kp["b1"], kp["w2"], kp["b2"], kp["w3"], kp["b3"], kp["wh"], kp["bh"])

    out = out.reshape(N, n_out)
    half = n_out // 2
    return out[:, :half], out[:, half:]


# ------------------------------ reference / params ------------------------------

def encoder_reference(x, p):
    dn = ("NCHW", "OIHW", "NCHW")
    y = jax.lax.conv_general_dilated(x, p["w1"], (2, 2), [(1, 1), (1, 1)],
                                     dimension_numbers=dn)
    y = jnp.maximum(y + p["b1"][None, :, None, None], 0.0)
    y = jax.lax.conv_general_dilated(y, p["w2"], (1, 1), [(1, 1), (1, 1)],
                                     dimension_numbers=dn)
    y = jnp.maximum(y + p["b2"][None, :, None, None], 0.0)
    y = jax.lax.conv_general_dilated(y, p["w3"], (1, 1), [(1, 1), (1, 1)],
                                     dimension_numbers=dn)
    y = jnp.maximum(y + p["b3"][None, :, None, None], 0.0)
    f = y.reshape(y.shape[0], -1)
    mu = f @ p["wm"].T + p["bm"]
    ls = f @ p["wl"].T + p["bl"]
    return mu, ls


def init_params(key, image_size, image_channels, linear_output):
    ks = jax.random.split(key, 10)
    flat = int(image_size ** 2 / 4) * 32

    def wconv(k, o, i):
        return 0.05 * jax.random.normal(k, (o, i, 3, 3), jnp.float32)

    return {  # PyTorch layouts: conv (O, I, kh, kw), linear (out, in)
        "w1": wconv(ks[0], 16, image_channels),
        "b1": 0.01 * jax.random.normal(ks[1], (16,), jnp.float32),
        "w2": wconv(ks[2], 32, 16),
        "b2": 0.01 * jax.random.normal(ks[3], (32,), jnp.float32),
        "w3": wconv(ks[4], 32, 32),
        "b3": 0.01 * jax.random.normal(ks[5], (32,), jnp.float32),
        "wm": 0.02 * jax.random.normal(ks[6], (linear_output, flat), jnp.float32),
        "bm": 0.01 * jax.random.normal(ks[7], (linear_output,), jnp.float32),
        "wl": 0.02 * jax.random.normal(ks[8], (linear_output, flat), jnp.float32),
        "bl": 0.01 * jax.random.normal(ks[9], (linear_output,), jnp.float32),
    }


if __name__ == "__main__":
    image_size = 16
    image_channels = 4
    linear_output = 8
    batch = 2

    key = jax.random.PRNGKey(0)
    kx, kp = jax.random.split(key)
    x = jax.random.normal(kx, (batch, image_channels, image_size, image_size), jnp.float32)
    params = init_params(kp, image_size, image_channels, linear_output)
    kparams = prepare_params(params, image_size)

    mu, log_sigma = jax.jit(encoder_forward)(x, kparams)
    jax.block_until_ready((mu, log_sigma))

    assert mu.shape == (batch, linear_output)
    assert log_sigma.shape == (batch, linear_output)

    mu_ref, ls_ref = encoder_reference(x, params)
    err = max(float(jnp.max(jnp.abs(mu - mu_ref))),
              float(jnp.max(jnp.abs(log_sigma - ls_ref))))
    assert err < 2e-2, f"max abs error vs f32 reference: {err}"

    print("KERNEL_OK")
</pallas_src>

<mosaic_0001>
module attributes {stable_mosaic.version = 11 : i64} {
  func.func @kernel(%arg0: i32, %arg1: memref<1x82x16xbf16, #tpu.memory_space<vmem>>, %arg2: memref<4x16x16xbf16, #tpu.memory_space<vmem>>, %arg3: memref<1x16xf32, #tpu.memory_space<vmem>>, %arg4: memref<9x16x32xbf16, #tpu.memory_space<vmem>>, %arg5: memref<1x32xf32, #tpu.memory_space<vmem>>, %arg6: memref<9x32x32xbf16, #tpu.memory_space<vmem>>, %arg7: memref<1x32xf32, #tpu.memory_space<vmem>>, %arg8: memref<16x80x32xf32, #tpu.memory_space<vmem>>, %arg9: memref<1x16xf32, #tpu.memory_space<vmem>>, %arg10: memref<1x1x16xf32, #tpu.memory_space<vmem>>, %arg11: memref<72x16xbf16, #tpu.memory_space<vmem>>, %arg12: memref<104x16xbf16, #tpu.memory_space<vmem>>, %arg13: memref<80x32xbf16, #tpu.memory_space<vmem>>, %arg14: memref<104x32xbf16, #tpu.memory_space<vmem>>) attributes {dimension_semantics = [#tpu.dimension_semantics<parallel>], iteration_bounds = array<i64: 2>, scalar_prefetch = 0 : i64, scratch_operands = 4 : i64, tpu.core_type = #tpu.core_type<tc>, window_params = [{transform_indices = @transform_0, window_bounds = array<i64: 1, 82, 16>}, {pipeline_mode = #tpu.pipeline_mode<synchronous>, transform_indices = @transform_1, window_bounds = array<i64: 4, 16, 16>}, {pipeline_mode = #tpu.pipeline_mode<synchronous>, transform_indices = @transform_2, window_bounds = array<i64: 1, 16>}, {pipeline_mode = #tpu.pipeline_mode<synchronous>, transform_indices = @transform_3, window_bounds = array<i64: 9, 16, 32>}, {pipeline_mode = #tpu.pipeline_mode<synchronous>, transform_indices = @transform_4, window_bounds = array<i64: 1, 32>}, {pipeline_mode = #tpu.pipeline_mode<synchronous>, transform_indices = @transform_5, window_bounds = array<i64: 9, 32, 32>}, {pipeline_mode = #tpu.pipeline_mode<synchronous>, transform_indices = @transform_6, window_bounds = array<i64: 1, 32>}, {pipeline_mode = #tpu.pipeline_mode<synchronous>, transform_indices = @transform_7, window_bounds = array<i64: 16, 80, 32>}, {pipeline_mode = #tpu.pipeline_mode<synchronous>, transform_indices = @transform_8, window_bounds = array<i64: 1, 16>}, {transform_indices = @transform_9, window_bounds = array<i64: 1, 1, 16>}]} {
    %cst = arith.constant 0.000000e+00 : f32
    %0 = vector.broadcast %cst : f32 to vector<72x16xf32>
    %c0 = arith.constant 0 : index
    %c0_0 = arith.constant 0 : index
    %c0_1 = arith.constant 0 : index
    %1 = vector.load %arg1[%c0, %c0_0, %c0_1] : memref<1x82x16xbf16, #tpu.memory_space<vmem>>, vector<1x72x16xbf16>
    %2 = vector.shape_cast %1 : vector<1x72x16xbf16> to vector<72x16xbf16>
    %c0_2 = arith.constant 0 : index
    %c0_3 = arith.constant 0 : index
    %c0_4 = arith.constant 0 : index
    %3 = vector.load %arg2[%c0_2, %c0_3, %c0_4] : memref<4x16x16xbf16, #tpu.memory_space<vmem>>, vector<1x16x16xbf16>
    %4 = vector.shape_cast %3 : vector<1x16x16xbf16> to vector<16x16xbf16>
    %cst_5 = arith.constant dense<0.000000e+00> : vector<72x16xf32>
    %5 = tpu.matmul %2, %4, %cst_5 {dimension_numbers = #tpu.dot_dimension_numbers<[1], [0], [0], [1], [0, 0, 1, 1], [], []>} : vector<72x16xbf16>, vector<16x16xbf16>, vector<72x16xf32> -> vector<72x16xf32>
    %6 = arith.addf %0, %5 : vector<72x16xf32>
    %c0_6 = arith.constant 0 : index
    %c1 = arith.constant 1 : index
    %c0_7 = arith.constant 0 : index
    %7 = vector.load %arg1[%c0_6, %c1, %c0_7] : memref<1x82x16xbf16, #tpu.memory_space<vmem>>, vector<1x72x16xbf16>
    %8 = vector.shape_cast %7 : vector<1x72x16xbf16> to vector<72x16xbf16>
    %c1_8 = arith.constant 1 : index
    %c0_9 = arith.constant 0 : index
    %c0_10 = arith.constant 0 : index
    %9 = vector.load %arg2[%c1_8, %c0_9, %c0_10] : memref<4x16x16xbf16, #tpu.memory_space<vmem>>, vector<1x16x16xbf16>
    %10 = vector.shape_cast %9 : vector<1x16x16xbf16> to vector<16x16xbf16>
    %cst_11 = arith.constant dense<0.000000e+00> : vector<72x16xf32>
    %11 = tpu.matmul %8, %10, %cst_11 {dimension_numbers = #tpu.dot_dimension_numbers<[1], [0], [0], [1], [0, 0, 1, 1], [], []>} : vector<72x16xbf16>, vector<16x16xbf16>, vector<72x16xf32> -> vector<72x16xf32>
    %12 = arith.addf %6, %11 : vector<72x16xf32>
    %c0_12 = arith.constant 0 : index
    %c9 = arith.constant 9 : index
    %c0_13 = arith.constant 0 : index
    %13 = vector.load %arg1[%c0_12, %c9, %c0_13] : memref<1x82x16xbf16, #tpu.memory_space<vmem>>, vector<1x72x16xbf16>
    %14 = vector.shape_cast %13 : vector<1x72x16xbf16> to vector<72x16xbf16>
    %c2 = arith.constant 2 : index
    %c0_14 = arith.constant 0 : index
    %c0_15 = arith.constant 0 : index
    %15 = vector.load %arg2[%c2, %c0_14, %c0_15] : memref<4x16x16xbf16, #tpu.memory_space<vmem>>, vector<1x16x16xbf16>
    %16 = vector.shape_cast %15 : vector<1x16x16xbf16> to vector<16x16xbf16>
    %cst_16 = arith.constant dense<0.000000e+00> : vector<72x16xf32>
    %17 = tpu.matmul %14, %16, %cst_16 {dimension_numbers = #tpu.dot_dimension_numbers<[1], [0], [0], [1], [0, 0, 1, 1], [], []>} : vector<72x16xbf16>, vector<16x16xbf16>, vector<72x16xf32> -> vector<72x16xf32>
    %18 = arith.addf %12, %17 : vector<72x16xf32>
    %c0_17 = arith.constant 0 : index
    %c10 = arith.constant 10 : index
    %c0_18 = arith.constant 0 : index
    %19 = vector.load %arg1[%c0_17, %c10, %c0_18] : memref<1x82x16xbf16, #tpu.memory_space<vmem>>, vector<1x72x16xbf16>
    %20 = vector.shape_cast %19 : vector<1x72x16xbf16> to vector<72x16xbf16>
    %c3 = arith.constant 3 : index
    %c0_19 = arith.constant 0 : index
    %c0_20 = arith.constant 0 : index
    %21 = vector.load %arg2[%c3, %c0_19, %c0_20] : memref<4x16x16xbf16, #tpu.memory_space<vmem>>, vector<1x16x16xbf16>
    %22 = vector.shape_cast %21 : vector<1x16x16xbf16> to vector<16x16xbf16>
    %cst_21 = arith.constant dense<0.000000e+00> : vector<72x16xf32>
    %23 = tpu.matmul %20, %22, %cst_21 {dimension_numbers = #tpu.dot_dimension_numbers<[1], [0], [0], [1], [0, 0, 1, 1], [], []>} : vector<72x16xbf16>, vector<16x16xbf16>, vector<72x16xf32> -> vector<72x16xf32>
    %24 = arith.addf %18, %23 : vector<72x16xf32>
    %c0_22 = arith.constant 0 : index
    %c0_23 = arith.constant 0 : index
    %25 = vector.load %arg3[%c0_22, %c0_23] : memref<1x16xf32, #tpu.memory_space<vmem>>, vector<1x16xf32>
    %26 = vector.broadcast %25 : vector<1x16xf32> to vector<72x16xf32>
    %27 = arith.addf %24, %26 : vector<72x16xf32>
    %cst_24 = arith.constant 0.000000e+00 : f32
    %28 = vector.broadcast %cst_24 : f32 to vector<72x16xf32>
    %29 = arith.maximumf %27, %28 : vector<72x16xf32>
    %30 = arith.truncf %29 : vector<72x16xf32> to vector<72x16xbf16>
    %c0_25 = arith.constant 0 : index
    %c0_26 = arith.constant 0 : index
    %31 = vector.load %arg11[%c0_25, %c0_26] : memref<72x16xbf16, #tpu.memory_space<vmem>>, vector<72x16xbf16>
    tpu.vector_store %arg11[%c0_25, %c0_26], %30 {strides = array<i32>} : memref<72x16xbf16, #tpu.memory_space<vmem>>, vector<72x16xbf16>,
    %cst_27 = arith.constant 0.000000e+00 : bf16
    %32 = vector.broadcast %cst_27 : bf16 to vector<104x16xbf16>
    %c0_28 = arith.constant 0 : index
    %c0_29 = arith.constant 0 : index
    %33 = vector.load %arg12[%c0_28, %c0_29] : memref<104x16xbf16, #tpu.memory_space<vmem>>, vector<104x16xbf16>
    tpu.vector_store %arg12[%c0_28, %c0_29], %32 {strides = array<i32>} : memref<104x16xbf16, #tpu.memory_space<vmem>>, vector<104x16xbf16>,
    %c0_30 = arith.constant 0 : index
    %c0_31 = arith.constant 0 : index
    %34 = vector.load %arg11[%c0_30, %c0_31] : memref<72x16xbf16, #tpu.memory_space<vmem>>, vector<8x16xbf16>
    %c11 = arith.constant 11 : index
    %c0_32 = arith.constant 0 : index
    %35 = vector.load %arg12[%c11, %c0_32] : memref<104x16xbf16, #tpu.memory_space<vmem>>, vector<8x16xbf16>
    tpu.vector_store %arg12[%c11, %c0_32], %34 {strides = array<i32>} : memref<104x16xbf16, #tpu.memory_space<vmem>>, vector<8x16xbf16>,
    %c9_33 = arith.constant 9 : index
    %c0_34 = arith.constant 0 : index
    %36 = vector.load %arg11[%c9_33, %c0_34] : memref<72x16xbf16, #tpu.memory_space<vmem>>, vector<8x16xbf16>
    %c21 = arith.constant 21 : index
    %c0_35 = arith.constant 0 : index
    %37 = vector.load %arg12[%c21, %c0_35] : memref<104x16xbf16, #tpu.memory_space<vmem>>, vector<8x16xbf16>
    tpu.vector_store %arg12[%c21, %c0_35], %36 {strides = array<i32>} : memref<104x16xbf16, #tpu.memory_space<vmem>>, vector<8x16xbf16>,
    %c18 = arith.constant 18 : index
    %c0_36 = arith.constant 0 : index
    %38 = vector.load %arg11[%c18, %c0_36] : memref<72x16xbf16, #tpu.memory_space<vmem>>, vector<8x16xbf16>
    %c31 = arith.constant 31 : index
    %c0_37 = arith.constant 0 : index
    %39 = vector.load %arg12[%c31, %c0_37] : memref<104x16xbf16, #tpu.memory_space<vmem>>, vector<8x16xbf16>
    tpu.vector_store %arg12[%c31, %c0_37], %38 {strides = array<i32>} : memref<104x16xbf16, #tpu.memory_space<vmem>>, vector<8x16xbf16>,
    %c27 = arith.constant 27 : index
    %c0_38 = arith.constant 0 : index
    %40 = vector.load %arg11[%c27, %c0_38] : memref<72x16xbf16, #tpu.memory_space<vmem>>, vector<8x16xbf16>
    %c41 = arith.constant 41 : index
    %c0_39 = arith.constant 0 : index
    %41 = vector.load %arg12[%c41, %c0_39] : memref<104x16xbf16, #tpu.memory_space<vmem>>, vector<8x16xbf16>
    tpu.vector_store %arg12[%c41, %c0_39], %40 {strides = array<i32>} : memref<104x16xbf16, #tpu.memory_space<vmem>>, vector<8x16xbf16>,
    %c36 = arith.constant 36 : index
    %c0_40 = arith.constant 0 : index
    %42 = vector.load %arg11[%c36, %c0_40] : memref<72x16xbf16, #tpu.memory_space<vmem>>, vector<8x16xbf16>
    %c51 = arith.constant 51 : index
    %c0_41 = arith.constant 0 : index
    %43 = vector.load %arg12[%c51, %c0_41] : memref<104x16xbf16, #tpu.memory_space<vmem>>, vector<8x16xbf16>
    tpu.vector_store %arg12[%c51, %c0_41], %42 {strides = array<i32>} : memref<104x16xbf16, #tpu.memory_space<vmem>>, vector<8x16xbf16>,
    %c45 = arith.constant 45 : index
    %c0_42 = arith.constant 0 : index
    %44 = vector.load %arg11[%c45, %c0_42] : memref<72x16xbf16, #tpu.memory_space<vmem>>, vector<8x16xbf16>
    %c61 = arith.constant 61 : index
    %c0_43 = arith.constant 0 : index
    %45 = vector.load %arg12[%c61, %c0_43] : memref<104x16xbf16, #tpu.memory_space<vmem>>, vector<8x16xbf16>
    tpu.vector_store %arg12[%c61, %c0_43], %44 {strides = array<i32>} : memref<104x16xbf16, #tpu.memory_space<vmem>>, vector<8x16xbf16>,
    %c54 = arith.constant 54 : index
    %c0_44 = arith.constant 0 : index
    %46 = vector.load %arg11[%c54, %c0_44] : memref<72x16xbf16, #tpu.memory_space<vmem>>, vector<8x16xbf16>
    %c71 = arith.constant 71 : index
    %c0_45 = arith.constant 0 : index
    %47 = vector.load %arg12[%c71, %c0_45] : memref<104x16xbf16, #tpu.memory_space<vmem>>, vector<8x16xbf16>
    tpu.vector_store %arg12[%c71, %c0_45], %46 {strides = array<i32>} : memref<104x16xbf16, #tpu.memory_space<vmem>>, vector<8x16xbf16>,
    %c63 = arith.constant 63 : index
    %c0_46 = arith.constant 0 : index
    %48 = vector.load %arg11[%c63, %c0_46] : memref<72x16xbf16, #tpu.memory_space<vmem>>, vector<8x16xbf16>
    %c81 = arith.constant 81 : index
    %c0_47 = arith.constant 0 : index
    %49 = vector.load %arg12[%c81, %c0_47] : memref<104x16xbf16, #tpu.memory_space<vmem>>, vector<8x16xbf16>
    tpu.vector_store %arg12[%c81, %c0_47], %48 {strides = array<i32>} : memref<104x16xbf16, #tpu.memory_space<vmem>>, vector<8x16xbf16>,
    %cst_48 = arith.constant 0.000000e+00 : f32
    %50 = vector.broadcast %cst_48 : f32 to vector<80x32xf32>
    %c0_49 = arith.constant 0 : index
    %c0_50 = arith.constant 0 : index
    %51 = vector.load %arg12[%c0_49, %c0_50] : memref<104x16xbf16, #tpu.memory_space<vmem>>, vector<80x16xbf16>
    %c0_51 = arith.constant 0 : index
    %c0_52 = arith.constant 0 : index
    %c0_53 = arith.constant 0 : index
    %52 = vector.load %arg4[%c0_51, %c0_52, %c0_53] : memref<9x16x32xbf16, #tpu.memory_space<vmem>>, vector<1x16x32xbf16>
    %53 = vector.shape_cast %52 : vector<1x16x32xbf16> to vector<16x32xbf16>
    %cst_54 = arith.constant dense<0.000000e+00> : vector<80x32xf32>
    %54 = tpu.matmul %51, %53, %cst_54 {dimension_numbers = #tpu.dot_dimension_numbers<[1], [0], [0], [1], [0, 0, 1, 1], [], []>} : vector<80x16xbf16>, vector<16x32xbf16>, vector<80x32xf32> -> vector<80x32xf32>
    %55 = arith.addf %50, %54 : vector<80x32xf32>
    %c1_55 = arith.constant 1 : index
    %c0_56 = arith.constant 0 : index
    %56 = vector.load %arg12[%c1_55, %c0_56] : memref<104x16xbf16, #tpu.memory_space<vmem>>, vector<80x16xbf16>
    %c1_57 = arith.constant 1 : index
    %c0_58 = arith.constant 0 : index
    %c0_59 = arith.constant 0 : index
    %57 = vector.load %arg4[%c1_57, %c0_58, %c0_59] : memref<9x16x32xbf16, #tpu.memory_space<vmem>>, vector<1x16x32xbf16>
    %58 = vector.shape_cast %57 : vector<1x16x32xbf16> to vector<16x32xbf16>
    %cst_60 = arith.constant dense<0.000000e+00> : vector<80x32xf32>
    %59 = tpu.matmul %56, %58, %cst_60 {dimension_numbers = #tpu.dot_dimension_numbers<[1], [0], [0], [1], [0, 0, 1, 1], [], []>} : vector<80x16xbf16>, vector<16x32xbf16>, vector<80x32xf32> -> vector<80x32xf32>
    %60 = arith.addf %55, %59 : vector<80x32xf32>
    %c2_61 = arith.constant 2 : index
    %c0_62 = arith.constant 0 : index
    %61 = vector.load %arg12[%c2_61, %c0_62] : memref<104x16xbf16, #tpu.memory_space<vmem>>, vector<80x16xbf16>
    %c2_63 = arith.constant 2 : index
    %c0_64 = arith.constant 0 : index
    %c0_65 = arith.constant 0 : index
    %62 = vector.load %arg4[%c2_63, %c0_64, %c0_65] : memref<9x16x32xbf16, #tpu.memory_space<vmem>>, vector<1x16x32xbf16>
    %63 = vector.shape_cast %62 : vector<1x16x32xbf16> to vector<16x32xbf16>
    %cst_66 = arith.constant dense<0.000000e+00> : vector<80x32xf32>
    %64 = tpu.matmul %61, %63, %cst_66 {dimension_numbers = #tpu.dot_dimension_numbers<[1], [0], [0], [1], [0, 0, 1, 1], [], []>} : vector<80x16xbf16>, vector<16x32xbf16>, vector<80x32xf32> -> vector<80x32xf32>
    %65 = arith.addf %60, %64 : vector<80x32xf32>
    %c10_67 = arith.constant 10 : index
    %c0_68 = arith.constant 0 : index
    %66 = vector.load %arg12[%c10_67, %c0_68] : memref<104x16xbf16, #tpu.memory_space<vmem>>, vector<80x16xbf16>
    %c3_69 = arith.constant 3 : index
    %c0_70 = arith.constant 0 : index
    %c0_71 = arith.constant 0 : index
    %67 = vector.load %arg4[%c3_69, %c0_70, %c0_71] : memref<9x16x32xbf16, #tpu.memory_space<vmem>>, vector<1x16x32xbf16>
    %68 = vector.shape_cast %67 : vector<1x16x32xbf16> to vector<16x32xbf16>
    %cst_72 = arith.constant dense<0.000000e+00> : vector<80x32xf32>
    %69 = tpu.matmul %66, %68, %cst_72 {dimension_numbers = #tpu.dot_dimension_numbers<[1], [0], [0], [1], [0, 0, 1, 1], [], []>} : vector<80x16xbf16>, vector<16x32xbf16>, vector<80x32xf32> -> vector<80x32xf32>
    %70 = arith.addf %65, %69 : vector<80x32xf32>
    %c11_73 = arith.constant 11 : index
    %c0_74 = arith.constant 0 : index
    %71 = vector.load %arg12[%c11_73, %c0_74] : memref<104x16xbf16, #tpu.memory_space<vmem>>, vector<80x16xbf16>
    %c4 = arith.constant 4 : index
    %c0_75 = arith.constant 0 : index
    %c0_76 = arith.constant 0 : index
    %72 = vector.load %arg4[%c4, %c0_75, %c0_76] : memref<9x16x32xbf16, #tpu.memory_space<vmem>>, vector<1x16x32xbf16>
    %73 = vector.shape_cast %72 : vector<1x16x32xbf16> to vector<16x32xbf16>
    %cst_77 = arith.constant dense<0.000000e+00> : vector<80x32xf32>
    %74 = tpu.matmul %71, %73, %cst_77 {dimension_numbers = #tpu.dot_dimension_numbers<[1], [0], [0], [1], [0, 0, 1, 1], [], []>} : vector<80x16xbf16>, vector<16x32xbf16>, vector<80x32xf32> -> vector<80x32xf32>
    %75 = arith.addf %70, %74 : vector<80x32xf32>
    %c12 = arith.constant 12 : index
    %c0_78 = arith.constant 0 : index
    %76 = vector.load %arg12[%c12, %c0_78] : memref<104x16xbf16, #tpu.memory_space<vmem>>, vector<80x16xbf16>
    %c5 = arith.constant 5 : index
    %c0_79 = arith.constant 0 : index
    %c0_80 = arith.constant 0 : index
    %77 = vector.load %arg4[%c5, %c0_79, %c0_80] : memref<9x16x32xbf16, #tpu.memory_space<vmem>>, vector<1x16x32xbf16>
    %78 = vector.shape_cast %77 : vector<1x16x32xbf16> to vector<16x32xbf16>
    %cst_81 = arith.constant dense<0.000000e+00> : vector<80x32xf32>
    %79 = tpu.matmul %76, %78, %cst_81 {dimension_numbers = #tpu.dot_dimension_numbers<[1], [0], [0], [1], [0, 0, 1, 1], [], []>} : vector<80x16xbf16>, vector<16x32xbf16>, vector<80x32xf32> -> vector<80x32xf32>
    %80 = arith.addf %75, %79 : vector<80x32xf32>
    %c20 = arith.constant 20 : index
    %c0_82 = arith.constant 0 : index
    %81 = vector.load %arg12[%c20, %c0_82] : memref<104x16xbf16, #tpu.memory_space<vmem>>, vector<80x16xbf16>
    %c6 = arith.constant 6 : index
    %c0_83 = arith.constant 0 : index
    %c0_84 = arith.constant 0 : index
    %82 = vector.load %arg4[%c6, %c0_83, %c0_84] : memref<9x16x32xbf16, #tpu.memory_space<vmem>>, vector<1x16x32xbf16>
    %83 = vector.shape_cast %82 : vector<1x16x32xbf16> to vector<16x32xbf16>
    %cst_85 = arith.constant dense<0.000000e+00> : vector<80x32xf32>
    %84 = tpu.matmul %81, %83, %cst_85 {dimension_numbers = #tpu.dot_dimension_numbers<[1], [0], [0], [1], [0, 0, 1, 1], [], []>} : vector<80x16xbf16>, vector<16x32xbf16>, vector<80x32xf32> -> vector<80x32xf32>
    %85 = arith.addf %80, %84 : vector<80x32xf32>
    %c21_86 = arith.constant 21 : index
    %c0_87 = arith.constant 0 : index
    %86 = vector.load %arg12[%c21_86, %c0_87] : memref<104x16xbf16, #tpu.memory_space<vmem>>, vector<80x16xbf16>
    %c7 = arith.constant 7 : index
    %c0_88 = arith.constant 0 : index
    %c0_89 = arith.constant 0 : index
    %87 = vector.load %arg4[%c7, %c0_88, %c0_89] : memref<9x16x32xbf16, #tpu.memory_space<vmem>>, vector<1x16x32xbf16>
    %88 = vector.shape_cast %87 : vector<1x16x32xbf16> to vector<16x32xbf16>
    %cst_90 = arith.constant dense<0.000000e+00> : vector<80x32xf32>
    %89 = tpu.matmul %86, %88, %cst_90 {dimension_numbers = #tpu.dot_dimension_numbers<[1], [0], [0], [1], [0, 0, 1, 1], [], []>} : vector<80x16xbf16>, vector<16x32xbf16>, vector<80x32xf32> -> vector<80x32xf32>
    %90 = arith.addf %85, %89 : vector<80x32xf32>
    %c22 = arith.constant 22 : index
    %c0_91 = arith.constant 0 : index
    %91 = vector.load %arg12[%c22, %c0_91] : memref<104x16xbf16, #tpu.memory_space<vmem>>, vector<80x16xbf16>
    %c8 = arith.constant 8 : index
    %c0_92 = arith.constant 0 : index
    %c0_93 = arith.constant 0 : index
    %92 = vector.load %arg4[%c8, %c0_92, %c0_93] : memref<9x16x32xbf16, #tpu.memory_space<vmem>>, vector<1x16x32xbf16>
    %93 = vector.shape_cast %92 : vector<1x16x32xbf16> to vector<16x32xbf16>
    %cst_94 = arith.constant dense<0.000000e+00> : vector<80x32xf32>
    %94 = tpu.matmul %91, %93, %cst_94 {dimension_numbers = #tpu.dot_dimension_numbers<[1], [0], [0], [1], [0, 0, 1, 1], [], []>} : vector<80x16xbf16>, vector<16x32xbf16>, vector<80x32xf32> -> vector<80x32xf32>
    %95 = arith.addf %90, %94 : vector<80x32xf32>
    %c0_95 = arith.constant 0 : index
    %c0_96 = arith.constant 0 : index
    %96 = vector.load %arg5[%c0_95, %c0_96] : memref<1x32xf32, #tpu.memory_space<vmem>>, vector<1x32xf32>
    %97 = vector.broadcast %96 : vector<1x32xf32> to vector<80x32xf32>
    %98 = arith.addf %95, %97 : vector<80x32xf32>
    %cst_97 = arith.constant 0.000000e+00 : f32
    %99 = vector.broadcast %cst_97 : f32 to vector<80x32xf32>
    %100 = arith.maximumf %98, %99 : vector<80x32xf32>
    %101 = arith.truncf %100 : vector<80x32xf32> to vector<80x32xbf16>
    %c0_98 = arith.constant 0 : index
    %c0_99 = arith.constant 0 : index
    %102 = vector.load %arg13[%c0_98, %c0_99] : memref<80x32xbf16, #tpu.memory_space<vmem>>, vector<80x32xbf16>
    tpu.vector_store %arg13[%c0_98, %c0_99], %101 {strides = array<i32>} : memref<80x32xbf16, #tpu.memory_space<vmem>>, vector<80x32xbf16>,
    %cst_100 = arith.constant 0.000000e+00 : bf16
    %103 = vector.broadcast %cst_100 : bf16 to vector<104x32xbf16>
    %c0_101 = arith.constant 0 : index
    %c0_102 = arith.constant 0 : index
    %104 = vector.load %arg14[%c0_101, %c0_102] : memref<104x32xbf16, #tpu.memory_space<vmem>>, vector<104x32xbf16>
    tpu.vector_store %arg14[%c0_101, %c0_102], %103 {strides = array<i32>} : memref<104x32xbf16, #tpu.memory_space<vmem>>, vector<104x32xbf16>,
    %c0_103 = arith.constant 0 : index
    %c0_104 = arith.constant 0 : index
    %105 = vector.load %arg13[%c0_103, %c0_104] : memref<80x32xbf16, #tpu.memory_space<vmem>>, vector<8x32xbf16>
    %c11_105 = arith.constant 11 : index
    %c0_106 = arith.constant 0 : index
    %106 = vector.load %arg14[%c11_105, %c0_106] : memref<104x32xbf16, #tpu.memory_space<vmem>>, vector<8x32xbf16>
    tpu.vector_store %arg14[%c11_105, %c0_106], %105 {strides = array<i32>} : memref<104x32xbf16, #tpu.memory_space<vmem>>, vector<8x32xbf16>,
    %c10_107 = arith.constant 10 : index
    %c0_108 = arith.constant 0 : index
    %107 = vector.load %arg13[%c10_107, %c0_108] : memref<80x32xbf16, #tpu.memory_space<vmem>>, vector<8x32xbf16>
    %c21_109 = arith.constant 21 : index
    %c0_110 = arith.constant 0 : index
    %108 = vector.load %arg14[%c21_109, %c0_110] : memref<104x32xbf16, #tpu.memory_space<vmem>>, vector<8x32xbf16>
    tpu.vector_store %arg14[%c21_109, %c0_110], %107 {strides = array<i32>} : memref<104x32xbf16, #tpu.memory_space<vmem>>, vector<8x32xbf16>,
    %c20_111 = arith.constant 20 : index
    %c0_112 = arith.constant 0 : index
    %109 = vector.load %arg13[%c20_111, %c0_112] : memref<80x32xbf16, #tpu.memory_space<vmem>>, vector<8x32xbf16>
    %c31_113 = arith.constant 31 : index
    %c0_114 = arith.constant 0 : index
    %110 = vector.load %arg14[%c31_113, %c0_114] : memref<104x32xbf16, #tpu.memory_space<vmem>>, vector<8x32xbf16>
    tpu.vector_store %arg14[%c31_113, %c0_114], %109 {strides = array<i32>} : memref<104x32xbf16, #tpu.memory_space<vmem>>, vector<8x32xbf16>,
    %c30 = arith.constant 30 : index
    %c0_115 = arith.constant 0 : index
    %111 = vector.load %arg13[%c30, %c0_115] : memref<80x32xbf16, #tpu.memory_space<vmem>>, vector<8x32xbf16>
    %c41_116 = arith.constant 41 : index
    %c0_117 = arith.constant 0 : index
    %112 = vector.load %arg14[%c41_116, %c0_117] : memref<104x32xbf16, #tpu.memory_space<vmem>>, vector<8x32xbf16>
    tpu.vector_store %arg14[%c41_116, %c0_117], %111 {strides = array<i32>} : memref<104x32xbf16, #tpu.memory_space<vmem>>, vector<8x32xbf16>,
    %c40 = arith.constant 40 : index
    %c0_118 = arith.constant 0 : index
    %113 = vector.load %arg13[%c40, %c0_118] : memref<80x32xbf16, #tpu.memory_space<vmem>>, vector<8x32xbf16>
    %c51_119 = arith.constant 51 : index
    %c0_120 = arith.constant 0 : index
    %114 = vector.load %arg14[%c51_119, %c0_120] : memref<104x32xbf16, #tpu.memory_space<vmem>>, vector<8x32xbf16>
    tpu.vector_store %arg14[%c51_119, %c0_120], %113 {strides = array<i32>} : memref<104x32xbf16, #tpu.memory_space<vmem>>, vector<8x32xbf16>,
    %c50 = arith.constant 50 : index
    %c0_121 = arith.constant 0 : index
    %115 = vector.load %arg13[%c50, %c0_121] : memref<80x32xbf16, #tpu.memory_space<vmem>>, vector<8x32xbf16>
    %c61_122 = arith.constant 61 : index
    %c0_123 = arith.constant 0 : index
    %116 = vector.load %arg14[%c61_122, %c0_123] : memref<104x32xbf16, #tpu.memory_space<vmem>>, vector<8x32xbf16>
    tpu.vector_store %arg14[%c61_122, %c0_123], %115 {strides = array<i32>} : memref<104x32xbf16, #tpu.memory_space<vmem>>, vector<8x32xbf16>,
    %c60 = arith.constant 60 : index
    %c0_124 = arith.constant 0 : index
    %117 = vector.load %arg13[%c60, %c0_124] : memref<80x32xbf16, #tpu.memory_space<vmem>>, vector<8x32xbf16>
    %c71_125 = arith.constant 71 : index
    %c0_126 = arith.constant 0 : index
    %118 = vector.load %arg14[%c71_125, %c0_126] : memref<104x32xbf16, #tpu.memory_space<vmem>>, vector<8x32xbf16>
    tpu.vector_store %arg14[%c71_125, %c0_126], %117 {strides = array<i32>} : memref<104x32xbf16, #tpu.memory_space<vmem>>, vector<8x32xbf16>,
    %c70 = arith.constant 70 : index
    %c0_127 = arith.constant 0 : index
    %119 = vector.load %arg13[%c70, %c0_127] : memref<80x32xbf16, #tpu.memory_space<vmem>>, vector<8x32xbf16>
    %c81_128 = arith.constant 81 : index
    %c0_129 = arith.constant 0 : index
    %120 = vector.load %arg14[%c81_128, %c0_129] : memref<104x32xbf16, #tpu.memory_space<vmem>>, vector<8x32xbf16>
    tpu.vector_store %arg14[%c81_128, %c0_129], %119 {strides = array<i32>} : memref<104x32xbf16, #tpu.memory_space<vmem>>, vector<8x32xbf16>,
    %cst_130 = arith.constant 0.000000e+00 : f32
    %121 = vector.broadcast %cst_130 : f32 to vector<80x32xf32>
    %c0_131 = arith.constant 0 : index
    %c0_132 = arith.constant 0 : index
    %122 = vector.load %arg14[%c0_131, %c0_132] : memref<104x32xbf16, #tpu.memory_space<vmem>>, vector<80x32xbf16>
    %c0_133 = arith.constant 0 : index
    %c0_134 = arith.constant 0 : index
    %c0_135 = arith.constant 0 : index
    %123 = vector.load %arg6[%c0_133, %c0_134, %c0_135] : memref<9x32x32xbf16, #tpu.memory_space<vmem>>, vector<1x32x32xbf16>
    %124 = vector.shape_cast %123 : vector<1x32x32xbf16> to vector<32x32xbf16>
    %cst_136 = arith.constant dense<0.000000e+00> : vector<80x32xf32>
    %125 = tpu.matmul %122, %124, %cst_136 {dimension_numbers = #tpu.dot_dimension_numbers<[1], [0], [0], [1], [0, 0, 1, 1], [], []>} : vector<80x32xbf16>, vector<32x32xbf16>, vector<80x32xf32> -> vector<80x32xf32>
    %126 = arith.addf %121, %125 : vector<80x32xf32>
    %c1_137 = arith.constant 1 : index
    %c0_138 = arith.constant 0 : index
    %127 = vector.load %arg14[%c1_137, %c0_138] : memref<104x32xbf16, #tpu.memory_space<vmem>>, vector<80x32xbf16>
    %c1_139 = arith.constant 1 : index
    %c0_140 = arith.constant 0 : index
    %c0_141 = arith.constant 0 : index
    %128 = vector.load %arg6[%c1_139, %c0_140, %c0_141] : memref<9x32x32xbf16, #tpu.memory_space<vmem>>, vector<1x32x32xbf16>
    %129 = vector.shape_cast %128 : vector<1x32x32xbf16> to vector<32x32xbf16>
    %cst_142 = arith.constant dense<0.000000e+00> : vector<80x32xf32>
    %130 = tpu.matmul %127, %129, %cst_142 {dimension_numbers = #tpu.dot_dimension_numbers<[1], [0], [0], [1], [0, 0, 1, 1], [], []>} : vector<80x32xbf16>, vector<32x32xbf16>, vector<80x32xf32> -> vector<80x32xf32>
    %131 = arith.addf %126, %130 : vector<80x32xf32>
    %c2_143 = arith.constant 2 : index
    %c0_144 = arith.constant 0 : index
    %132 = vector.load %arg14[%c2_143, %c0_144] : memref<104x32xbf16, #tpu.memory_space<vmem>>, vector<80x32xbf16>
    %c2_145 = arith.constant 2 : index
    %c0_146 = arith.constant 0 : index
    %c0_147 = arith.constant 0 : index
    %133 = vector.load %arg6[%c2_145, %c0_146, %c0_147] : memref<9x32x32xbf16, #tpu.memory_space<vmem>>, vector<1x32x32xbf16>
    %134 = vector.shape_cast %133 : vector<1x32x32xbf16> to vector<32x32xbf16>
    %cst_148 = arith.constant dense<0.000000e+00> : vector<80x32xf32>
    %135 = tpu.matmul %132, %134, %cst_148 {dimension_numbers = #tpu.dot_dimension_numbers<[1], [0], [0], [1], [0, 0, 1, 1], [], []>} : vector<80x32xbf16>, vector<32x32xbf16>, vector<80x32xf32> -> vector<80x32xf32>
    %136 = arith.addf %131, %135 : vector<80x32xf32>
    %c10_149 = arith.constant 10 : index
    %c0_150 = arith.constant 0 : index
    %137 = vector.load %arg14[%c10_149, %c0_150] : memref<104x32xbf16, #tpu.memory_space<vmem>>, vector<80x32xbf16>
    %c3_151 = arith.constant 3 : index
    %c0_152 = arith.constant 0 : index
    %c0_153 = arith.constant 0 : index
    %138 = vector.load %arg6[%c3_151, %c0_152, %c0_153] : memref<9x32x32xbf16, #tpu.memory_space<vmem>>, vector<1x32x32xbf16>
    %139 = vector.shape_cast %138 : vector<1x32x32xbf16> to vector<32x32xbf16>
    %cst_154 = arith.constant dense<0.000000e+00> : vector<80x32xf32>
    %140 = tpu.matmul %137, %139, %cst_154 {dimension_numbers = #tpu.dot_dimension_numbers<[1], [0], [0], [1], [0, 0, 1, 1], [], []>} : vector<80x32xbf16>, vector<32x32xbf16>, vector<80x32xf32> -> vector<80x32xf32>
    %141 = arith.addf %136, %140 : vector<80x32xf32>
    %c11_155 = arith.constant 11 : index
    %c0_156 = arith.constant 0 : index
    %142 = vector.load %arg14[%c11_155, %c0_156] : memref<104x32xbf16, #tpu.memory_space<vmem>>, vector<80x32xbf16>
    %c4_157 = arith.constant 4 : index
    %c0_158 = arith.constant 0 : index
    %c0_159 = arith.constant 0 : index
    %143 = vector.load %arg6[%c4_157, %c0_158, %c0_159] : memref<9x32x32xbf16, #tpu.memory_space<vmem>>, vector<1x32x32xbf16>
    %144 = vector.shape_cast %143 : vector<1x32x32xbf16> to vector<32x32xbf16>
    %cst_160 = arith.constant dense<0.000000e+00> : vector<80x32xf32>
    %145 = tpu.matmul %142, %144, %cst_160 {dimension_numbers = #tpu.dot_dimension_numbers<[1], [0], [0], [1], [0, 0, 1, 1], [], []>} : vector<80x32xbf16>, vector<32x32xbf16>, vector<80x32xf32> -> vector<80x32xf32>
    %146 = arith.addf %141, %145 : vector<80x32xf32>
    %c12_161 = arith.constant 12 : index
    %c0_162 = arith.constant 0 : index
    %147 = vector.load %arg14[%c12_161, %c0_162] : memref<104x32xbf16, #tpu.memory_space<vmem>>, vector<80x32xbf16>
    %c5_163 = arith.constant 5 : index
    %c0_164 = arith.constant 0 : index
    %c0_165 = arith.constant 0 : index
    %148 = vector.load %arg6[%c5_163, %c0_164, %c0_165] : memref<9x32x32xbf16, #tpu.memory_space<vmem>>, vector<1x32x32xbf16>
    %149 = vector.shape_cast %148 : vector<1x32x32xbf16> to vector<32x32xbf16>
    %cst_166 = arith.constant dense<0.000000e+00> : vector<80x32xf32>
    %150 = tpu.matmul %147, %149, %cst_166 {dimension_numbers = #tpu.dot_dimension_numbers<[1], [0], [0], [1], [0, 0, 1, 1], [], []>} : vector<80x32xbf16>, vector<32x32xbf16>, vector<80x32xf32> -> vector<80x32xf32>
    %151 = arith.addf %146, %150 : vector<80x32xf32>
    %c20_167 = arith.constant 20 : index
    %c0_168 = arith.constant 0 : index
    %152 = vector.load %arg14[%c20_167, %c0_168] : memref<104x32xbf16, #tpu.memory_space<vmem>>, vector<80x32xbf16>
    %c6_169 = arith.constant 6 : index
    %c0_170 = arith.constant 0 : index
    %c0_171 = arith.constant 0 : index
    %153 = vector.load %arg6[%c6_169, %c0_170, %c0_171] : memref<9x32x32xbf16, #tpu.memory_space<vmem>>, vector<1x32x32xbf16>
    %154 = vector.shape_cast %153 : vector<1x32x32xbf16> to vector<32x32xbf16>
    %cst_172 = arith.constant dense<0.000000e+00> : vector<80x32xf32>
    %155 = tpu.matmul %152, %154, %cst_172 {dimension_numbers = #tpu.dot_dimension_numbers<[1], [0], [0], [1], [0, 0, 1, 1], [], []>} : vector<80x32xbf16>, vector<32x32xbf16>, vector<80x32xf32> -> vector<80x32xf32>
    %156 = arith.addf %151, %155 : vector<80x32xf32>
    %c21_173 = arith.constant 21 : index
    %c0_174 = arith.constant 0 : index
    %157 = vector.load %arg14[%c21_173, %c0_174] : memref<104x32xbf16, #tpu.memory_space<vmem>>, vector<80x32xbf16>
    %c7_175 = arith.constant 7 : index
    %c0_176 = arith.constant 0 : index
    %c0_177 = arith.constant 0 : index
    %158 = vector.load %arg6[%c7_175, %c0_176, %c0_177] : memref<9x32x32xbf16, #tpu.memory_space<vmem>>, vector<1x32x32xbf16>
    %159 = vector.shape_cast %158 : vector<1x32x32xbf16> to vector<32x32xbf16>
    %cst_178 = arith.constant dense<0.000000e+00> : vector<80x32xf32>
    %160 = tpu.matmul %157, %159, %cst_178 {dimension_numbers = #tpu.dot_dimension_numbers<[1], [0], [0], [1], [0, 0, 1, 1], [], []>} : vector<80x32xbf16>, vector<32x32xbf16>, vector<80x32xf32> -> vector<80x32xf32>
    %161 = arith.addf %156, %160 : vector<80x32xf32>
    %c22_179 = arith.constant 22 : index
    %c0_180 = arith.constant 0 : index
    %162 = vector.load %arg14[%c22_179, %c0_180] : memref<104x32xbf16, #tpu.memory_space<vmem>>, vector<80x32xbf16>
    %c8_181 = arith.constant 8 : index
    %c0_182 = arith.constant 0 : index
    %c0_183 = arith.constant 0 : index
    %163 = vector.load %arg6[%c8_181, %c0_182, %c0_183] : memref<9x32x32xbf16, #tpu.memory_space<vmem>>, vector<1x32x32xbf16>
    %164 = vector.shape_cast %163 : vector<1x32x32xbf16> to vector<32x32xbf16>
    %cst_184 = arith.constant dense<0.000000e+00> : vector<80x32xf32>
    %165 = tpu.matmul %162, %164, %cst_184 {dimension_numbers = #tpu.dot_dimension_numbers<[1], [0], [0], [1], [0, 0, 1, 1], [], []>} : vector<80x32xbf16>, vector<32x32xbf16>, vector<80x32xf32> -> vector<80x32xf32>
    %166 = arith.addf %161, %165 : vector<80x32xf32>
    %c0_185 = arith.constant 0 : index
    %c0_186 = arith.constant 0 : index
    %167 = vector.load %arg7[%c0_185, %c0_186] : memref<1x32xf32, #tpu.memory_space<vmem>>, vector<1x32xf32>
    %168 = vector.broadcast %167 : vector<1x32xf32> to vector<80x32xf32>
    %169 = arith.addf %166, %168 : vector<80x32xf32>
    %cst_187 = arith.constant 0.000000e+00 : f32
    %170 = vector.broadcast %cst_187 : f32 to vector<80x32xf32>
    %171 = arith.maximumf %169, %170 : vector<80x32xf32>
    %172 = tpu.iota {dimensions = array<i32: 1>} : vector<1x16xi32>
    %cst_188 = arith.constant 0.000000e+00 : f32
    %173 = vector.broadcast %cst_188 : f32 to vector<1x16xf32>
    %c0_189 = arith.constant 0 : index
    %c0_190 = arith.constant 0 : index
    %c0_191 = arith.constant 0 : index
    %174 = vector.load %arg8[%c0_189, %c0_190, %c0_191] : memref<16x80x32xf32, #tpu.memory_space<vmem>>, vector<1x80x32xf32>
    %175 = vector.shape_cast %174 : vector<1x80x32xf32> to vector<80x32xf32>
    %176 = arith.mulf %171, %175 : vector<80x32xf32>
    %cst_192 = arith.constant dense<0.000000e+00> : vector<80xf32>
    %177 = vector.multi_reduction <add>, %176, %cst_192 [1] : vector<80x32xf32> to vector<80xf32>
    %178 = vector.shape_cast %177 : vector<80xf32> to vector<80x1xf32>
    %cst_193 = arith.constant dense<0.000000e+00> : vector<1xf32>
    %179 = vector.multi_reduction <add>, %178, %cst_193 [0] : vector<80x1xf32> to vector<1xf32>
    %180 = vector.shape_cast %179 : vector<1xf32> to vector<1x1xf32>
    %c0_i32 = arith.constant 0 : i32
    %181 = vector.broadcast %c0_i32 : i32 to vector<1x16xi32>
    %182 = arith.cmpi eq, %172, %181 : vector<1x16xi32>
    %cst_194 = arith.constant 0.000000e+00 : f32
    %183 = vector.shape_cast %180 : vector<1x1xf32> to vector<1x1xf32>
    %184 = vector.broadcast %183 : vector<1x1xf32> to vector<1x16xf32>
    %185 = vector.broadcast %cst_194 : f32 to vector<1x16xf32>
    %186 = arith.select %182, %184, %185 : vector<1x16xi1>, vector<1x16xf32>
    %187 = arith.addf %173, %186 : vector<1x16xf32>
    %c1_195 = arith.constant 1 : index
    %c0_196 = arith.constant 0 : index
    %c0_197 = arith.constant 0 : index
    %188 = vector.load %arg8[%c1_195, %c0_196, %c0_197] : memref<16x80x32xf32, #tpu.memory_space<vmem>>, vector<1x80x32xf32>
    %189 = vector.shape_cast %188 : vector<1x80x32xf32> to vector<80x32xf32>
    %190 = arith.mulf %171, %189 : vector<80x32xf32>
    %cst_198 = arith.constant dense<0.000000e+00> : vector<80xf32>
    %191 = vector.multi_reduction <add>, %190, %cst_198 [1] : vector<80x32xf32> to vector<80xf32>
    %192 = vector.shape_cast %191 : vector<80xf32> to vector<80x1xf32>
    %cst_199 = arith.constant dense<0.000000e+00> : vector<1xf32>
    %193 = vector.multi_reduction <add>, %192, %cst_199 [0] : vector<80x1xf32> to vector<1xf32>
    %194 = vector.shape_cast %193 : vector<1xf32> to vector<1x1xf32>
    %c1_i32 = arith.constant 1 : i32
    %195 = vector.broadcast %c1_i32 : i32 to vector<1x16xi32>
    %196 = arith.cmpi eq, %172, %195 : vector<1x16xi32>
    %cst_200 = arith.constant 0.000000e+00 : f32
    %197 = vector.shape_cast %194 : vector<1x1xf32> to vector<1x1xf32>
    %198 = vector.broadcast %197 : vector<1x1xf32> to vector<1x16xf32>
    %199 = vector.broadcast %cst_200 : f32 to vector<1x16xf32>
    %200 = arith.select %196, %198, %199 : vector<1x16xi1>, vector<1x16xf32>
    %201 = arith.addf %187, %200 : vector<1x16xf32>
    %c2_201 = arith.constant 2 : index
    %c0_202 = arith.constant 0 : index
    %c0_203 = arith.constant 0 : index
    %202 = vector.load %arg8[%c2_201, %c0_202, %c0_203] : memref<16x80x32xf32, #tpu.memory_space<vmem>>, vector<1x80x32xf32>
    %203 = vector.shape_cast %202 : vector<1x80x32xf32> to vector<80x32xf32>
    %204 = arith.mulf %171, %203 : vector<80x32xf32>
    %cst_204 = arith.constant dense<0.000000e+00> : vector<80xf32>
    %205 = vector.multi_reduction <add>, %204, %cst_204 [1] : vector<80x32xf32> to vector<80xf32>
    %206 = vector.shape_cast %205 : vector<80xf32> to vector<80x1xf32>
    %cst_205 = arith.constant dense<0.000000e+00> : vector<1xf32>
    %207 = vector.multi_reduction <add>, %206, %cst_205 [0] : vector<80x1xf32> to vector<1xf32>
    %208 = vector.shape_cast %207 : vector<1xf32> to vector<1x1xf32>
    %c2_i32 = arith.constant 2 : i32
    %209 = vector.broadcast %c2_i32 : i32 to vector<1x16xi32>
    %210 = arith.cmpi eq, %172, %209 : vector<1x16xi32>
    %cst_206 = arith.constant 0.000000e+00 : f32
    %211 = vector.shape_cast %208 : vector<1x1xf32> to vector<1x1xf32>
    %212 = vector.broadcast %211 : vector<1x1xf32> to vector<1x16xf32>
    %213 = vector.broadcast %cst_206 : f32 to vector<1x16xf32>
    %214 = arith.select %210, %212, %213 : vector<1x16xi1>, vector<1x16xf32>
    %215 = arith.addf %201, %214 : vector<1x16xf32>
    %c3_207 = arith.constant 3 : index
    %c0_208 = arith.constant 0 : index
    %c0_209 = arith.constant 0 : index
    %216 = vector.load %arg8[%c3_207, %c0_208, %c0_209] : memref<16x80x32xf32, #tpu.memory_space<vmem>>, vector<1x80x32xf32>
    %217 = vector.shape_cast %216 : vector<1x80x32xf32> to vector<80x32xf32>
    %218 = arith.mulf %171, %217 : vector<80x32xf32>
    %cst_210 = arith.constant dense<0.000000e+00> : vector<80xf32>
    %219 = vector.multi_reduction <add>, %218, %cst_210 [1] : vector<80x32xf32> to vector<80xf32>
    %220 = vector.shape_cast %219 : vector<80xf32> to vector<80x1xf32>
    %cst_211 = arith.constant dense<0.000000e+00> : vector<1xf32>
    %221 = vector.multi_reduction <add>, %220, %cst_211 [0] : vector<80x1xf32> to vector<1xf32>
    %222 = vector.shape_cast %221 : vector<1xf32> to vector<1x1xf32>
    %c3_i32 = arith.constant 3 : i32
    %223 = vector.broadcast %c3_i32 : i32 to vector<1x16xi32>
    %224 = arith.cmpi eq, %172, %223 : vector<1x16xi32>
    %cst_212 = arith.constant 0.000000e+00 : f32
    %225 = vector.shape_cast %222 : vector<1x1xf32> to vector<1x1xf32>
    %226 = vector.broadcast %225 : vector<1x1xf32> to vector<1x16xf32>
    %227 = vector.broadcast %cst_212 : f32 to vector<1x16xf32>
    %228 = arith.select %224, %226, %227 : vector<1x16xi1>, vector<1x16xf32>
    %229 = arith.addf %215, %228 : vector<1x16xf32>
    %c4_213 = arith.constant 4 : index
    %c0_214 = arith.constant 0 : index
    %c0_215 = arith.constant 0 : index
    %230 = vector.load %arg8[%c4_213, %c0_214, %c0_215] : memref<16x80x32xf32, #tpu.memory_space<vmem>>, vector<1x80x32xf32>
    %231 = vector.shape_cast %230 : vector<1x80x32xf32> to vector<80x32xf32>
    %232 = arith.mulf %171, %231 : vector<80x32xf32>
    %cst_216 = arith.constant dense<0.000000e+00> : vector<80xf32>
    %233 = vector.multi_reduction <add>, %232, %cst_216 [1] : vector<80x32xf32> to vector<80xf32>
    %234 = vector.shape_cast %233 : vector<80xf32> to vector<80x1xf32>
    %cst_217 = arith.constant dense<0.000000e+00> : vector<1xf32>
    %235 = vector.multi_reduction <add>, %234, %cst_217 [0] : vector<80x1xf32> to vector<1xf32>
    %236 = vector.shape_cast %235 : vector<1xf32> to vector<1x1xf32>
    %c4_i32 = arith.constant 4 : i32
    %237 = vector.broadcast %c4_i32 : i32 to vector<1x16xi32>
    %238 = arith.cmpi eq, %172, %237 : vector<1x16xi32>
    %cst_218 = arith.constant 0.000000e+00 : f32
    %239 = vector.shape_cast %236 : vector<1x1xf32> to vector<1x1xf32>
    %240 = vector.broadcast %239 : vector<1x1xf32> to vector<1x16xf32>
    %241 = vector.broadcast %cst_218 : f32 to vector<1x16xf32>
    %242 = arith.select %238, %240, %241 : vector<1x16xi1>, vector<1x16xf32>
    %243 = arith.addf %229, %242 : vector<1x16xf32>
    %c5_219 = arith.constant 5 : index
    %c0_220 = arith.constant 0 : index
    %c0_221 = arith.constant 0 : index
    %244 = vector.load %arg8[%c5_219, %c0_220, %c0_221] : memref<16x80x32xf32, #tpu.memory_space<vmem>>, vector<1x80x32xf32>
    %245 = vector.shape_cast %244 : vector<1x80x32xf32> to vector<80x32xf32>
    %246 = arith.mulf %171, %245 : vector<80x32xf32>
    %cst_222 = arith.constant dense<0.000000e+00> : vector<80xf32>
    %247 = vector.multi_reduction <add>, %246, %cst_222 [1] : vector<80x32xf32> to vector<80xf32>
    %248 = vector.shape_cast %247 : vector<80xf32> to vector<80x1xf32>
    %cst_223 = arith.constant dense<0.000000e+00> : vector<1xf32>
    %249 = vector.multi_reduction <add>, %248, %cst_223 [0] : vector<80x1xf32> to vector<1xf32>
    %250 = vector.shape_cast %249 : vector<1xf32> to vector<1x1xf32>
    %c5_i32 = arith.constant 5 : i32
    %251 = vector.broadcast %c5_i32 : i32 to vector<1x16xi32>
    %252 = arith.cmpi eq, %172, %251 : vector<1x16xi32>
    %cst_224 = arith.constant 0.000000e+00 : f32
    %253 = vector.shape_cast %250 : vector<1x1xf32> to vector<1x1xf32>
    %254 = vector.broadcast %253 : vector<1x1xf32> to vector<1x16xf32>
    %255 = vector.broadcast %cst_224 : f32 to vector<1x16xf32>
    %256 = arith.select %252, %254, %255 : vector<1x16xi1>, vector<1x16xf32>
    %257 = arith.addf %243, %256 : vector<1x16xf32>
    %c6_225 = arith.constant 6 : index
    %c0_226 = arith.constant 0 : index
    %c0_227 = arith.constant 0 : index
    %258 = vector.load %arg8[%c6_225, %c0_226, %c0_227] : memref<16x80x32xf32, #tpu.memory_space<vmem>>, vector<1x80x32xf32>
    %259 = vector.shape_cast %258 : vector<1x80x32xf32> to vector<80x32xf32>
    %260 = arith.mulf %171, %259 : vector<80x32xf32>
    %cst_228 = arith.constant dense<0.000000e+00> : vector<80xf32>
    %261 = vector.multi_reduction <add>, %260, %cst_228 [1] : vector<80x32xf32> to vector<80xf32>
    %262 = vector.shape_cast %261 : vector<80xf32> to vector<80x1xf32>
    %cst_229 = arith.constant dense<0.000000e+00> : vector<1xf32>
    %263 = vector.multi_reduction <add>, %262, %cst_229 [0] : vector<80x1xf32> to vector<1xf32>
    %264 = vector.shape_cast %263 : vector<1xf32> to vector<1x1xf32>
    %c6_i32 = arith.constant 6 : i32
    %265 = vector.broadcast %c6_i32 : i32 to vector<1x16xi32>
    %266 = arith.cmpi eq, %172, %265 : vector<1x16xi32>
    %cst_230 = arith.constant 0.000000e+00 : f32
    %267 = vector.shape_cast %264 : vector<1x1xf32> to vector<1x1xf32>
    %268 = vector.broadcast %267 : vector<1x1xf32> to vector<1x16xf32>
    %269 = vector.broadcast %cst_230 : f32 to vector<1x16xf32>
    %270 = arith.select %266, %268, %269 : vector<1x16xi1>, vector<1x16xf32>
    %271 = arith.addf %257, %270 : vector<1x16xf32>
    %c7_231 = arith.constant 7 : index
    %c0_232 = arith.constant 0 : index
    %c0_233 = arith.constant 0 : index
    %272 = vector.load %arg8[%c7_231, %c0_232, %c0_233] : memref<16x80x32xf32, #tpu.memory_space<vmem>>, vector<1x80x32xf32>
    %273 = vector.shape_cast %272 : vector<1x80x32xf32> to vector<80x32xf32>
    %274 = arith.mulf %171, %273 : vector<80x32xf32>
    %cst_234 = arith.constant dense<0.000000e+00> : vector<80xf32>
    %275 = vector.multi_reduction <add>, %274, %cst_234 [1] : vector<80x32xf32> to vector<80xf32>
    %276 = vector.shape_cast %275 : vector<80xf32> to vector<80x1xf32>
    %cst_235 = arith.constant dense<0.000000e+00> : vector<1xf32>
    %277 = vector.multi_reduction <add>, %276, %cst_235 [0] : vector<80x1xf32> to vector<1xf32>
    %278 = vector.shape_cast %277 : vector<1xf32> to vector<1x1xf32>
    %c7_i32 = arith.constant 7 : i32
    %279 = vector.broadcast %c7_i32 : i32 to vector<1x16xi32>
    %280 = arith.cmpi eq, %172, %279 : vector<1x16xi32>
    %cst_236 = arith.constant 0.000000e+00 : f32
    %281 = vector.shape_cast %278 : vector<1x1xf32> to vector<1x1xf32>
    %282 = vector.broadcast %281 : vector<1x1xf32> to vector<1x16xf32>
    %283 = vector.broadcast %cst_236 : f32 to vector<1x16xf32>
    %284 = arith.select %280, %282, %283 : vector<1x16xi1>, vector<1x16xf32>
    %285 = arith.addf %271, %284 : vector<1x16xf32>
    %c8_237 = arith.constant 8 : index
    %c0_238 = arith.constant 0 : index
    %c0_239 = arith.constant 0 : index
    %286 = vector.load %arg8[%c8_237, %c0_238, %c0_239] : memref<16x80x32xf32, #tpu.memory_space<vmem>>, vector<1x80x32xf32>
    %287 = vector.shape_cast %286 : vector<1x80x32xf32> to vector<80x32xf32>
    %288 = arith.mulf %171, %287 : vector<80x32xf32>
    %cst_240 = arith.constant dense<0.000000e+00> : vector<80xf32>
    %289 = vector.multi_reduction <add>, %288, %cst_240 [1] : vector<80x32xf32> to vector<80xf32>
    %290 = vector.shape_cast %289 : vector<80xf32> to vector<80x1xf32>
    %cst_241 = arith.constant dense<0.000000e+00> : vector<1xf32>
    %291 = vector.multi_reduction <add>, %290, %cst_241 [0] : vector<80x1xf32> to vector<1xf32>
    %292 = vector.shape_cast %291 : vector<1xf32> to vector<1x1xf32>
    %c8_i32 = arith.constant 8 : i32
    %293 = vector.broadcast %c8_i32 : i32 to vector<1x16xi32>
    %294 = arith.cmpi eq, %172, %293 : vector<1x16xi32>
    %cst_242 = arith.constant 0.000000e+00 : f32
    %295 = vector.shape_cast %292 : vector<1x1xf32> to vector<1x1xf32>
    %296 = vector.broadcast %295 : vector<1x1xf32> to vector<1x16xf32>
    %297 = vector.broadcast %cst_242 : f32 to vector<1x16xf32>
    %298 = arith.select %294, %296, %297 : vector<1x16xi1>, vector<1x16xf32>
    %299 = arith.addf %285, %298 : vector<1x16xf32>
    %c9_243 = arith.constant 9 : index
    %c0_244 = arith.constant 0 : index
    %c0_245 = arith.constant 0 : index
    %300 = vector.load %arg8[%c9_243, %c0_244, %c0_245] : memref<16x80x32xf32, #tpu.memory_space<vmem>>, vector<1x80x32xf32>
    %301 = vector.shape_cast %300 : vector<1x80x32xf32> to vector<80x32xf32>
    %302 = arith.mulf %171, %301 : vector<80x32xf32>
    %cst_246 = arith.constant dense<0.000000e+00> : vector<80xf32>
    %303 = vector.multi_reduction <add>, %302, %cst_246 [1] : vector<80x32xf32> to vector<80xf32>
    %304 = vector.shape_cast %303 : vector<80xf32> to vector<80x1xf32>
    %cst_247 = arith.constant dense<0.000000e+00> : vector<1xf32>
    %305 = vector.multi_reduction <add>, %304, %cst_247 [0] : vector<80x1xf32> to vector<1xf32>
    %306 = vector.shape_cast %305 : vector<1xf32> to vector<1x1xf32>
    %c9_i32 = arith.constant 9 : i32
    %307 = vector.broadcast %c9_i32 : i32 to vector<1x16xi32>
    %308 = arith.cmpi eq, %172, %307 : vector<1x16xi32>
    %cst_248 = arith.constant 0.000000e+00 : f32
    %309 = vector.shape_cast %306 : vector<1x1xf32> to vector<1x1xf32>
    %310 = vector.broadcast %309 : vector<1x1xf32> to vector<1x16xf32>
    %311 = vector.broadcast %cst_248 : f32 to vector<1x16xf32>
    %312 = arith.select %308, %310, %311 : vector<1x16xi1>, vector<1x16xf32>
    %313 = arith.addf %299, %312 : vector<1x16xf32>
    %c10_249 = arith.constant 10 : index
    %c0_250 = arith.constant 0 : index
    %c0_251 = arith.constant 0 : index
    %314 = vector.load %arg8[%c10_249, %c0_250, %c0_251] : memref<16x80x32xf32, #tpu.memory_space<vmem>>, vector<1x80x32xf32>
    %315 = vector.shape_cast %314 : vector<1x80x32xf32> to vector<80x32xf32>
    %316 = arith.mulf %171, %315 : vector<80x32xf32>
    %cst_252 = arith.constant dense<0.000000e+00> : vector<80xf32>
    %317 = vector.multi_reduction <add>, %316, %cst_252 [1] : vector<80x32xf32> to vector<80xf32>
    %318 = vector.shape_cast %317 : vector<80xf32> to vector<80x1xf32>
    %cst_253 = arith.constant dense<0.000000e+00> : vector<1xf32>
    %319 = vector.multi_reduction <add>, %318, %cst_253 [0] : vector<80x1xf32> to vector<1xf32>
    %320 = vector.shape_cast %319 : vector<1xf32> to vector<1x1xf32>
    %c10_i32 = arith.constant 10 : i32
    %321 = vector.broadcast %c10_i32 : i32 to vector<1x16xi32>
    %322 = arith.cmpi eq, %172, %321 : vector<1x16xi32>
    %cst_254 = arith.constant 0.000000e+00 : f32
    %323 = vector.shape_cast %320 : vector<1x1xf32> to vector<1x1xf32>
    %324 = vector.broadcast %323 : vector<1x1xf32> to vector<1x16xf32>
    %325 = vector.broadcast %cst_254 : f32 to vector<1x16xf32>
    %326 = arith.select %322, %324, %325 : vector<1x16xi1>, vector<1x16xf32>
    %327 = arith.addf %313, %326 : vector<1x16xf32>
    %c11_255 = arith.constant 11 : index
    %c0_256 = arith.constant 0 : index
    %c0_257 = arith.constant 0 : index
    %328 = vector.load %arg8[%c11_255, %c0_256, %c0_257] : memref<16x80x32xf32, #tpu.memory_space<vmem>>, vector<1x80x32xf32>
    %329 = vector.shape_cast %328 : vector<1x80x32xf32> to vector<80x32xf32>
    %330 = arith.mulf %171, %329 : vector<80x32xf32>
    %cst_258 = arith.constant dense<0.000000e+00> : vector<80xf32>
    %331 = vector.multi_reduction <add>, %330, %cst_258 [1] : vector<80x32xf32> to vector<80xf32>
    %332 = vector.shape_cast %331 : vector<80xf32> to vector<80x1xf32>
    %cst_259 = arith.constant dense<0.000000e+00> : vector<1xf32>
    %333 = vector.multi_reduction <add>, %332, %cst_259 [0] : vector<80x1xf32> to vector<1xf32>
    %334 = vector.shape_cast %333 : vector<1xf32> to vector<1x1xf32>
    %c11_i32 = arith.constant 11 : i32
    %335 = vector.broadcast %c11_i32 : i32 to vector<1x16xi32>
    %336 = arith.cmpi eq, %172, %335 : vector<1x16xi32>
    %cst_260 = arith.constant 0.000000e+00 : f32
    %337 = vector.shape_cast %334 : vector<1x1xf32> to vector<1x1xf32>
    %338 = vector.broadcast %337 : vector<1x1xf32> to vector<1x16xf32>
    %339 = vector.broadcast %cst_260 : f32 to vector<1x16xf32>
    %340 = arith.select %336, %338, %339 : vector<1x16xi1>, vector<1x16xf32>
    %341 = arith.addf %327, %340 : vector<1x16xf32>
    %c12_261 = arith.constant 12 : index
    %c0_262 = arith.constant 0 : index
    %c0_263 = arith.constant 0 : index
    %342 = vector.load %arg8[%c12_261, %c0_262, %c0_263] : memref<16x80x32xf32, #tpu.memory_space<vmem>>, vector<1x80x32xf32>
    %343 = vector.shape_cast %342 : vector<1x80x32xf32> to vector<80x32xf32>
    %344 = arith.mulf %171, %343 : vector<80x32xf32>
    %cst_264 = arith.constant dense<0.000000e+00> : vector<80xf32>
    %345 = vector.multi_reduction <add>, %344, %cst_264 [1] : vector<80x32xf32> to vector<80xf32>
    %346 = vector.shape_cast %345 : vector<80xf32> to vector<80x1xf32>
    %cst_265 = arith.constant dense<0.000000e+00> : vector<1xf32>
    %347 = vector.multi_reduction <add>, %346, %cst_265 [0] : vector<80x1xf32> to vector<1xf32>
    %348 = vector.shape_cast %347 : vector<1xf32> to vector<1x1xf32>
    %c12_i32 = arith.constant 12 : i32
    %349 = vector.broadcast %c12_i32 : i32 to vector<1x16xi32>
    %350 = arith.cmpi eq, %172, %349 : vector<1x16xi32>
    %cst_266 = arith.constant 0.000000e+00 : f32
    %351 = vector.shape_cast %348 : vector<1x1xf32> to vector<1x1xf32>
    %352 = vector.broadcast %351 : vector<1x1xf32> to vector<1x16xf32>
    %353 = vector.broadcast %cst_266 : f32 to vector<1x16xf32>
    %354 = arith.select %350, %352, %353 : vector<1x16xi1>, vector<1x16xf32>
    %355 = arith.addf %341, %354 : vector<1x16xf32>
    %c13 = arith.constant 13 : index
    %c0_267 = arith.constant 0 : index
    %c0_268 = arith.constant 0 : index
    %356 = vector.load %arg8[%c13, %c0_267, %c0_268] : memref<16x80x32xf32, #tpu.memory_space<vmem>>, vector<1x80x32xf32>
    %357 = vector.shape_cast %356 : vector<1x80x32xf32> to vector<80x32xf32>
    %358 = arith.mulf %171, %357 : vector<80x32xf32>
    %cst_269 = arith.constant dense<0.000000e+00> : vector<80xf32>
    %359 = vector.multi_reduction <add>, %358, %cst_269 [1] : vector<80x32xf32> to vector<80xf32>
    %360 = vector.shape_cast %359 : vector<80xf32> to vector<80x1xf32>
    %cst_270 = arith.constant dense<0.000000e+00> : vector<1xf32>
    %361 = vector.multi_reduction <add>, %360, %cst_270 [0] : vector<80x1xf32> to vector<1xf32>
    %362 = vector.shape_cast %361 : vector<1xf32> to vector<1x1xf32>
    %c13_i32 = arith.constant 13 : i32
    %363 = vector.broadcast %c13_i32 : i32 to vector<1x16xi32>
    %364 = arith.cmpi eq, %172, %363 : vector<1x16xi32>
    %cst_271 = arith.constant 0.000000e+00 : f32
    %365 = vector.shape_cast %362 : vector<1x1xf32> to vector<1x1xf32>
    %366 = vector.broadcast %365 : vector<1x1xf32> to vector<1x16xf32>
    %367 = vector.broadcast %cst_271 : f32 to vector<1x16xf32>
    %368 = arith.select %364, %366, %367 : vector<1x16xi1>, vector<1x16xf32>
    %369 = arith.addf %355, %368 : vector<1x16xf32>
    %c14 = arith.constant 14 : index
    %c0_272 = arith.constant 0 : index
    %c0_273 = arith.constant 0 : index
    %370 = vector.load %arg8[%c14, %c0_272, %c0_273] : memref<16x80x32xf32, #tpu.memory_space<vmem>>, vector<1x80x32xf32>
    %371 = vector.shape_cast %370 : vector<1x80x32xf32> to vector<80x32xf32>
    %372 = arith.mulf %171, %371 : vector<80x32xf32>
    %cst_274 = arith.constant dense<0.000000e+00> : vector<80xf32>
    %373 = vector.multi_reduction <add>, %372, %cst_274 [1] : vector<80x32xf32> to vector<80xf32>
    %374 = vector.shape_cast %373 : vector<80xf32> to vector<80x1xf32>
    %cst_275 = arith.constant dense<0.000000e+00> : vector<1xf32>
    %375 = vector.multi_reduction <add>, %374, %cst_275 [0] : vector<80x1xf32> to vector<1xf32>
    %376 = vector.shape_cast %375 : vector<1xf32> to vector<1x1xf32>
    %c14_i32 = arith.constant 14 : i32
    %377 = vector.broadcast %c14_i32 : i32 to vector<1x16xi32>
    %378 = arith.cmpi eq, %172, %377 : vector<1x16xi32>
    %cst_276 = arith.constant 0.000000e+00 : f32
    %379 = vector.shape_cast %376 : vector<1x1xf32> to vector<1x1xf32>
    %380 = vector.broadcast %379 : vector<1x1xf32> to vector<1x16xf32>
    %381 = vector.broadcast %cst_276 : f32 to vector<1x16xf32>
    %382 = arith.select %378, %380, %381 : vector<1x16xi1>, vector<1x16xf32>
    %383 = arith.addf %369, %382 : vector<1x16xf32>
    %c15 = arith.constant 15 : index
    %c0_277 = arith.constant 0 : index
    %c0_278 = arith.constant 0 : index
    %384 = vector.load %arg8[%c15, %c0_277, %c0_278] : memref<16x80x32xf32, #tpu.memory_space<vmem>>, vector<1x80x32xf32>
    %385 = vector.shape_cast %384 : vector<1x80x32xf32> to vector<80x32xf32>
    %386 = arith.mulf %171, %385 : vector<80x32xf32>
    %cst_279 = arith.constant dense<0.000000e+00> : vector<80xf32>
    %387 = vector.multi_reduction <add>, %386, %cst_279 [1] : vector<80x32xf32> to vector<80xf32>
    %388 = vector.shape_cast %387 : vector<80xf32> to vector<80x1xf32>
    %cst_280 = arith.constant dense<0.000000e+00> : vector<1xf32>
    %389 = vector.multi_reduction <add>, %388, %cst_280 [0] : vector<80x1xf32> to vector<1xf32>
    %390 = vector.shape_cast %389 : vector<1xf32> to vector<1x1xf32>
    %c15_i32 = arith.constant 15 : i32
    %391 = vector.broadcast %c15_i32 : i32 to vector<1x16xi32>
    %392 = arith.cmpi eq, %172, %391 : vector<1x16xi32>
    %cst_281 = arith.constant 0.000000e+00 : f32
    %393 = vector.shape_cast %390 : vector<1x1xf32> to vector<1x1xf32>
    %394 = vector.broadcast %393 : vector<1x1xf32> to vector<1x16xf32>
    %395 = vector.broadcast %cst_281 : f32 to vector<1x16xf32>
    %396 = arith.select %392, %394, %395 : vector<1x16xi1>, vector<1x16xf32>
    %397 = arith.addf %383, %396 : vector<1x16xf32>
    %c0_282 = arith.constant 0 : index
    %c0_283 = arith.constant 0 : index
    %398 = vector.load %arg9[%c0_282, %c0_283] : memref<1x16xf32, #tpu.memory_space<vmem>>, vector<1x16xf32>
    %399 = arith.addf %397, %398 : vector<1x16xf32>
    %c0_284 = arith.constant 0 : index
    %c0_285 = arith.constant 0 : index
    %c0_286 = arith.constant 0 : index
    %400 = vector.load %arg10[%c0_284, %c0_285, %c0_286] : memref<1x1x16xf32, #tpu.memory_space<vmem>>, vector<1x1x16xf32>
    %401 = vector.shape_cast %400 : vector<1x1x16xf32> to vector<1x16xf32>
    %402 = vector.shape_cast %399 : vector<1x16xf32> to vector<1x1x16xf32>
    tpu.vector_store %arg10[%c0_284, %c0_285, %c0_286], %402 {strides = array<i32>} : memref<1x1x16xf32, #tpu.memory_space<vmem>>, vector<1x1x16xf32>,
    return
  }
  func.func @transform_0(%arg0: i32) -> (i32, i32, i32) {
    %c0_i32 = arith.constant 0 : i32
    %c0_i32_0 = arith.constant 0 : i32
    %c0_i32_1 = arith.constant 0 : i32
    return %arg0, %c0_i32, %c0_i32_0 : i32, i32, i32
  }
  func.func @transform_1(%arg0: i32) -> (i32, i32, i32) {
    %c0_i32 = arith.constant 0 : i32
    %c0_i32_0 = arith.constant 0 : i32
    %c0_i32_1 = arith.constant 0 : i32
    %c0_i32_2 = arith.constant 0 : i32
    return %c0_i32, %c0_i32_0, %c0_i32_1 : i32, i32, i32
  }
  func.func @transform_2(%arg0: i32) -> (i32, i32) {
    %c0_i32 = arith.constant 0 : i32
    %c0_i32_0 = arith.constant 0 : i32
    %c0_i32_1 = arith.constant 0 : i32
    return %c0_i32, %c0_i32_0 : i32, i32
  }
  func.func @transform_3(%arg0: i32) -> (i32, i32, i32) {
    %c0_i32 = arith.constant 0 : i32
    %c0_i32_0 = arith.constant 0 : i32
    %c0_i32_1 = arith.constant 0 : i32
    %c0_i32_2 = arith.constant 0 : i32
    return %c0_i32, %c0_i32_0, %c0_i32_1 : i32, i32, i32
  }
  func.func @transform_4(%arg0: i32) -> (i32, i32) {
    %c0_i32 = arith.constant 0 : i32
    %c0_i32_0 = arith.constant 0 : i32
    %c0_i32_1 = arith.constant 0 : i32
    return %c0_i32, %c0_i32_0 : i32, i32
  }
  func.func @transform_5(%arg0: i32) -> (i32, i32, i32) {
    %c0_i32 = arith.constant 0 : i32
    %c0_i32_0 = arith.constant 0 : i32
    %c0_i32_1 = arith.constant 0 : i32
    %c0_i32_2 = arith.constant 0 : i32
    return %c0_i32, %c0_i32_0, %c0_i32_1 : i32, i32, i32
  }
  func.func @transform_6(%arg0: i32) -> (i32, i32) {
    %c0_i32 = arith.constant 0 : i32
    %c0_i32_0 = arith.constant 0 : i32
    %c0_i32_1 = arith.constant 0 : i32
    return %c0_i32, %c0_i32_0 : i32, i32
  }
  func.func @transform_7(%arg0: i32) -> (i32, i32, i32) {
    %c0_i32 = arith.constant 0 : i32
    %c0_i32_0 = arith.constant 0 : i32
    %c0_i32_1 = arith.constant 0 : i32
    %c0_i32_2 = arith.constant 0 : i32
    return %c0_i32, %c0_i32_0, %c0_i32_1 : i32, i32, i32
  }
  func.func @transform_8(%arg0: i32) -> (i32, i32) {
    %c0_i32 = arith.constant 0 : i32
    %c0_i32_0 = arith.constant 0 : i32
    %c0_i32_1 = arith.constant 0 : i32
    return %c0_i32, %c0_i32_0 : i32, i32
  }
  func.func @transform_9(%arg0: i32) -> (i32, i32, i32) {
    %c0_i32 = arith.constant 0 : i32
    %c0_i32_0 = arith.constant 0 : i32
    %c0_i32_1 = arith.constant 0 : i32
    return %arg0, %c0_i32, %c0_i32_0 : i32, i32, i32
  }
}

</mosaic_0001>

<bundles_post_ra>
// kernel: encoder_forward.1
= control target key start
LH: loop header
LB: loop body
LE: loop exit
PB: predicated region body
PF: predicated region fallthrough
CT: control target
= control target key end

     0   :  { %s6564_s30 = smov 0   ;;  %s8869_s0 = inlined_call_operand.vmem [shape: bf16[2,82,16], index: 0, kind: input, shape index: {}]   ;;  %s8870_s1 = inlined_call_operand.vmem [shape: bf16[4,16,16], index: 1, kind: input, shape index: {}]   ;;  %s8871_s2 = inlined_call_operand.vmem [shape: f32[1,16], index: 2, kind: input, shape index: {}]   ;;  %s8872_s3 = inlined_call_operand.vmem [shape: bf16[9,16,32], index: 3, kind: input, shape index: {}]   ;;  %s8873_s4 = inlined_call_operand.vmem [shape: f32[1,32], index: 4, kind: input, shape index: {}]   ;;  %s8874_s5 = inlined_call_operand.vmem [shape: bf16[9,32,32], index: 5, kind: input, shape index: {}]   ;;  %s8875_s6 = inlined_call_operand.vmem [shape: f32[1,32], index: 6, kind: input, shape index: {}]   ;;  %s8876_s7 = inlined_call_operand.vmem [shape: f32[16,80,32], index: 7, kind: input, shape index: {}]   ;;  %s8877_s8 = inlined_call_operand.vmem [shape: f32[1,16], index: 8, kind: input, shape index: {}]   ;;  %s8878_s9 = inlined_call_operand.vmem [shape: f32[2,1,16], index: 9, kind: output, shape index: {}]  }
   0x1 LB: > { %s5305_s10 = sadd.s32 4294967295, %s6509_s30   ;;  %p5309_p0 = scmp.ge.s32.totalorder %s6509_s30, 1  ;;  %s6509_s30 = sphi %s6564_s30, %s19_s30  }
   0x2   : > { %p287_p1 = scmp.lt.s32.totalorder %s6509_s30, 3 }
   0x4   : > { %p288_p2 = pnand %p5309_p0, %p287_p1 }
   0x5   : > { %p321_p3 = scmp.lt.s32.totalorder (!%p288_p2), %s5305_s10, 1 }
   0x6   : > { %291 = sbr.rel (%p288_p2) target bundleno = 1545 (0x609), region = 56 }
   0xb   : > { %v6415_v0 = vld [vmem:[%s8870_s1] sm:$0xff]   ;;  %v6511_v1 = vmov 0.0   ;;  %v6416_v2 = vld [vmem:[%s8870_s1 + $0x8] sm:$0xff]   ;;  %vm8883_vm0 = vmmov 0   ;;  %s9043_s10 = smov (!%p321_p3, %s5305_s10), 1  ;;  %vm8885_vm1 = vcmask 130048  }
   0xc   : > { %5923 = vmatprep.subr.bf16.mxu1 %v6511_v1  ;;  %5901 = vmatprep.subr.bf16.mxu0 %v6511_v1  ;;  %s6403_s15 = smul.u32 44, %s9043_s10  ;;  %v6420_v3 = vld [vmem:[%s8870_s1 + $0x18] sm:$0xff]   ;;  %vm8881_vm2 = vsmask.f32 7424  ;;  %v6419_v13 = vld [vmem:[%s8870_s1 + $0x10] sm:$0xff]   ;;  %vm8880_vm3 = vcmask 1046528   ;;  %s328_s27 = scalar_lea.vmem %s8878_s9, %s9043_s10 }
   0xd   : > { %5924 = vmatpush3.bf16.msra.mxu1 %v6415_v0  ;;  %5925 = vmatprep.mubr.msk.bf16.mxu1 %vm8883_vm0, %v6511_v1  ;;  %vm954_vm4 = vcmask 125952   ;;  %vm8879_vm5 = vcmask 257024   ;;  %vm989_vm6 = vcmask 125953   ;;  %vm8882_vm7 = vsmask.f32 7942 }
   0xe   : > { %5902 = vmatpush3.bf16.msra.mxu0 %v6416_v2  ;;  %5903 = vmatprep.mubr.msk.bf16.mxu0 %vm8883_vm0, %v6511_v1  ;;  %s6595_s20 = scalar_lea.vmem %s8869_s0, %s6403_s15  ;;  %vm1005_vm8 = vcmask 1041408   ;;  %vm1014_vm9 = vcmask 125954   ;;  %vm8890_vm10 = vsmask.f32 7946  ;;  %vm1006_vm11 = vcmask 1045508   ;;  %vm6761_vm14 = vmand %vm989_vm6, %vm8882_vm7 }
   0xf   : > { %5945 = vmatprep.subr.bf16.mxu0 %v6511_v1  ;;  %5967 = vmatprep.subr.bf16.mxu1 %v6511_v1  ;;  %v6417_v4 = vld [vmem:[%s6595_s20] sm:$0xff]   ;;  %v6418_v5 = vld [vmem:[%s6595_s20 + $0x8] sm:$0xff]   ;;  %v6421_v9 = vld [vmem:[%s6595_s20 + $0x10] sm:$0xff]   ;;  %vm995_vm12 = vcmask 123904   ;;  %vm8887_vm13 = vsmask.f32 1280 }
  0x10   : > { %5926 = vmatmul.mubr.msk.bf16.vlgmr.msra.gmra.mxu1 %vm8885_vm1, %v6417_v4  ;;  %v372_v6 = vshrl.u32 %v6417_v4, 16  ;;  %v374_v7 = vshll.u32 %v6417_v4, 16  ;;  %v379_v8 = vshll.u32 %v6418_v5, 16  ;;  %v383_v14 = vshrl.u32 %v6418_v5, 16  ;;  %v338_v16 = vld [vmem:[%s6595_s20 + $0x20] sm:$0xf] }
  0x11   : > { %5968 = vmatpush3.bf16.msra.mxu1 %v6420_v3  ;;  %5929 = vmatprep.mubr.msk.bf16.mxu1 %vm8883_vm0, %v6511_v1  ;;  %v387_v15 = vshll.u32 %v6421_v9, 16  ;;  %v341_v17 = vld [vmem:[%s6595_s20 + $0x24] sm:$0x1]  ;;  %v6422_v21 = vld [vmem:[%s6595_s20 + $0x18] sm:$0xff]   ;;  %v391_v23 = vshrl.u32 %v6421_v9, 16  ;;  %v5324_v37 = vcombine.low %v338_v16, %v338_v16  ;;  %v6426_v39 = vld [vmem:[%s6595_s20 + $0xc] sm:$0xff]  }
  0x12   : > { %v376_v10 = vrot.slane %v374_v7, 1  ;;  %6011 = vmatprep.subr.bf16.mxu1 %v6511_v1  ;;  %v381_v11 = vrot.slane %v379_v8, 1  ;;  %v5317_v22 = vcombine.low %v338_v16, %v341_v17  ;;  %v395_v25 = vshll.u32 %v6422_v21, 16  ;;  %v594_v32 = vld [vmem:[%s6595_s20 + $0x4] sm:$0xf]  ;;  %v6428_v50 = vld [vmem:[%s6595_s20 + $0x14] sm:$0xff]  }
  0x13   : > { %v389_v20 = vrot.slane %v387_v15, 1  ;;  %v399_v27 = vshrl.u32 %v6422_v21, 16  ;;  %v595_v33 = vld [vmem:[%s6595_s20 + $0x8] sm:$0xf]  ;;  %v773_v35 = vld [vmem:[%s6595_s20 + $0x4] sm:$0xe] }
  0x14   : > { %v377_v12 = vor.u32 %v376_v10, %v372_v6  ;;  %v385_v19 = vor.u32 %v383_v14, %v381_v11  ;;  %v403_v26 = vshll.u32 %v5317_v22, 16  ;;  %v397_v29 = vrot.slane %v395_v25, 1  ;;  %v6429_v58 = vld [vmem:[%s6595_s20 + $0x1c] sm:$0xff]   ;;  %v6430_v3 = vld [vmem:[%s6595_s20 + $0x24] sm:$0x1f]  }
  0x15   : > { %v393_v28 = vor.u32 %v391_v23, %v389_v20  ;;  %v5333_v38 = vcombine.low %v594_v32, %v595_v33  ;;  %v5346_v40 = vcombine.low %v773_v35, %v595_v33  ;;  %v407_v41 = vshrl.u32 %v5317_v22, 16  ;;  %v6431_v17 = vld [vmem:[%s8872_s3 + $0x8] sm:$0xff]  }
  0x16   : > { %v382_v18 = vsel %vm8881_vm2, %v377_v12, %v381_v11  ;;  %v390_v24 = vsel %vm8881_vm2, %v385_v19, %v389_v20  ;;  %v405_v30 = vrot.slane %v403_v26, 1  ;;  %v401_v34 = vor.u32 %v399_v27, %v397_v29 }
  0x17   : > { %5904 = vmatmul.mubr.msk.bf16.vlgmr.msra.gmra.mxu0 %vm8885_vm1, %v382_v18  ;;  %v398_v31 = vsel %vm8881_vm2, %v393_v28, %v397_v29  ;;  %v635_v42 = vshll.u32 %v5333_v38, 16  ;;  %v781_v43 = vrot.slane %v5346_v40, 1  ;;  %v782_v44 = vrot.slane %v6426_v39, 1  ;;  %v6432_v18 = vld [vmem:[%s8872_s3] sm:$0xff]  }
  0x18   : > { %5946 = vmatpush3.bf16.msra.mxu0 %v6419_v13  ;;  %5930 = vmatmul.mubr.msk.bf16.gmra.mxu1 %vm8885_vm1, %v6418_v5  ;;  %v406_v36 = vsel %vm8881_vm2, %v401_v34, %v405_v30  ;;  %v409_v45 = vor.u32 %v407_v41, %v405_v30  ;;  %v633_v46 = vshrl.u32 %v5333_v38, 16  ;;  %v640_v48 = vshll.u32 %v6426_v39, 16 }
  0x19   : > { %5907 = vmatprep.mubr.msk.bf16.mxu0 %vm8883_vm0, %v6511_v1  ;;  %5933 = vmatprep.mubr.msk.bf16.mxu1 %vm8883_vm0, %v6511_v1  ;;  %v637_v47 = vrot.slane %v635_v42, 1  ;;  %v783_v49 = vsel %vm8880_vm3, %v781_v43, %v782_v44  ;;  %v784_v53 = vrot.slane %v6428_v50, 1  ;;  %v644_v55 = vshrl.u32 %v6426_v39, 16 }
  0x1a   : > { %5989 = vmatprep.subr.bf16.mxu0 %v6511_v1  ;;  %v642_v52 = vrot.slane %v640_v48, 1  ;;  %v648_v56 = vshll.u32 %v6428_v50, 16  ;;  %v786_v61 = vrot.slane %v6429_v58, 1  ;;  %v652_v63 = vshrl.u32 %v6428_v50, 16 }
  0x1b   : > { %v638_v51 = vor.u32 %v637_v47, %v633_v46  ;;  %v785_v57 = vsel %vm8880_vm3, %v782_v44, %v784_v53  ;;  %v656_v0 = vshll.u32 %v6429_v58, 16  ;;  %v788_v6 = vrot.slane %v6430_v3, 1 }
  0x1c   : > { %v646_v59 = vor.u32 %v644_v55, %v642_v52  ;;  %v650_v60 = vrot.slane %v648_v56, 1  ;;  %v787_v2 = vsel %vm8880_vm3, %v784_v53, %v786_v61  ;;  %v660_v8 = vshrl.u32 %v6429_v58, 16 }
  0x1d   : > { %v643_v54 = vsel %vm8881_vm2, %v638_v51, %v642_v52  ;;  %v658_v5 = vrot.slane %v656_v0, 1  ;;  %v789_v10 = vsel %vm8880_vm3, %v786_v61, %v788_v6  ;;  %v668_v14 = vshrl.u32 %v6430_v3, 16 }
  0x1e   : > { %v651_v62 = vsel %vm8881_vm2, %v646_v59, %v650_v60  ;;  %v654_v4 = vor.u32 %v652_v63, %v650_v60  ;;  %v6513_v16 = vmov 0   ;;  %vm1020_vm15 = vcmask 124928  }
  0x1f   : > { %5908 = vmatmul.mubr.msk.bf16.gmra.mxu0 %vm8885_vm1, %v390_v24  ;;  %v662_v11 = vor.u32 %v660_v8, %v658_v5  ;;  %965 = vst.msk [vmem:[#allocation3 + $0x4] sm:$0xf] %vm954_vm4, %v6513_v16  ;;  %964 = vst.msk [vmem:[#allocation3] sm:$0xf] %vm954_vm4, %v6513_v16  ;;  %vm1050_vm3 = vcmask 125955   ;;  %vm1066_vm7 = vcmask 1042432  }
  0x20   : > { %5934 = vmatmul.mubr.msk.bf16.gmra.mxu1 %vm8885_vm1, %v6421_v9  ;;  %5911 = vmatprep.mubr.msk.bf16.mxu0 %vm8883_vm0, %v6511_v1  ;;  %v659_v7 = vsel %vm8881_vm2, %v654_v4, %v658_v5  ;;  %v664_v9 = vshll.u32 %v6430_v3, 16  ;;  %966 = vst.msk [vmem:[#allocation3 + $0x8] sm:$0xf] %vm954_vm4, %v6513_v16  ;;  %967 = vst.msk [vmem:[#allocation3 + $0xc] sm:$0xf] %vm954_vm4, %v6513_v16 }
  0x21   : > { %5937 = vmatprep.mubr.msk.bf16.mxu1 %vm8883_vm0, %v6511_v1  ;;  %968 = vst.msk [vmem:[#allocation3 + $0x10] sm:$0xf] %vm954_vm4, %v6513_v16  ;;  %969 = vst.msk [vmem:[#allocation3 + $0x14] sm:$0xf] %vm954_vm4, %v6513_v16  ;;  %v6742_v4 = vld [vmem:[%s8871_s2] ss:$0 sm:$0xff] }
  0x22   : > { %v666_v12 = vrot.slane %v664_v9, 1  ;;  %970 = vst.msk [vmem:[#allocation3 + $0x18] sm:$0xf] %vm954_vm4, %v6513_v16  ;;  %971 = vst.msk [vmem:[#allocation3 + $0x1c] sm:$0xf] %vm954_vm4, %v6513_v16 }
  0x23   : > { %972 = vst.msk [vmem:[#allocation3 + $0x20] sm:$0xf] %vm954_vm4, %v6513_v16  ;;  %973 = vst.msk [vmem:[#allocation3 + $0x24] sm:$0xf] %vm954_vm4, %v6513_v16  ;;  %vm8886_vm6 = vsmask.f32 7950 }
  0x24   : > { %v667_v13 = vsel %vm8881_vm2, %v662_v11, %v666_v12  ;;  %v670_v15 = vor.u32 %v668_v14, %v666_v12  ;;  %974 = vst.msk [vmem:[#allocation3 + $0x28] sm:$0xf] %vm954_vm4, %v6513_v16  ;;  %975 = vst.msk [vmem:[#allocation3 + $0x2c] sm:$0xf] %vm954_vm4, %v6513_v16 }
  0x25   : > { %976 = vst.msk [vmem:[#allocation3 + $0x30] sm:$0xf] %vm954_vm4, %v6513_v16  ;;  %vm6768_vm2 = vmand %vm1014_vm9, %vm8890_vm10  ;;  %vm8918_vm10 = vmmov 0  }
  0x26   : > { %2534 = vst.msk [vmem:[#allocation5] sm:$0xf] %vm8879_vm5, %v6513_v16  ;;  %2535 = vst.msk [vmem:[#allocation5 + $0x4] sm:$0xf] %vm8879_vm5, %v6513_v16 }
  0x27   : > { %5912 = vmatmul.mubr.msk.bf16.gmra.mxu0 %vm8885_vm1, %v398_v31  ;;  %2536 = vst.msk [vmem:[#allocation5 + $0x8] sm:$0xf] %vm8879_vm5, %v6513_v16  ;;  %2537 = vst.msk [vmem:[#allocation5 + $0xc] sm:$0xf] %vm8879_vm5, %v6513_v16 }
  0x28   : > { %5938 = vmatmul.mubr.msk.bf16.gmra.mxu1 %vm8885_vm1, %v6422_v21  ;;  %5915 = vmatprep.mubr.msk.bf16.mxu0 %vm8883_vm0, %v6511_v1  ;;  %2538 = vst.msk [vmem:[#allocation5 + $0x10] sm:$0xf] %vm8879_vm5, %v6513_v16  ;;  %2539 = vst.msk [vmem:[#allocation5 + $0x14] sm:$0xf] %vm8879_vm5, %v6513_v16 }
  0x29   : > { %5941 = vmatprep.mubr.msk.bf16.mxu1 %vm8883_vm0, %v6511_v1  ;;  %2540 = vst.msk [vmem:[#allocation5 + $0x18] sm:$0xf] %vm8879_vm5, %v6513_v16  ;;  %2541 = vst.msk [vmem:[#allocation5 + $0x1c] sm:$0xf] %vm8879_vm5, %v6513_v16 }
  0x2a   : > { %2542 = vst.msk [vmem:[#allocation5 + $0x20] sm:$0xf] %vm8879_vm5, %v6513_v16  ;;  %2543 = vst.msk [vmem:[#allocation5 + $0x24] sm:$0xf] %vm8879_vm5, %v6513_v16 }
  0x2b   : > { %2544 = vst.msk [vmem:[#allocation5 + $0x28] sm:$0xf] %vm8879_vm5, %v6513_v16  ;;  %2545 = vst.msk [vmem:[#allocation5 + $0x2c] sm:$0xf] %vm8879_vm5, %v6513_v16 }
  0x2c   : > { %2546 = vst.msk [vmem:[#allocation5 + $0x30] sm:$0xf] %vm8879_vm5, %v6513_v16  ;;  %vm8889_vm5 = vsmask.f32 2304  ;;  %vm6788_vm9 = vmor %vm1005_vm8, %vm1006_vm11  ;;  %vm8888_vm8 = vsmask.f32 7938 }
  0x2d   : > { %vm1028_vm11 = vsmask.f32 6416 }
  0x2f   : > { %5916 = vmatmul.mubr.msk.bf16.gmra.mxu0 %vm8885_vm1, %v406_v36 }
  0x30   : > { %5942 = vmatmul.mubr.msk.bf16.gmra.mxu1 %vm8885_vm1, %v5324_v37  ;;  %5919 = vmatprep.mubr.msk.bf16.mxu0 %vm8883_vm0, %v6511_v1 }
  0x31   : > { %5969 = vmatprep.mubr.msk.bf16.mxu1 %vm8883_vm0, %v6511_v1 }
  0x37   : > { %5920 = vmatmul.mubr.msk.bf16.gmra.mxu0 %vm8885_vm1, %v409_v45 }
  0x38   : > { %5970 = vmatmul.mubr.msk.bf16.vlgmr.msra.gmra.mxu1 %vm8885_vm1, %v783_v49  ;;  %5947 = vmatprep.mubr.msk.bf16.mxu0 %vm8883_vm0, %v6511_v1 }
  0x39   : > { %5973 = vmatprep.mubr.msk.bf16.mxu1 %vm8883_vm0, %v6511_v1  ;;  %6012 = vmatpush3.bf16.msra.mxu1 %v6432_v18 }
  0x3a   : > { %6055 = vmatprep.subr.bf16.mxu1 %v6511_v1 }
  0x3f   : > { %5948 = vmatmul.mubr.msk.bf16.vlgmr.msra.gmra.mxu0 %vm8885_vm1, %v643_v54 }
  0x40   : > { %5974 = vmatmul.mubr.msk.bf16.gmra.mxu1 %vm8885_vm1, %v785_v57  ;;  %5951 = vmatprep.mubr.msk.bf16.mxu0 %vm8883_vm0, %v6511_v1 }
  0x41   : > { %5977 = vmatprep.mubr.msk.bf16.mxu1 %vm8883_vm0, %v6511_v1  ;;  %5990 = vmatpush3.bf16.msra.mxu0 %v6431_v17 }
  0x42   : > { %6033 = vmatprep.subr.bf16.mxu0 %v6511_v1 }
  0x47   : > { %5952 = vmatmul.mubr.msk.bf16.gmra.mxu0 %vm8885_vm1, %v651_v62 }
  0x48   : > { %5978 = vmatmul.mubr.msk.bf16.gmra.mxu1 %vm8885_vm1, %v787_v2  ;;  %5955 = vmatprep.mubr.msk.bf16.mxu0 %vm8883_vm0, %v6511_v1 }
  0x49   : > { %5981 = vmatprep.mubr.msk.bf16.mxu1 %vm8883_vm0, %v6511_v1 }
  0x4f   : > { %5956 = vmatmul.mubr.msk.bf16.gmra.mxu0 %vm8885_vm1, %v659_v7 }
  0x50   : > { %5982 = vmatmul.mubr.msk.bf16.gmra.mxu1 %vm8885_vm1, %v789_v10  ;;  %5959 = vmatprep.mubr.msk.bf16.mxu0 %vm8883_vm0, %v6511_v1 }
  0x51   : > { %5985 = vmatprep.mubr.msk.bf16.mxu1 %vm8883_vm0, %v6511_v1 }
  0x57   : > { %5960 = vmatmul.mubr.msk.bf16.gmra.mxu0 %vm8885_vm1, %v667_v13 }
  0x58   : > { %5963 = vmatprep.mubr.msk.bf16.mxu0 %vm8883_vm0, %v6511_v1  ;;  %5986 = vmatmul.mubr.msk.bf16.gmra.mxu1 %vm8885_vm1, %v788_v6 }
  0x59   : > { %6013 = vmatprep.mubr.msk.bf16.mxu1 %vm8883_vm0, %v6511_v1 }
  0x5f   : > { %5964 = vmatmul.mubr.msk.bf16.gmra.mxu0 %vm8885_vm1, %v670_v15  ;;  %vm6776_vm1 = vmand %vm995_vm12, %vm8887_vm13 }
  0x60   : > { %5991 = vmatprep.mubr.msk.bf16.mxu0 %vm8883_vm0, %v6511_v1  ;;  %vm1067_vm0 = vcmask 1046532   ;;  %vm6798_vm12 = vmand %vm1020_vm15, %vm8889_vm5 }
  0x61   : > { %vm6809_vm15 = vmand %vm1050_vm3, %vm8886_vm6  ;;  %vm1082_vm3 = vsmask.f32 256 }
  0x62   : > { %vm6820_vm6 = vmor %vm1066_vm7, %vm1067_vm0  ;;  %vm8891_vm0 = vcmask 122880  }
  0x63   : > { %vm6830_vm13 = vmand %vm954_vm4, %vm8888_vm8 }
  0x64   : > { %vm6845_vm7 = vmor %vm8889_vm5, %vm1028_vm11  ;;  %vm8915_vm11 = vcmask 130048  }
  0x65   : > { %vm6862_vm5 = vmand %vm8891_vm0, %vm1082_vm3  ;;  %vm8981_vm0 = vsmask.f32 7946 }
  0xd0   : > { %v556_v19 = vpop.f32.mrf.mxu1 }
  0xd2   : > { %v5927_v20 = vpop.f32.mrf.mxu1 }
  0xd4   : > { %v559_v21 = vpop.f32.mrf.mxu1 }
  0xd6   : > { %v5928_v22 = vpop.f32.mrf.mxu1 }
  0xd7   : > { %v466_v23 = vpop.f32.mrf.mxu0 }
  0xd8   : > { %v564_v24 = vpop.f32.mrf.mxu1  ;;  %v557_v62 = vadd.f32 %v556_v19, %v466_v23 }
  0xd9   : > { %v5905_v25 = vpop.f32.mrf.mxu0 }
  0xda   : > { %v5931_v26 = vpop.f32.mrf.mxu1 }
  0xdb   : > { %v469_v27 = vpop.f32.mrf.mxu0 }
  0xdc   : > { %v567_v28 = vpop.f32.mrf.mxu1  ;;  %v560_v6 = vadd.f32 %v559_v21, %v469_v27 }
  0xdd   : > { %v5906_v29 = vpop.f32.mrf.mxu0 }
  0xde   : > { %v5932_v30 = vpop.f32.mrf.mxu1 }
  0xdf   : > { %v474_v31 = vpop.f32.mrf.mxu0 }
  0xe0   : > { %v6721_v32 = vpop.f32.mrf.mxu1  ;;  %v565_v14 = vadd.f32 %v564_v24, %v474_v31 }
  0xe1   : > { %v5909_v33 = vpop.f32.mrf.mxu0 }
  0xe2   : > { %v5935_v34 = vpop.f32.mrf.mxu1 }
  0xe3   : > { %v477_v35 = vpop.f32.mrf.mxu0 }
  0xe4   : > { %v6723_v36 = vpop.f32.mrf.mxu1  ;;  %v568_v21 = vadd.f32 %v567_v28, %v477_v35 }
  0xe5   : > { %v5910_v37 = vpop.f32.mrf.mxu0 }
  0xe6   : > { %v5936_v38 = vpop.f32.mrf.mxu1 }
  0xe7   : > { %v482_v39 = vpop.f32.mrf.mxu0 }
  0xe8   : > { %v6725_v40 = vpop.f32.mrf.mxu1  ;;  %v573_v38 = vadd.f32 %v6721_v32, %v482_v39 }
  0xe9   : > { %v5913_v41 = vpop.f32.mrf.mxu0 }
  0xea   : > { %v5939_v42 = vpop.f32.mrf.mxu1 }
  0xeb   : > { %v6727_v43 = vpop.f32.mrf.mxu0 }
  0xec   : > { %v6729_v44 = vpop.f32.mrf.mxu1 }
  0xed   : > { %v5914_v45 = vpop.f32.mrf.mxu0 }
  0xee   : > { %v5940_v46 = vpop.f32.mrf.mxu1 }
  0xef   : > { %v6731_v47 = vpop.f32.mrf.mxu0 }
  0xf0   : > { %v6733_v48 = vpop.f32.mrf.mxu1 }
  0xf1   : > { %v5917_v49 = vpop.f32.mrf.mxu0 }
  0xf2   : > { %v5943_v50 = vpop.f32.mrf.mxu1 }
  0xf3   : > { %v6735_v51 = vpop.f32.mrf.mxu0 }
  0xf4   : > { %v591_v52 = vpop.f32.mrf.mxu1 }
  0xf5   : > { %v5918_v53 = vpop.f32.mrf.mxu0 }
  0xf6   : > { %v5944_v54 = vpop.f32.mrf.mxu1 }
  0xf7   : > { %v6737_v55 = vpop.f32.mrf.mxu0 }
  0xf8   : > { %v845_v56 = vpop.f32.mrf.mxu1 }
  0xf9   : > { %v5921_v57 = vpop.f32.mrf.mxu0 }
  0xfa   : > { %v5971_v58 = vpop.f32.mrf.mxu1 }
  0xfb   : > { %v501_v59 = vpop.f32.mrf.mxu0  ;;  %v576_v58 = vadd.f32 %v6723_v36, %v6727_v43 }
  0xfc   : > { %v848_v60 = vpop.f32.mrf.mxu1 }
  0xfd   : > { %v5922_v61 = vpop.f32.mrf.mxu0 }
  0xfe   : > { %v5972_v63 = vpop.f32.mrf.mxu1 }
  0xff   : > { %v726_v0 = vpop.f32.mrf.mxu0 }
 0x100   : > { %v764_v2 = vadd.f32 %v726_v0, %v557_v62  ;;  %v853_v3 = vpop.f32.mrf.mxu1  ;;  %v992_v62 = vld [vmem:[#allocation3 + $0x4] sm:$0xe] }
 0x101   : > { %v5949_v5 = vpop.f32.mrf.mxu0 }
 0x102   : > { %v883_v7 = vadd.f32 %v845_v56, %v764_v2  ;;  %v5975_v8 = vpop.f32.mrf.mxu1 }
 0x103   : > { %v729_v9 = vpop.f32.mrf.mxu0 }
 0x104   : > { %v899_v10 = vadd.f32 %v6742_v4, %v883_v7  ;;  %v765_v11 = vadd.f32 %v729_v9, %v560_v6  ;;  %v856_v12 = vpop.f32.mrf.mxu1 }
 0x105   : > { %v5950_v13 = vpop.f32.mrf.mxu0 }
 0x106   : > { %v908_v15 = vmax.f32 %v899_v10, 0.0  ;;  %v884_v16 = vadd.f32 %v848_v60, %v765_v11  ;;  %v5976_v17 = vpop.f32.mrf.mxu1  ;;  %v1017_v11 = vld [vmem:[#allocation3 + $0x8] sm:$0xc] }
 0x107   : > { %v734_v18 = vpop.f32.mrf.mxu0  ;;  %v584_v17 = vadd.f32 %v6729_v44, %v6735_v51 }
 0x108   : > { %v5741_v19 = vpack.c.bf16 %v908_v15, %v908_v15  ;;  %v900_v20 = vadd.f32 %v6742_v4, %v884_v16  ;;  %v766_v22 = vadd.f32 %v734_v18, %v565_v14  ;;  %v861_v23 = vpop.f32.mrf.mxu1  ;;  %v998_v16 = vld [vmem:[#allocation3 + $0x8] sm:$0x3] }
 0x109   : > { %v5953_v25 = vpop.f32.mrf.mxu0 }
 0x10a   : > { %955 = vst.msk [vmem:[#allocation2] sm:$0xf] %vm954_vm4, %v5741_v19  ;;  %v909_v26 = vmax.f32 %v900_v20, 0.0  ;;  %v885_v27 = vadd.f32 %v853_v3, %v766_v22  ;;  %v5979_v29 = vpop.f32.mrf.mxu1 }
 0x10b   : > { %v737_v30 = vpop.f32.mrf.mxu0 }
 0x10c   : > { %v5742_v33 = vpack.c.bf16 %v909_v26, %v909_v26  ;;  %v901_v24 = vadd.f32 %v6742_v4, %v885_v27  ;;  %v767_v31 = vadd.f32 %v737_v30, %v568_v21  ;;  %v864_v34 = vpop.f32.mrf.mxu1 }
 0x10d   : > { %v5954_v37 = vpop.f32.mrf.mxu0 }
 0x10e   : > { %956 = vst.msk [vmem:[#allocation2 + $0x4] sm:$0xf] %vm954_vm4, %v5742_v33  ;;  %v910_v41 = vmax.f32 %v901_v24, 0.0  ;;  %v886_v42 = vadd.f32 %v856_v12, %v767_v31  ;;  %v5980_v45 = vpop.f32.mrf.mxu1  ;;  %v581_v12 = vadd.f32 %v6725_v40, %v6731_v47 }
 0x10f   : > { %v742_v28 = vpop.f32.mrf.mxu0 }
 0x110   : > { %v5743_v35 = vpack.c.bf16 %v910_v41, %v910_v41  ;;  %v902_v46 = vadd.f32 %v6742_v4, %v886_v42  ;;  %v768_v49 = vadd.f32 %v742_v28, %v573_v38  ;;  %v6751_v50 = vpop.f32.mrf.mxu1 }
 0x111   : > { %v977_v52 = vld [vmem:[#allocation2] sm:$0xf]  ;;  %v5957_v53 = vpop.f32.mrf.mxu0 }
 0x112   : > { %v979_v32 = vshrl.u32 %v977_v52, 16  ;;  %v982_v39 = vshll.u32 %v977_v52, 16  ;;  %957 = vst.msk [vmem:[#allocation2 + $0x8] sm:$0xf] %vm954_vm4, %v5743_v35  ;;  %v911_v54 = vmax.f32 %v902_v46, 0.0  ;;  %v887_v56 = vadd.f32 %v861_v23, %v768_v49  ;;  %v5983_v57 = vpop.f32.mrf.mxu1 }
 0x113   : > { %v745_v59 = vpop.f32.mrf.mxu0  ;;  %v1053_v52 = vld [vmem:[#allocation3 + $0xc] sm:$0x8]  ;;  %v589_v57 = vadd.f32 %v6733_v48, %v6737_v55 }
 0x114   : > { %v981_v60 = vrot.slane %v979_v32, 6  ;;  %v984_v61 = vrot.slane %v982_v39, 7  ;;  %v5744_v63 = vpack.c.bf16 %v911_v54, %v911_v54  ;;  %v903_v0 = vadd.f32 %v6742_v4, %v887_v56  ;;  %v6757_v2 = vpop.f32.mrf.mxu1  ;;  %v1173_v54 = vld [vmem:[#allocation3] sm:$0xf] }
 0x115   : > { %v1001_v5 = vld [vmem:[#allocation2 + $0x4] sm:$0xf]  ;;  %v769_v36 = vadd.f32 %v745_v59, %v576_v58  ;;  %v5958_v43 = vpop.f32.mrf.mxu0 }
 0x116   : > { %v985_v6 = vor.u32 %v984_v61, %v981_v60  ;;  %v1008_v7 = vrot.slane %v1001_v5, 6  ;;  %958 = vst.msk [vmem:[#allocation2 + $0xc] sm:$0xf] %vm954_vm4, %v5744_v63  ;;  %v912_v8 = vmax.f32 %v903_v0, 0.0  ;;  %v5984_v10 = vpop.f32.mrf.mxu1 }
 0x117   : > { %v888_v13 = vadd.f32 %v864_v34, %v769_v36  ;;  %v750_v14 = vpop.f32.mrf.mxu0  ;;  %v1023_v34 = vld [vmem:[#allocation3 + $0xc] sm:$0x7] }
 0x118   : > { %v986_v18 = vrot.slane %v985_v6, 4  ;;  %v993_v19 = vsel %vm6761_vm14, %v985_v6, %v992_v62  ;;  %v5745_v20 = vpack.c.bf16 %v912_v8, %v912_v8  ;;  %v6784_v40 = vpop.f32.mrf.mxu1  ;;  %v1009_v47 = vrot.slane %v1008_v7, 4 }
 0x119   : > { %994 = vst [vmem:[#allocation3 + $0x4] sm:$0xe] %v993_v19  ;;  %v1002_v22 = vld [vmem:[#allocation2 + $0x8] sm:$0x1]  ;;  %v1026_v25 = vld [vmem:[#allocation2 + $0x8] sm:$0xe]  ;;  %v904_v21 = vadd.f32 %v6742_v4, %v888_v13  ;;  %v770_v44 = vadd.f32 %v750_v14, %v581_v12  ;;  %v5961_v51 = vpop.f32.mrf.mxu0  ;;  %v1018_v26 = vsel %vm6768_vm2, %v1008_v7, %v1017_v11 }
 0x11a   : > { %v1010_v27 = vrot.slane %v1002_v22, 6  ;;  %v1031_v29 = vshll.u32 %v1026_v25, 16  ;;  %v1034_v30 = vshrl.u32 %v1026_v25, 16  ;;  %959 = vst.msk [vmem:[#allocation2 + $0x10] sm:$0xf] %vm954_vm4, %v5745_v20  ;;  %v5987_v24 = vpop.f32.mrf.mxu1  ;;  %v999_v31 = vsel %vm6776_vm1, %v986_v18, %v998_v16 }
 0x11b   : > { %1019 = vst [vmem:[#allocation3 + $0x8] sm:$0xc] %v1018_v26  ;;  %v913_v37 = vmax.f32 %v904_v21, 0.0  ;;  %v889_v38 = vadd.f32 %v6751_v50, %v770_v44  ;;  %v753_v41 = vpop.f32.mrf.mxu0  ;;  %1000 = vst [vmem:[#allocation3 + $0x8] sm:$0x3] %v999_v31 }
 0x11c   : > { %v1011_v42 = vsel %vm6788_vm9, %v1009_v47, %v1010_v27  ;;  %v1033_v45 = vrot.slane %v1031_v29, 6  ;;  %v1036_v28 = vrot.slane %v1034_v30, 5  ;;  %v771_v35 = vadd.f32 %v753_v41, %v584_v17  ;;  %v880_v46 = vpop.f32.mrf.mxu1  ;;  %v1059_v19 = vld [vmem:[#allocation3 + $0x10] sm:$0xf]  ;;  %v1078_v20 = vld [vmem:[#allocation3 + $0x14] sm:$0xf] }
 0x11d   : > { %v1027_v53 = vld [vmem:[#allocation2 + $0xc] sm:$0x1]  ;;  %v5746_v50 = vpack.c.bf16 %v913_v37, %v913_v37  ;;  %v905_v32 = vadd.f32 %v6742_v4, %v889_v38  ;;  %v5962_v39 = vpop.f32.mrf.mxu0  ;;  %v1024_v56 = vsel %vm6798_vm12, %v1011_v42, %v1023_v34  ;;  %vm1057_vm9 = vsmask.f32 3328  ;;  %v1062_v60 = vld [vmem:[#allocation2 + $0xc] sm:$0xe] }
 0x11e   : > { %v1040_v58 = vshrl.u32 %v1027_v53, 16  ;;  %v1043_v59 = vshll.u32 %v1027_v53, 16  ;;  %v5988_v61 = vpop.f32.mrf.mxu1  ;;  %1025 = vst [vmem:[#allocation3 + $0xc] sm:$0x7] %v1024_v56  ;;  %v1037_v62 = vor.u32 %v1036_v28, %v1033_v45  ;;  %v890_v5 = vadd.f32 %v6757_v2, %v771_v35  ;;  %v6439_v2 = vld [vmem:[%s8872_s3 + $0x18] sm:$0xff]   ;;  %vm6851_vm8 = vmand %vm954_vm4, %vm1057_vm9 }
 0x11f   : > { %960 = vst.msk [vmem:[#allocation2 + $0x14] sm:$0xf] %vm954_vm4, %v5746_v50  ;;  %v914_v0 = vmax.f32 %v905_v32, 0.0  ;;  %v758_v36 = vpop.f32.mrf.mxu0  ;;  %v1054_v48 = vsel %vm6809_vm15, %v1033_v45, %v1053_v52  ;;  %v5363_v10 = vrot.slane %v1062_v60, 9  ;;  %v1084_v24 = vld [vmem:[#allocation3 + $0x18] sm:$0x1] }
 0x120   : > { %v1042_v55 = vrot.slane %v1040_v58, 5  ;;  %v1045_v43 = vrot.slane %v1043_v59, 6  ;;  %v772_v6 = vadd.f32 %v758_v36, %v589_v57  ;;  %v6834_v8 = vld [vmem:[#allocation3 + $0x4] sm:$0xf]  ;;  %1055 = vst [vmem:[#allocation3 + $0xc] sm:$0x8] %v1054_v48  ;;  %v906_v14 = vadd.f32 %v6742_v4, %v890_v5 }
 0x121   : > { %v1063_v11 = vld [vmem:[#allocation2 + $0x10] sm:$0x3]  ;;  %v1087_v12 = vld [vmem:[#allocation2 + $0x10] sm:$0xc]  ;;  %v5747_v13 = vpack.c.bf16 %v914_v0, %v914_v0  ;;  %v6841_v16 = vcombine.low %v1173_v54, %v6834_v8  ;;  %v5965_v17 = vpop.f32.mrf.mxu0  ;;  %v1038_v44 = vrot.slane %v1037_v62, 4 }
 0x122   : > { %v1046_v47 = vor.u32 %v1045_v43, %v1042_v55  ;;  %v1071_v22 = vrot.slane %v1063_v11, 5  ;;  %v1092_v23 = vshrl.u32 %v1087_v12, 16  ;;  %v1095_v25 = vshll.u32 %v1087_v12, 16  ;;  %v1123_v53 = vld [vmem:[#allocation3 + $0x20] sm:$0x7] }
 0x123   : > { %961 = vst.msk [vmem:[#allocation2 + $0x18] sm:$0xf] %vm954_vm4, %v5747_v13  ;;  %v915_v51 = vmax.f32 %v906_v14, 0.0  ;;  %v891_v26 = vadd.f32 %v6784_v40, %v772_v6  ;;  %6014 = vmatmul.mubr.msk.bf16.vlgmr.msra.gmra.mxu1 %vm8915_vm11, %v6841_v16  ;;  %v761_v27 = vpop.f32.mrf.mxu0  ;;  %v1220_v29 = vshll.u32 %v6841_v16, 16  ;;  %v1120_v40 = vld [vmem:[#allocation3 + $0x1c] sm:$0xc] }
 0x124   : > { %v1072_v31 = vsel %vm6820_vm6, %v5363_v10, %v1071_v22  ;;  %v1073_v34 = vrot.slane %v1071_v22, 4  ;;  %v1094_v37 = vrot.slane %v1092_v23, 4  ;;  %v1097_v38 = vrot.slane %v1095_v25, 5  ;;  %6017 = vmatprep.mubr.msk.bf16.mxu1 %vm8918_vm10, %v6511_v1  ;;  %6056 = vmatpush3.bf16.msra.mxu1 %v6439_v2  ;;  %v1112_v61 = vld [vmem:[#allocation3 + $0x18] sm:$0xe]  ;;  %v6435_v13 = vld [vmem:[%s8872_s3 + $0x10] sm:$0xff]  }
 0x125   : > { %v5748_v41 = vpack.c.bf16 %v915_v51, %v915_v51  ;;  %v907_v42 = vadd.f32 %v6742_v4, %v891_v26  ;;  %v5966_v45 = vpop.f32.mrf.mxu0  ;;  %v1047_v28 = vsel %vm6845_vm7, %v1038_v44, %v1046_v47  ;;  %vm1089_vm11 = vsmask.f32 7440  ;;  %6099 = vmatprep.subr.bf16.mxu1 %v6511_v1  ;;  %v1147_v36 = vld [vmem:[#allocation3 + $0x20] sm:$0x8]  ;;  %v1115_v14 = vld [vmem:[#allocation3 + $0x1c] sm:$0x3] }
 0x126   : > { %v1098_v35 = vor.u32 %v1097_v38, %v1094_v37  ;;  %v1088_v46 = vld [vmem:[#allocation2 + $0x14] sm:$0x3]  ;;  %v1118_v52 = vld [vmem:[#allocation2 + $0x14] sm:$0xc]  ;;  %v1060_v50 = vsel %vm6851_vm8, %v1047_v28, %v1059_v19  ;;  %v1079_v32 = vsel %vm6830_vm13, %v1072_v31, %v1078_v20  ;;  %v1085_v4 = vsel %vm6862_vm5, %v1073_v34, %v1084_v24 }
 0x127   : > { %v1101_v39 = vshll.u32 %v1088_v46, 16  ;;  %v1105_v54 = vshrl.u32 %v1088_v46, 16  ;;  %v1121_v56 = vsel %vm6768_vm2, %v1118_v52, %v1120_v40  ;;  %962 = vst.msk [vmem:[#allocation2 + $0x1c] sm:$0xf] %vm954_vm4, %v5748_v41  ;;  %v916_v57 = vmax.f32 %v907_v42, 0.0  ;;  %v6883_v58 = vld [vmem:[#allocation3 + $0x8] sm:$0xff]   ;;  %vm6888_vm2 = vmor %vm1057_vm9, %vm1089_vm11 }
 0x128   : > { %1061 = vst [vmem:[#allocation3 + $0x10] sm:$0xf] %v1060_v50  ;;  %1080 = vst [vmem:[#allocation3 + $0x14] sm:$0xf] %v1079_v32  ;;  %v1099_v59 = vrot.slane %v1098_v35, 4  ;;  %v1222_v60 = vrot.slane %v1220_v29, 1 }
 0x129   : > { %1086 = vst [vmem:[#allocation3 + $0x18] sm:$0x1] %v1085_v4  ;;  %1122 = vst [vmem:[#allocation3 + $0x1c] sm:$0xc] %v1121_v56  ;;  %v1103_v62 = vrot.slane %v1101_v39, 5  ;;  %v1107_v63 = vrot.slane %v1105_v54, 4  ;;  %v5749_v0 = vpack.c.bf16 %v916_v57, %v916_v57 }
 0x12a   : > { %v1225_v5 = vshll.u32 %v6883_v58, 16  ;;  %v1119_v48 = vld [vmem:[#allocation2 + $0x18] sm:$0x7]  ;;  %v1126_v55 = vld [vmem:[#allocation2 + $0x18] sm:$0x8]  ;;  %v1218_v43 = vshrl.u32 %v6841_v16, 16 }
 0x12b   : > { %v1108_v6 = vor.u32 %v1107_v63, %v1103_v62  ;;  %v1124_v2 = vsel %vm6798_vm12, %v1119_v48, %v1123_v53  ;;  %v1131_v10 = vshll.u32 %v1126_v55, 16  ;;  %963 = vst.msk [vmem:[#allocation2 + $0x20] sm:$0xf] %vm954_vm4, %v5749_v0  ;;  %vm8921_vm6 = vcmask 130048   ;;  %v1167_v29 = vld [vmem:[#allocation3 + $0x28] sm:$0xf] }
 0x12c   : > { %6018 = vmatmul.mubr.msk.bf16.gmra.mxu1 %vm8921_vm6, %v6883_v58  ;;  %1125 = vst [vmem:[#allocation3 + $0x20] sm:$0x7] %v1124_v2  ;;  %vm1157_vm7 = vcmask 1040384   ;;  %v1223_v11 = vor.u32 %v1222_v60, %v1218_v43  ;;  %v1227_v12 = vrot.slane %v1225_v5, 1  ;;  %v1104_v33 = vsel %vm6888_vm2, %v1099_v59, %v1103_v62  ;;  %v1150_v40 = vld [vmem:[#allocation3 + $0x24] sm:$0xf] }
 0x12d   : > { %6021 = vmatprep.mubr.msk.bf16.mxu1 %vm8918_vm10, %v6511_v1  ;;  %v1109_v16 = vrot.slane %v1108_v6, 4  ;;  %vm1158_vm4 = vcmask 1044484   ;;  %v1113_v17 = vsel %vm6761_vm14, %v1104_v33, %v1112_v61  ;;  %v1148_v18 = vsel %vm6809_vm15, %v1131_v10, %v1147_v36  ;;  %v1170_v41 = vld [vmem:[#allocation3 + $0x2c] sm:$0x1]  ;;  %v6954_v57 = vld [vmem:[#allocation3 + $0x8] sm:$0xf] }
 0x12e   : > { %v1127_v19 = vld [vmem:[#allocation2 + $0x1c] sm:$0x7]  ;;  %vm8922_vm12 = vsmask.f32 7424  ;;  %1114 = vst [vmem:[#allocation3 + $0x18] sm:$0xe] %v1113_v17  ;;  %vm1159_vm14 = vmor %vm1157_vm7, %vm1158_vm4 }
 0x12f   : > { %v1228_v20 = vsel %vm8922_vm12, %v1223_v11, %v1227_v12  ;;  %vm1128_vm11 = vsmask.f32 4368  ;;  %1149 = vst [vmem:[#allocation3 + $0x20] sm:$0x8] %v1148_v18  ;;  %v1133_v47 = vshrl.u32 %v1126_v55, 16  ;;  %v1138_v22 = vshrl.u32 %v1127_v19, 16  ;;  %vm8924_vm2 = vmmov %vm8922_vm12 }
 0x130   : > { %5992 = vmatmul.mubr.msk.bf16.vlgmr.msra.gmra.mxu0 %vm8921_vm6, %v1228_v20  ;;  %v6911_v23 = vld [vmem:[#allocation3 + $0x10] sm:$0xff]   ;;  %v1229_v25 = vshrl.u32 %v6883_v58, 16  ;;  %v1116_v3 = vsel %vm6776_vm1, %v1109_v16, %v1115_v14  ;;  %v1153_v44 = vld [vmem:[#allocation2 + $0x1c] sm:$0x8]  ;;  %v1141_v51 = vshll.u32 %v1127_v19, 16  ;;  %vm8923_vm1 = vmmov %vm8921_vm6  ;;  %vm8932_vm6 = vcmask 1046528  }
 0x131   : > { %6034 = vmatpush3.bf16.msra.mxu0 %v6435_v13  ;;  %5995 = vmatprep.mubr.msk.bf16.mxu0 %vm8918_vm10, %v6511_v1  ;;  %1117 = vst [vmem:[#allocation3 + $0x1c] sm:$0x3] %v1116_v3  ;;  %v1140_v49 = vrot.slane %v1138_v22, 7  ;;  %v1233_v26 = vshll.u32 %v6911_v23, 16  ;;  %v5365_v31 = vrot.slane %v1153_v44, 11  ;;  %vm1129_vm15 = vmor %vm1082_vm3, %vm1128_vm11  ;;  %v5364_v38 = vrot.slane %v1133_v47, 11 }
 0x132   : > { %6077 = vmatprep.subr.bf16.mxu0 %v6511_v1  ;;  %v1154_v27 = vld [vmem:[#allocation2 + $0x20] sm:$0xf]  ;;  %v1231_v24 = vor.u32 %v1229_v25, %v1227_v12  ;;  %vm8925_vm7 = vmmov %vm8923_vm1  ;;  %v1237_v7 = vshrl.u32 %v6911_v23, 16  ;;  %v6956_v59 = vld [vmem:[#allocation3 + $0xc] sm:$0xff]   ;;  %v1452_v17 = vrot.slane %v6883_v58, 1  ;;  %v1454_v22 = vrot.slane %v6911_v23, 1 }
 0x133   : > { %v1143_v15 = vor.u32 %v1141_v51, %v1140_v49  ;;  %v1162_v34 = vrot.slane %v1154_v27, 7  ;;  %v1235_v37 = vrot.slane %v1233_v26, 1  ;;  %vm8929_vm4 = vmmov %vm8923_vm1  ;;  %v1566_v62 = vld [vmem:[#allocation3 + $0x4] sm:$0xe]  ;;  %v1609_v9 = vrot.slane %v6956_v59, 1  ;;  %v6445_v20 = vld [vmem:[%s8872_s3 + $0x20] sm:$0xff]  }
 0x134   : > { %6022 = vmatmul.mubr.msk.bf16.gmra.mxu1 %vm8923_vm1, %v6911_v23  ;;  %v6965_v0 = vcombine.low %v1566_v62, %v6954_v57  ;;  %vm8930_vm12 = vmmov %vm8924_vm2  ;;  %v6449_v43 = vld [vmem:[%s8872_s3 + $0x28] sm:$0xff]   ;;  %v1444_v12 = vld [vmem:[#allocation3] sm:$0xe] }
 0x135   : > { %6025 = vmatprep.mubr.msk.bf16.mxu1 %vm8918_vm10, %v6511_v1  ;;  %v1163_v42 = vsel %vm1159_vm14, %v5365_v31, %v1162_v34  ;;  %v1164_v45 = vrot.slane %v1162_v34, 4  ;;  %v1236_v28 = vsel %vm8924_vm2, %v1231_v24, %v1235_v37  ;;  %v1144_v46 = vsel %vm1129_vm15, %v5364_v38, %v1143_v15  ;;  %vm8931_vm11 = vmmov %vm8923_vm1  ;;  %v6979_v10 = vld [vmem:[#allocation3 + $0x14] sm:$0xff]   ;;  %v1888_v15 = vld [vmem:[#allocation3 + $0x4] sm:$0xc] }
 0x136   : > { %v1168_v35 = vsel %vm6830_vm13, %v1163_v42, %v1167_v29  ;;  %v1151_v53 = vsel %vm6851_vm8, %v1144_v46, %v1150_v40  ;;  %vm8926_vm13 = vmmov %vm8923_vm1  ;;  %v1239_v4 = vor.u32 %v1237_v7, %v1235_v37  ;;  %v1608_v36 = vrot.slane %v6965_v0, 1  ;;  %v6453_v40 = vld [vmem:[%s8872_s3 + $0x38] sm:$0xff]  }
 0x137   : > { %1169 = vst [vmem:[#allocation3 + $0x28] sm:$0xf] %v1168_v35  ;;  %v1171_v50 = vsel %vm6862_vm5, %v1164_v45, %v1170_v41  ;;  %1152 = vst [vmem:[#allocation3 + $0x24] sm:$0xf] %v1151_v53  ;;  %v1611_v33 = vrot.slane %v6979_v10, 1  ;;  %v5388_v14 = vcombine.low %v1444_v12, %v6834_v8  ;;  %v5420_v31 = vcombine.low %v1888_v15, %v6954_v57  ;;  %v6451_v57 = vld [vmem:[%s8872_s3 + $0x30] sm:$0xff]  }
 0x138   : > { %5996 = vmatmul.mubr.msk.bf16.gmra.mxu0 %vm8925_vm7, %v1236_v28  ;;  %v6932_v52 = vld [vmem:[#allocation3 + $0x18] sm:$0xff]   ;;  %1172 = vst [vmem:[#allocation3 + $0x2c] sm:$0x1] %v1171_v50  ;;  %vm8927_vm8 = vmmov %vm8924_vm2  ;;  %v1610_v6 = vsel %vm8932_vm6, %v1608_v36, %v1609_v9  ;;  %v1897_v37 = vrot.slane %v6956_v59, 2  ;;  %v1740_v45 = vshrl.u32 %v6956_v59, 16  ;;  %v1743_v28 = vshll.u32 %v6956_v59, 16 }
 0x139   : > { %5999 = vmatprep.mubr.msk.bf16.mxu0 %vm8918_vm10, %v6511_v1  ;;  %v1241_v32 = vshll.u32 %v6932_v52, 16  ;;  %vm8928_vm5 = vmmov %vm8923_vm1  ;;  %v1245_v54 = vshrl.u32 %v6932_v52, 16  ;;  %v6993_v18 = vld [vmem:[#allocation3 + $0x1c] sm:$0xff]   ;;  %v1451_v19 = vrot.slane %v5388_v14, 1  ;;  %v1456_v23 = vrot.slane %v6932_v52, 1 }
 0x13a   : > { %vm8933_vm14 = vmmov %vm8923_vm1  ;;  %v1613_v8 = vrot.slane %v6993_v18, 1  ;;  %v1896_v38 = vrot.slane %v5420_v31, 2  ;;  %v1732_v35 = vshrl.u32 %v6965_v0, 16  ;;  %v1735_v46 = vshll.u32 %v6965_v0, 16  ;;  %v2011_v14 = vld [vmem:[#allocation3 + $0x8] sm:$0xc] }
 0x13b   : > { %v1243_v39 = vrot.slane %v1241_v32, 1  ;;  %vm8934_vm1 = vmmov %vm8924_vm2  ;;  %v1899_v53 = vrot.slane %v6979_v10, 2  ;;  %v1742_v50 = vrot.slane %v1740_v45, 1  ;;  %v1745_v7 = vrot.slane %v1743_v28, 2 }
 0x13c   : > { %6026 = vmatmul.mubr.msk.bf16.gmra.mxu1 %vm8926_vm13, %v6932_v52  ;;  %vm8935_vm15 = vmmov %vm8929_vm4  ;;  %v1734_v32 = vrot.slane %v1732_v35, 1  ;;  %v1761_v0 = vshll.u32 %v6993_v18, 16 }
 0x13d   : > { %6029 = vmatprep.mubr.msk.bf16.mxu1 %vm8918_vm10, %v6511_v1  ;;  %v1244_v21 = vsel %vm8927_vm8, %v1239_v4, %v1243_v39  ;;  %v1247_v60 = vor.u32 %v1245_v54, %v1243_v39  ;;  %vm8936_vm2 = vmmov %vm8932_vm6  ;;  %v1737_v4 = vrot.slane %v1735_v46, 2  ;;  %v1752_v54 = vshll.u32 %v6979_v10, 16 }
 0x13e   : > { %v6948_v30 = vld [vmem:[#allocation3 + $0x20] sm:$0xff]   ;;  %v6960_v63 = vld [vmem:[#allocation3 + $0x28] ss:$0 sps:$4 sm:$0x11]   ;;  %v1612_v16 = vsel %vm8936_vm2, %v1609_v9, %v1611_v33  ;;  %vm8937_vm7 = vmmov %vm8929_vm4 }
 0x13f   : > { %v1249_v56 = vshll.u32 %v6948_v30, 16  ;;  %v1253_v48 = vshrl.u32 %v6948_v30, 16  ;;  %v1257_v55 = vshll.u32 %v6960_v63, 16  ;;  %vm8938_vm13 = vmmov %vm8936_vm2  ;;  %v7009_v25 = vld [vmem:[#allocation3 + $0x24] sm:$0xff]   ;;  %v1458_v24 = vrot.slane %v6948_v30, 1 }
 0x140   : > { %6000 = vmatmul.mubr.msk.bf16.gmra.mxu0 %vm8928_vm5, %v1244_v21  ;;  %v1453_v47 = vsel %vm8938_vm13, %v1451_v19, %v1452_v17  ;;  %vm8939_vm8 = vmmov %vm8929_vm4  ;;  %v1615_v44 = vrot.slane %v7009_v25, 1  ;;  %v6448_v51 = vld [vmem:[#allocation3 + $0x2c] ss:$0 sps:$4 sm:$0x11]   ;;  %v1460_v42 = vrot.slane %v6960_v63, 1  ;;  %v1746_v21 = vor.u32 %v1745_v7, %v1742_v50  ;;  %v7113_v35 = vld [vmem:[#allocation3 + $0x20] sm:$0xff]  }
 0x141   : > { %6003 = vmatprep.mubr.msk.bf16.mxu0 %vm8918_vm10, %v6511_v1  ;;  %v1251_v61 = vrot.slane %v1249_v56, 1  ;;  %v1259_v11 = vrot.slane %v1257_v55, 1  ;;  %vm8940_vm5 = vmmov %vm8936_vm2  ;;  %v1617_v27 = vrot.slane %v6448_v51, 1  ;;  %v1738_v56 = vor.u32 %v1737_v4, %v1734_v32 }
 0x142   : > { %v1614_v58 = vsel %vm8940_vm5, %v1611_v33, %v1613_v8  ;;  %vm8943_vm6 = vmmov %vm8936_vm2  ;;  %vm1895_vm5 = vcmask 1045504   ;;  %v1754_v62 = vrot.slane %v1752_v54, 2  ;;  %v1758_v63 = vshrl.u32 %v6993_v18, 16  ;;  %v7088_v33 = vld [vmem:[#allocation3 + $0x10] sm:$0xff]   ;;  %v6457_v54 = vld [vmem:[%s8872_s3 + $0x40] sm:$0xff]  }
 0x143   : > { %v1252_v5 = vsel %vm8930_vm12, %v1247_v60, %v1251_v61  ;;  %v1255_v2 = vor.u32 %v1253_v48, %v1251_v61  ;;  %vm8941_vm12 = vmmov %vm8936_vm2  ;;  %v1616_v49 = vsel %vm8943_vm6, %v1613_v8, %v1615_v44  ;;  %v1898_v41 = vsel %vm1895_vm5, %v1896_v38, %v1897_v37 }
 0x144   : > { %6030 = vmatmul.mubr.msk.bf16.gmra.mxu1 %vm8929_vm4, %v6948_v30  ;;  %v1455_v3 = vsel %vm8941_vm12, %v1452_v17, %v1454_v22  ;;  %v1900_v39 = vsel %vm1895_vm5, %v1897_v37, %v1899_v53  ;;  %v1749_v30 = vshrl.u32 %v6979_v10, 16  ;;  %vm8953_vm6 = vmmov %vm8929_vm4  ;;  %v1901_v60 = vrot.slane %v6993_v18, 2  ;;  %v7083_v10 = vld [vmem:[#allocation3 + $0xc] sm:$0xf] }
 0x145   : > { %6057 = vmatprep.mubr.msk.bf16.mxu1 %vm8918_vm10, %v6511_v1  ;;  %v1260_v13 = vsel %vm8934_vm1, %v1255_v2, %v1259_v11  ;;  %vm8945_vm1 = vmmov %vm8936_vm2  ;;  %v1760_v36 = vrot.slane %v1758_v63, 1  ;;  %v1763_v48 = vrot.slane %v1761_v0, 2  ;;  %v6452_v2 = vld [vmem:[#allocation3 + $0x2c] ss:$0 sps:$4 sm:$0x33]   ;;  %v1767_v12 = vshrl.u32 %v7009_v25, 16 }
 0x146   : > { %v1457_v26 = vsel %vm8945_vm1, %v1454_v22, %v1456_v23  ;;  %vm8947_vm2 = vmmov %vm8945_vm1  ;;  %v1751_v61 = vrot.slane %v1749_v30, 1  ;;  %v1905_v18 = vrot.slane %v6452_v2, 2  ;;  %v2188_v8 = vshll.u32 %v7088_v33, 16 }
 0x147   : > { %v1618_v29 = vsel %vm8947_vm2, %v1615_v44, %v1617_v27  ;;  %vm8949_vm13 = vmmov %vm8945_vm1  ;;  %v1769_v19 = vrot.slane %v1767_v12, 1  ;;  %v7101_v44 = vld [vmem:[#allocation3 + $0x18] sm:$0xff]   ;;  %v2206_v50 = vshll.u32 %v7113_v35, 16  ;;  %v2054_v32 = vrot.slane %v7088_v33, 2 }
 0x148   : > { %6004 = vmatmul.mubr.msk.bf16.gmra.mxu0 %vm8931_vm11, %v1252_v5  ;;  %vm8942_vm11 = vmmov %vm8929_vm4  ;;  %v1459_v34 = vsel %vm8949_vm13, %v1456_v23, %v1458_v24  ;;  %v1902_v5 = vsel %vm1895_vm5, %v1899_v53, %v1901_v60  ;;  %v1755_v9 = vor.u32 %v1754_v62, %v1751_v61  ;;  %v2190_v51 = vrot.slane %v2188_v8, 3 }
 0x149   : > { %6007 = vmatprep.mubr.msk.bf16.mxu0 %vm8918_vm10, %v6511_v1  ;;  %vm8951_vm12 = vmmov %vm8945_vm1  ;;  %v2194_v15 = vshrl.u32 %v7101_v44, 16  ;;  %v2197_v38 = vshll.u32 %v7101_v44, 16  ;;  %v2203_v53 = vshrl.u32 %v7113_v35, 16  ;;  %v2056_v62 = vrot.slane %v7101_v44, 2 }
 0x14a   : > { %v1461_v52 = vsel %vm8951_vm12, %v1458_v24, %v1460_v42  ;;  %vm8954_vm1 = vmmov %vm8929_vm4  ;;  %vm8893_vm12 = vsmask.f32 5376 }
 0x14b   : > { %vm8956_vm2 = vmmov %vm8954_vm1  ;;  %v2196_v45 = vrot.slane %v2194_v15, 2  ;;  %v2199_v28 = vrot.slane %v2197_v38, 3  ;;  %v2205_v4 = vrot.slane %v2203_v53, 2 }
 0x14c   : > { %6058 = vmatmul.mubr.msk.bf16.vlgmr.msra.gmra.mxu1 %vm8933_vm14, %v1610_v6  ;;  %vm8944_vm14 = vmmov %vm8929_vm4  ;;  %v1764_v6 = vor.u32 %v1763_v48, %v1760_v36 }
 0x14d   : > { %6061 = vmatprep.mubr.msk.bf16.mxu1 %vm8918_vm10, %v6511_v1  ;;  %6100 = vmatpush3.bf16.msra.mxu1 %v6449_v43  ;;  %v1903_v43 = vrot.slane %v7009_v25, 2  ;;  %vm8958_vm13 = vmmov %vm8954_vm1 }
 0x14e   : > { %6143 = vmatprep.subr.bf16.mxu1 %v6511_v1 }
 0x14f   : > { %v1904_v11 = vsel %vm1895_vm5, %v1901_v60, %v1903_v43 }
 0x150   : > { %6008 = vmatmul.mubr.msk.bf16.gmra.mxu0 %vm8935_vm15, %v1260_v13  ;;  %vm8946_vm15 = vmmov %vm8929_vm4  ;;  %v1770_v13 = vshll.u32 %v7009_v25, 16  ;;  %v1906_v25 = vsel %vm1895_vm5, %v1903_v43, %v1905_v18  ;;  %v6461_v18 = vld [vmem:[#allocation3 + $0x30] ss:$0 sps:$4 sm:$0x33]  }
 0x151   : > { %6035 = vmatprep.mubr.msk.bf16.mxu0 %vm8918_vm10, %v6511_v1 }
 0x154   : > { %6062 = vmatmul.mubr.msk.bf16.gmra.mxu1 %vm8937_vm7, %v1612_v16  ;;  %vm8948_vm7 = vmmov %vm8929_vm4  ;;  %v5429_v16 = vcombine.low %v2011_v14, %v7083_v10 }
 0x155   : > { %6065 = vmatprep.mubr.msk.bf16.mxu1 %vm8918_vm10, %v6511_v1 }
 0x156   : > { %v2180_v22 = vshll.u32 %v5429_v16, 16  ;;  %v2053_v30 = vrot.slane %v5429_v16, 2 }
 0x158   : > { %6036 = vmatmul.mubr.msk.bf16.vlgmr.msra.gmra.mxu0 %vm8939_vm8, %v1453_v47  ;;  %vm8950_vm8 = vmmov %vm8929_vm4  ;;  %v2185_v47 = vshrl.u32 %v7088_v33, 16 }
 0x159   : > { %6078 = vmatpush3.bf16.msra.mxu0 %v6445_v20  ;;  %6039 = vmatprep.mubr.msk.bf16.mxu0 %vm8918_vm10, %v6511_v1  ;;  %v1772_v20 = vrot.slane %v1770_v13, 2 }
 0x15a   : > { %6121 = vmatprep.subr.bf16.mxu0 %v6511_v1  ;;  %v2187_v23 = vrot.slane %v2185_v47, 2  ;;  %v2333_v47 = vld [vmem:[#allocation3 + $0x8] sm:$0x8] }
 0x15b   : > { %v5452_v8 = vcombine.low %v2333_v47, %v7083_v10  ;;  %v2346_v10 = vrot.slane %v7113_v35, 3 }
 0x15c   : > { %6066 = vmatmul.mubr.msk.bf16.gmra.mxu1 %vm8929_vm4, %v1614_v58  ;;  %v2177_v58 = vshrl.u32 %v5429_v16, 16 }
 0x15d   : > { %6069 = vmatprep.mubr.msk.bf16.mxu1 %vm8918_vm10, %v6511_v1 }
 0x15e   : > { %v2179_v27 = vrot.slane %v2177_v58, 2  ;;  %v2342_v58 = vrot.slane %v7088_v33, 3 }
 0x160   : > { %6040 = vmatmul.mubr.msk.bf16.gmra.mxu0 %vm8942_vm11, %v1455_v3  ;;  %vm8952_vm11 = vmmov %vm8929_vm4  ;;  %v1776_v3 = vshrl.u32 %v6452_v2, 16 }
 0x161   : > { %6043 = vmatprep.mubr.msk.bf16.mxu0 %vm8918_vm10, %v6511_v1 }
 0x162   : > { %v1778_v24 = vrot.slane %v1776_v3, 1  ;;  %v2344_v3 = vrot.slane %v7101_v44, 3 }
 0x164   : > { %6070 = vmatmul.mubr.msk.bf16.gmra.mxu1 %vm8944_vm14, %v1616_v49  ;;  %vm8894_vm14 = vsmask.f32 6400  ;;  %v1773_v49 = vor.u32 %v1772_v20, %v1769_v19  ;;  %v2062_v19 = vrot.slane %v6461_v18, 2 }
 0x165   : > { %6073 = vmatprep.mubr.msk.bf16.mxu1 %vm8918_vm10, %v6511_v1  ;;  %v1747_v59 = vsel %vm8894_vm14, %v1738_v56, %v1746_v21  ;;  %v1756_v55 = vsel %vm8894_vm14, %v1746_v21, %v1755_v9  ;;  %v1765_v17 = vsel %vm8894_vm14, %v1755_v9, %v1764_v6  ;;  %v7126_v21 = vld [vmem:[#allocation3 + $0x28] sm:$0xff]   ;;  %v2055_v56 = vsel %vm1895_vm5, %v2053_v30, %v2054_v32 }
 0x166   : > { %v1774_v31 = vsel %vm8894_vm14, %v1764_v6, %v1773_v49  ;;  %v2215_v60 = vshll.u32 %v7126_v21, 16  ;;  %v2057_v9 = vsel %vm1895_vm5, %v2054_v32, %v2056_v62  ;;  %v2058_v6 = vrot.slane %v7113_v35, 2 }
 0x167   : > { %v2060_v16 = vrot.slane %v7126_v21, 2 }
 0x168   : > { %6044 = vmatmul.mubr.msk.bf16.gmra.mxu0 %vm8946_vm15, %v1457_v26  ;;  %vm8955_vm15 = vmmov %vm8954_vm1  ;;  %v1779_v26 = vshll.u32 %v6452_v2, 16  ;;  %v2217_v0 = vrot.slane %v2215_v60, 3  ;;  %v2059_v12 = vsel %vm1895_vm5, %v2056_v62, %v2058_v6 }
 0x169   : > { %6047 = vmatprep.mubr.msk.bf16.mxu0 %vm8918_vm10, %v6511_v1  ;;  %v2063_v20 = vsel %vm1895_vm5, %v2060_v16, %v2062_v19 }
 0x16a   : > { %v1781_v37 = vrot.slane %v1779_v26, 2 }
 0x16c   : > { %6074 = vmatmul.mubr.msk.bf16.gmra.mxu1 %vm8948_vm7, %v1618_v29  ;;  %vm8957_vm7 = vmmov %vm8954_vm1  ;;  %v2182_v29 = vrot.slane %v2180_v22, 3  ;;  %v1782_v42 = vor.u32 %v1781_v37, %v1778_v24  ;;  %v2341_v22 = vrot.slane %v5452_v8, 3 }
 0x16d   : > { %6101 = vmatprep.mubr.msk.bf16.mxu1 %vm8918_vm10, %v6511_v1 }
 0x16e   : > { %v1783_v46 = vsel %vm8894_vm14, %v1773_v49, %v1782_v42 }
 0x170   : > { %6048 = vmatmul.mubr.msk.bf16.gmra.mxu0 %vm8950_vm8, %v1459_v34  ;;  %vm8959_vm8 = vmmov %vm8954_vm1  ;;  %v2191_v34 = vor.u32 %v2190_v51, %v2187_v23  ;;  %v2348_v23 = vrot.slane %v7126_v21, 3 }
 0x171   : > { %6051 = vmatprep.mubr.msk.bf16.mxu0 %vm8918_vm10, %v6511_v1 }
 0x174   : > { %6102 = vmatmul.mubr.msk.bf16.vlgmr.msra.gmra.mxu1 %vm8929_vm4, %v1898_v41  ;;  %vm8960_vm4 = vmmov %vm8954_vm1 }
 0x175   : > { %6105 = vmatprep.mubr.msk.bf16.mxu1 %vm8918_vm10, %v6511_v1  ;;  %6144 = vmatpush3.bf16.msra.mxu1 %v6453_v40  ;;  %v2183_v40 = vor.u32 %v2182_v29, %v2179_v27 }
 0x176   : > { %6187 = vmatprep.subr.bf16.mxu1 %v6511_v1 }
 0x177   : > { %v2192_v41 = vsel %vm8893_vm12, %v2183_v40, %v2191_v34 }
 0x178   : > { %6052 = vmatmul.mubr.msk.bf16.gmra.mxu0 %vm8952_vm11, %v1461_v52  ;;  %vm8961_vm11 = vmmov %vm8954_vm1  ;;  %v2200_v52 = vor.u32 %v2199_v28, %v2196_v45 }
 0x179   : > { %6079 = vmatprep.mubr.msk.bf16.mxu0 %vm8918_vm10, %v6511_v1 }
 0x17a   : > { %v2201_v7 = vsel %vm8893_vm12, %v2191_v34, %v2200_v52 }
 0x17c   : > { %6106 = vmatmul.mubr.msk.bf16.gmra.mxu1 %vm8953_vm6, %v1900_v39  ;;  %vm8962_vm6 = vmmov %vm8954_vm1  ;;  %v2208_v39 = vrot.slane %v2206_v50, 3 }
 0x17d   : > { %6109 = vmatprep.mubr.msk.bf16.mxu1 %vm8918_vm10, %v6511_v1 }
 0x180   : > { %6080 = vmatmul.mubr.msk.bf16.vlgmr.msra.gmra.mxu0 %vm8954_vm1, %v1747_v59  ;;  %v2212_v59 = vshrl.u32 %v7126_v21, 16 }
 0x181   : > { %6122 = vmatpush3.bf16.msra.mxu0 %v6451_v57  ;;  %6083 = vmatprep.mubr.msk.bf16.mxu0 %vm8918_vm10, %v6511_v1  ;;  %v2209_v57 = vor.u32 %v2208_v39, %v2205_v4 }
 0x182   : > { %6165 = vmatprep.subr.bf16.mxu0 %v6511_v1  ;;  %v2214_v63 = vrot.slane %v2212_v59, 2 }
 0x183   : > { %v2210_v61 = vsel %vm8893_vm12, %v2200_v52, %v2209_v57 }
 0x184   : > { %6110 = vmatmul.mubr.msk.bf16.gmra.mxu1 %vm8955_vm15, %v1902_v5  ;;  %vm8963_vm15 = vmmov %vm8954_vm1  ;;  %v6460_v5 = vld [vmem:[#allocation3 + $0x30] ss:$0 sps:$4 sm:$0x77]   ;;  %v2218_v36 = vor.u32 %v2217_v0, %v2214_v63 }
 0x185   : > { %6113 = vmatprep.mubr.msk.bf16.mxu1 %vm8918_vm10, %v6511_v1  ;;  %v2221_v48 = vshrl.u32 %v6460_v5, 16  ;;  %v2350_v24 = vrot.slane %v6460_v5, 3 }
 0x186   : > { %v2219_v43 = vsel %vm8893_vm12, %v2209_v57, %v2218_v36 }
 0x187   : > { %v2223_v2 = vrot.slane %v2221_v48, 2 }
 0x188   : > { %6084 = vmatmul.mubr.msk.bf16.gmra.mxu0 %vm8956_vm2, %v1756_v55  ;;  %vm8964_vm2 = vmmov %vm8954_vm1  ;;  %v2224_v55 = vshll.u32 %v6460_v5, 16 }
 0x189   : > { %6087 = vmatprep.mubr.msk.bf16.mxu0 %vm8918_vm10, %v6511_v1 }
 0x18c   : > { %6114 = vmatmul.mubr.msk.bf16.gmra.mxu1 %vm8957_vm7, %v1904_v11  ;;  %vm8965_vm7 = vmmov %vm8954_vm1  ;;  %v2226_v11 = vrot.slane %v2224_v55, 3 }
 0x18d   : > { %6117 = vmatprep.mubr.msk.bf16.mxu1 %vm8918_vm10, %v6511_v1 }
 0x18e   : > { %v2227_v13 = vor.u32 %v2226_v11, %v2223_v2 }
 0x190   : > { %6088 = vmatmul.mubr.msk.bf16.gmra.mxu0 %vm8958_vm13, %v1765_v17  ;;  %vm8966_vm13 = vmmov %vm8954_vm1  ;;  %v2228_v14 = vsel %vm8893_vm12, %v2218_v36, %v2227_v13  ;;  %v2061_v17 = vsel %vm1895_vm5, %v2058_v6, %v2060_v16 }
 0x191   : > { %6091 = vmatprep.mubr.msk.bf16.mxu0 %vm8918_vm10, %v6511_v1 }
 0x194   : > { %6118 = vmatmul.mubr.msk.bf16.gmra.mxu1 %vm8959_vm8, %v1906_v25  ;;  %vm8967_vm8 = vmmov %vm8954_vm1 }
 0x195   : > { %6145 = vmatprep.mubr.msk.bf16.mxu1 %vm8918_vm10, %v6511_v1 }
 0x198   : > { %6092 = vmatmul.mubr.msk.bf16.gmra.mxu0 %vm8960_vm4, %v1774_v31  ;;  %vm8968_vm4 = vmmov %vm8954_vm1 }
 0x199   : > { %6095 = vmatprep.mubr.msk.bf16.mxu0 %vm8918_vm10, %v6511_v1 }
 0x19c   : > { %6146 = vmatmul.mubr.msk.bf16.vlgmr.msra.gmra.mxu1 %vm8961_vm11, %v2192_v41  ;;  %vm8969_vm11 = vmmov %vm8954_vm1 }
 0x19d   : > { %6149 = vmatprep.mubr.msk.bf16.mxu1 %vm8918_vm10, %v6511_v1 }
 0x1a0   : > { %6096 = vmatmul.mubr.msk.bf16.gmra.mxu0 %vm8962_vm6, %v1783_v46  ;;  %vm8970_vm6 = vmmov %vm8954_vm1 }
 0x1a1   : > { %6123 = vmatprep.mubr.msk.bf16.mxu0 %vm8918_vm10, %v6511_v1 }
 0x1a4   : > { %6150 = vmatmul.mubr.msk.bf16.gmra.mxu1 %vm8954_vm1, %v2201_v7  ;;  %vm8892_vm1 = vcmask 1044480  }
 0x1a5   : > { %6153 = vmatprep.mubr.msk.bf16.mxu1 %vm8918_vm10, %v6511_v1  ;;  %v2343_v25 = vsel %vm8892_vm1, %v2341_v22, %v2342_v58  ;;  %v2345_v49 = vsel %vm8892_vm1, %v2342_v58, %v2344_v3  ;;  %v2347_v33 = vsel %vm8892_vm1, %v2344_v3, %v2346_v10  ;;  %v2349_v26 = vsel %vm8892_vm1, %v2346_v10, %v2348_v23 }
 0x1a6   : > { %v2351_v34 = vsel %vm8892_vm1, %v2348_v23, %v2350_v24 }
 0x1a8   : > { %6124 = vmatmul.mubr.msk.bf16.vlgmr.msra.gmra.mxu0 %vm8963_vm15, %v2055_v56  ;;  %vm8971_vm15 = vmmov %vm8964_vm2 }
 0x1a9   : > { %6166 = vmatpush3.bf16.msra.mxu0 %v6457_v54  ;;  %6127 = vmatprep.mubr.msk.bf16.mxu0 %vm8918_vm10, %v6511_v1 }
 0x1aa   : > { %6211 = vmatprep.subr.bf16.mxu0 %v6511_v1 }
 0x1ac   : > { %6154 = vmatmul.mubr.msk.bf16.gmra.mxu1 %vm8964_vm2, %v2210_v61 }
 0x1ad   : > { %6157 = vmatprep.mubr.msk.bf16.mxu1 %vm8918_vm10, %v6511_v1 }
 0x1b0   : > { %6128 = vmatmul.mubr.msk.bf16.gmra.mxu0 %vm8965_vm7, %v2057_v9  ;;  %vm8972_vm7 = vmmov %vm8964_vm2 }
 0x1b1   : > { %6131 = vmatprep.mubr.msk.bf16.mxu0 %vm8918_vm10, %v6511_v1 }
 0x1b4   : > { %6158 = vmatmul.mubr.msk.bf16.gmra.mxu1 %vm8966_vm13, %v2219_v43  ;;  %vm8973_vm13 = vmmov %vm8964_vm2 }
 0x1b5   : > { %6161 = vmatprep.mubr.msk.bf16.mxu1 %vm8918_vm10, %v6511_v1 }
 0x1b8   : > { %6132 = vmatmul.mubr.msk.bf16.gmra.mxu0 %vm8967_vm8, %v2059_v12  ;;  %vm8974_vm8 = vmmov %vm8964_vm2 }
 0x1b9   : > { %6135 = vmatprep.mubr.msk.bf16.mxu0 %vm8918_vm10, %v6511_v1 }
 0x1bc   : > { %6162 = vmatmul.mubr.msk.bf16.gmra.mxu1 %vm8968_vm4, %v2228_v14  ;;  %vm8975_vm4 = vcmask 257024  }
 0x1bd   : > { %6191 = vmatprep.mubr.msk.bf16.mxu1 %vm8918_vm10, %v6511_v1 }
 0x1c0   : > { %6136 = vmatmul.mubr.msk.bf16.gmra.mxu0 %vm8969_vm11, %v2061_v17  ;;  %vm8976_vm11 = vmmov %vm8975_vm4 }
 0x1c1   : > { %6139 = vmatprep.mubr.msk.bf16.mxu0 %vm8918_vm10, %v6511_v1 }
 0x1c8   : > { %6140 = vmatmul.mubr.msk.bf16.gmra.mxu0 %vm8970_vm6, %v2063_v20  ;;  %vm2559_vm6 = vcmask 257025  }
 0x1c9   : > { %6167 = vmatprep.mubr.msk.bf16.mxu0 %vm8918_vm10, %v6511_v1 }
 0x1d0   : > { %6168 = vmatmul.mubr.msk.bf16.vlgmr.msra.gmra.mxu0 %vm8971_vm15, %v2343_v25  ;;  %vm8977_vm15 = vmmov %vm8975_vm4 }
 0x1d1   : > { %6171 = vmatprep.mubr.msk.bf16.mxu0 %vm8918_vm10, %v6511_v1 }
 0x1d8   : > { %6172 = vmatmul.mubr.msk.bf16.gmra.mxu0 %vm8964_vm2, %v2345_v49  ;;  %vm2593_vm2 = vcmask 257026  }
 0x1d9   : > { %6175 = vmatprep.mubr.msk.bf16.mxu0 %vm8918_vm10, %v6511_v1  ;;  %vm7307_vm1 = vmand %vm2593_vm2, %vm8981_vm0  ;;  %vm2874_vm2 = vcmask 261120  }
 0x1e0   : > { %6176 = vmatmul.mubr.msk.bf16.gmra.mxu0 %vm8972_vm7, %v2347_v33  ;;  %vm2571_vm7 = vsmask.f32 5392 }
 0x1e1   : > { %6179 = vmatprep.mubr.msk.bf16.mxu0 %vm8918_vm10, %v6511_v1 }
 0x1e3   : > { %v1405_v51 = vpop.f32.mrf.mxu1 }
 0x1e5   : > { %v6015_v44 = vpop.f32.mrf.mxu1 }
 0x1e7   : > { %v1408_v27 = vpop.f32.mrf.mxu1 }
 0x1e8   : > { %6180 = vmatmul.mubr.msk.bf16.gmra.mxu0 %vm8973_vm13, %v2349_v26  ;;  %vm2598_vm13 = vcmask 256000  }
 0x1e9   : > { %6183 = vmatprep.mubr.msk.bf16.mxu0 %vm8918_vm10, %v6511_v1  ;;  %v6016_v29 = vpop.f32.mrf.mxu1 }
 0x1ec   : > { %v1413_v15 = vpop.f32.mrf.mxu1 }
 0x1ee   : > { %v6019_v31 = vpop.f32.mrf.mxu1 }
 0x1f0   : > { %v1316_v37 = vpop.f32.mrf.mxu0  ;;  %6184 = vmatmul.mubr.msk.bf16.gmra.mxu0 %vm8974_vm8, %v2351_v34  ;;  %v1416_v38 = vpop.f32.mrf.mxu1  ;;  %vm8978_vm8 = vsmask.f32 7942 }
 0x1f1   : > { %v1406_v40 = vadd.f32 %v1405_v51, %v1316_v37  ;;  %6215 = vmatprep.mubr.msk.bf16.mxu0 %vm8918_vm10, %v6511_v1 }
 0x1f2   : > { %v5993_v41 = vpop.f32.mrf.mxu0  ;;  %v6020_v42 = vpop.f32.mrf.mxu1 }
 0x1f4   : > { %v1319_v45 = vpop.f32.mrf.mxu0  ;;  %v1421_v28 = vpop.f32.mrf.mxu1 }
 0x1f5   : > { %v1409_v35 = vadd.f32 %v1408_v27, %v1319_v45 }
 0x1f6   : > { %v5994_v46 = vpop.f32.mrf.mxu0  ;;  %v6023_v52 = vpop.f32.mrf.mxu1 }
 0x1f8   : > { %v1324_v53 = vpop.f32.mrf.mxu0  ;;  %v1424_v50 = vpop.f32.mrf.mxu1 }
 0x1f9   : > { %v1414_v7 = vadd.f32 %v1413_v15, %v1324_v53 }
 0x1fa   : > { %v5997_v32 = vpop.f32.mrf.mxu0  ;;  %v6024_v4 = vpop.f32.mrf.mxu1 }
 0x1fc   : > { %v1327_v39 = vpop.f32.mrf.mxu0  ;;  %v1429_v21 = vpop.f32.mrf.mxu1 }
 0x1fd   : > { %v1417_v30 = vadd.f32 %v1416_v38, %v1327_v39 }
 0x1fe   : > { %v5998_v54 = vpop.f32.mrf.mxu0  ;;  %v6027_v56 = vpop.f32.mrf.mxu1 }
 0x200   : > { %v1332_v57 = vpop.f32.mrf.mxu0  ;;  %v1432_v59 = vpop.f32.mrf.mxu1 }
 0x201   : > { %v1422_v60 = vadd.f32 %v1421_v28, %v1332_v57 }
 0x202   : > { %v6001_v61 = vpop.f32.mrf.mxu0  ;;  %v6028_v62 = vpop.f32.mrf.mxu1 }
 0x204   : > { %v1335_v63 = vpop.f32.mrf.mxu0  ;;  %v1437_v0 = vpop.f32.mrf.mxu1 }
 0x205   : > { %v1425_v5 = vadd.f32 %v1424_v50, %v1335_v63 }
 0x206   : > { %v6002_v9 = vpop.f32.mrf.mxu0  ;;  %v6031_v36 = vpop.f32.mrf.mxu1 }
 0x208   : > { %v1340_v48 = vpop.f32.mrf.mxu0  ;;  %v1440_v55 = vpop.f32.mrf.mxu1 }
 0x209   : > { %v1430_v43 = vadd.f32 %v1429_v21, %v1340_v48 }
 0x20a   : > { %v6005_v6 = vpop.f32.mrf.mxu0  ;;  %v6032_v2 = vpop.f32.mrf.mxu1 }
 0x20c   : > { %v1343_v11 = vpop.f32.mrf.mxu0  ;;  %v1674_v12 = vpop.f32.mrf.mxu1 }
 0x20d   : > { %v1433_v13 = vadd.f32 %v1432_v59, %v1343_v11 }
 0x20e   : > { %v6006_v14 = vpop.f32.mrf.mxu0  ;;  %v6059_v16 = vpop.f32.mrf.mxu1 }
 0x210   : > { %v1348_v17 = vpop.f32.mrf.mxu0  ;;  %v1677_v18 = vpop.f32.mrf.mxu1 }
 0x211   : > { %v1438_v19 = vadd.f32 %v1437_v0, %v1348_v17  ;;  %v6463_v0 = vld [vmem:[%s8874_s5 + $0x18] sm:$0xff]  }
 0x212   : > { %v6009_v20 = vpop.f32.mrf.mxu0  ;;  %v6060_v47 = vpop.f32.mrf.mxu1  ;;  %6188 = vmatpush3.bf16.msra.mxu1 %v6463_v0 }
 0x213   : > { %6189 = vmatprep.subr.bf16.mxu1 %v6511_v1 }
 0x214   : > { %v1351_v8 = vpop.f32.mrf.mxu0  ;;  %v1682_v58 = vpop.f32.mrf.mxu1 }
 0x215   : > { %v1441_v22 = vadd.f32 %v1440_v55, %v1351_v8 }
 0x216   : > { %v6010_v25 = vpop.f32.mrf.mxu0  ;;  %v6063_v3 = vpop.f32.mrf.mxu1 }
 0x218   : > { %v1517_v49 = vpop.f32.mrf.mxu0  ;;  %v1685_v10 = vpop.f32.mrf.mxu1 }
 0x219   : > { %v1556_v33 = vadd.f32 %v1517_v49, %v1406_v40 }
 0x21a   : > { %v6037_v23 = vpop.f32.mrf.mxu0  ;;  %v6064_v51 = vpop.f32.mrf.mxu1 }
 0x21b   : > { %v1713_v44 = vadd.f32 %v1674_v12, %v1556_v33  ;;  %v6464_v23 = vld [vmem:[%s8874_s5 + $0x8] sm:$0xff]  }
 0x21c   : > { %v1520_v26 = vpop.f32.mrf.mxu0  ;;  %v1690_v27 = vpop.f32.mrf.mxu1  ;;  %6212 = vmatpush3.bf16.msra.mxu0 %v6464_v23 }
 0x21d   : > { %v1557_v29 = vadd.f32 %v1520_v26, %v1409_v35  ;;  %6213 = vmatprep.subr.bf16.mxu0 %v6511_v1 }
 0x21e   : > { %v6038_v24 = vpop.f32.mrf.mxu0  ;;  %v6067_v15 = vpop.f32.mrf.mxu1 }
 0x21f   : > { %v7197_v31 = vadd.f32 %v1677_v18, %v1557_v29 }
 0x220   : > { %v1525_v34 = vpop.f32.mrf.mxu0  ;;  %v1693_v37 = vpop.f32.mrf.mxu1 }
 0x221   : > { %v1558_v38 = vadd.f32 %v1525_v34, %v1414_v7 }
 0x222   : > { %v6041_v41 = vpop.f32.mrf.mxu0  ;;  %v6068_v42 = vpop.f32.mrf.mxu1 }
 0x223   : > { %v7199_v45 = vadd.f32 %v1682_v58, %v1558_v38 }
 0x224   : > { %v1528_v28 = vpop.f32.mrf.mxu0  ;;  %v1698_v46 = vpop.f32.mrf.mxu1 }
 0x225   : > { %v1559_v40 = vadd.f32 %v1528_v28, %v1417_v30 }
 0x226   : > { %v6042_v52 = vpop.f32.mrf.mxu0  ;;  %v6071_v53 = vpop.f32.mrf.mxu1 }
 0x227   : > { %v7201_v50 = vadd.f32 %v1685_v10, %v1559_v40 }
 0x228   : > { %v1533_v32 = vpop.f32.mrf.mxu0  ;;  %v1701_v35 = vpop.f32.mrf.mxu1 }
 0x229   : > { %v1560_v4 = vadd.f32 %v1533_v32, %v1422_v60 }
 0x22a   : > { %v6045_v39 = vpop.f32.mrf.mxu0  ;;  %v6072_v21 = vpop.f32.mrf.mxu1 }
 0x22b   : > { %v7203_v54 = vadd.f32 %v1690_v27, %v1560_v4 }
 0x22c   : > { %v1536_v56 = vpop.f32.mrf.mxu0  ;;  %v1706_v7 = vpop.f32.mrf.mxu1 }
 0x22d   : > { %v1561_v57 = vadd.f32 %v1536_v56, %v1425_v5 }
 0x22e   : > { %v6046_v59 = vpop.f32.mrf.mxu0  ;;  %v6075_v61 = vpop.f32.mrf.mxu1 }
 0x22f   : > { %v7205_v62 = vadd.f32 %v1693_v37, %v1561_v57  ;;  %v6466_v37 = vld [vmem:[%s8874_s5] sm:$0xff]  }
 0x230   : > { %v1541_v63 = vpop.f32.mrf.mxu0  ;;  %v1709_v30 = vpop.f32.mrf.mxu1  ;;  %6214 = vmatpush3.bf16.msra.mxu0 %v6466_v37 }
 0x231   : > { %v1562_v9 = vadd.f32 %v1541_v63, %v1430_v43  ;;  %6259 = vmatprep.subr.bf16.mxu0 %v6511_v1 }
 0x232   : > { %v6049_v36 = vpop.f32.mrf.mxu0  ;;  %v6076_v60 = vpop.f32.mrf.mxu1 }
 0x233   : > { %v7210_v48 = vadd.f32 %v1698_v46, %v1562_v9 }
 0x234   : > { %v1544_v55 = vpop.f32.mrf.mxu0  ;;  %v1962_v5 = vpop.f32.mrf.mxu1 }
 0x235   : > { %v1563_v6 = vadd.f32 %v1544_v55, %v1433_v13 }
 0x236   : > { %v6050_v2 = vpop.f32.mrf.mxu0  ;;  %v6103_v11 = vpop.f32.mrf.mxu1 }
 0x237   : > { %v7213_v12 = vadd.f32 %v1701_v35, %v1563_v6 }
 0x238   : > { %v1549_v14 = vpop.f32.mrf.mxu0  ;;  %v1965_v16 = vpop.f32.mrf.mxu1 }
 0x239   : > { %v1564_v17 = vadd.f32 %v1549_v14, %v1438_v19 }
 0x23a   : > { %v6053_v18 = vpop.f32.mrf.mxu0  ;;  %v6104_v20 = vpop.f32.mrf.mxu1 }
 0x23b   : > { %v7215_v43 = vadd.f32 %v1706_v7, %v1564_v17 }
 0x23c   : > { %v1552_v47 = vpop.f32.mrf.mxu0  ;;  %v1970_v8 = vpop.f32.mrf.mxu1 }
 0x23d   : > { %v1565_v58 = vadd.f32 %v1552_v47, %v1441_v22 }
 0x23e   : > { %v6054_v25 = vpop.f32.mrf.mxu0  ;;  %v6107_v3 = vpop.f32.mrf.mxu1 }
 0x23f   : > { %v7217_v49 = vadd.f32 %v1709_v30, %v1565_v58 }
 0x240   : > { %v1839_v10 = vpop.f32.mrf.mxu0  ;;  %v1973_v13 = vpop.f32.mrf.mxu1 }
 0x241   : > { %v1878_v33 = vadd.f32 %v1839_v10, %v1713_v44  ;;  %v6465_v44 = vld [vmem:[%s8874_s5 + $0x10] sm:$0xff]  }
 0x242   : > { %v6081_v51 = vpop.f32.mrf.mxu0  ;;  %v6108_v19 = vpop.f32.mrf.mxu1  ;;  %6190 = vmatpush3.bf16.msra.mxu1 %v6465_v44 }
 0x243   : > { %v7222_v26 = vadd.f32 %v1962_v5, %v1878_v33  ;;  %6235 = vmatprep.subr.bf16.mxu1 %v6511_v1 }
 0x244   : > { %v1842_v27 = vpop.f32.mrf.mxu0  ;;  %v1978_v29 = vpop.f32.mrf.mxu1 }
 0x245   : > { %v1879_v22 = vadd.f32 %v1842_v27, %v7197_v31 }
 0x246   : > { %v6082_v24 = vpop.f32.mrf.mxu0  ;;  %v6111_v15 = vpop.f32.mrf.mxu1 }
 0x247   : > { %v7226_v34 = vadd.f32 %v1965_v16, %v1879_v22 }
 0x248   : > { %v1847_v38 = vpop.f32.mrf.mxu0  ;;  %v1981_v41 = vpop.f32.mrf.mxu1 }
 0x249   : > { %v1880_v42 = vadd.f32 %v1847_v38, %v7199_v45 }
 0x24a   : > { %v6085_v28 = vpop.f32.mrf.mxu0  ;;  %v6112_v31 = vpop.f32.mrf.mxu1 }
 0x24b   : > { %v7237_v46 = vadd.f32 %v1970_v8, %v1880_v42 }
 0x24c   : > { %v1850_v40 = vpop.f32.mrf.mxu0  ;;  %v1986_v52 = vpop.f32.mrf.mxu1 }
 0x24d   : > { %v1881_v53 = vadd.f32 %v1850_v40, %v7201_v50 }
 0x24e   : > { %v6086_v32 = vpop.f32.mrf.mxu0  ;;  %v6115_v35 = vpop.f32.mrf.mxu1 }
 0x24f   : > { %v7240_v4 = vadd.f32 %v1973_v13, %v1881_v53 }
 0x250   : > { %v1855_v39 = vpop.f32.mrf.mxu0  ;;  %v1989_v45 = vpop.f32.mrf.mxu1 }
 0x251   : > { %v1882_v21 = vadd.f32 %v1855_v39, %v7203_v54 }
 0x252   : > { %v6089_v56 = vpop.f32.mrf.mxu0  ;;  %v6116_v7 = vpop.f32.mrf.mxu1 }
 0x253   : > { %v7243_v57 = vadd.f32 %v1978_v29, %v1882_v21 }
 0x254   : > { %v1858_v59 = vpop.f32.mrf.mxu0  ;;  %v1994_v61 = vpop.f32.mrf.mxu1 }
 0x255   : > { %v1883_v63 = vadd.f32 %v1858_v59, %v7205_v62 }
 0x256   : > { %v6090_v30 = vpop.f32.mrf.mxu0  ;;  %v6119_v0 = vpop.f32.mrf.mxu1 }
 0x257   : > { %v7246_v9 = vadd.f32 %v1981_v41, %v1883_v63 }
 0x258   : > { %v1863_v50 = vpop.f32.mrf.mxu0  ;;  %v1997_v36 = vpop.f32.mrf.mxu1 }
 0x259   : > { %v1884_v60 = vadd.f32 %v1863_v50, %v7210_v48 }
 0x25a   : > { %v6093_v55 = vpop.f32.mrf.mxu0  ;;  %v6120_v5 = vpop.f32.mrf.mxu1 }
 0x25b   : > { %v7249_v6 = vadd.f32 %v1986_v52, %v1884_v60 }
 0x25c   : > { %v1866_v54 = vpop.f32.mrf.mxu0  ;;  %v2284_v2 = vpop.f32.mrf.mxu1 }
 0x25d   : > { %v1885_v11 = vadd.f32 %v1866_v54, %v7213_v12  ;;  %v7279_v54 = vld [vmem:[%s8873_s4] ss:$0 sm:$0xff] }
 0x25e   : > { %v6094_v14 = vpop.f32.mrf.mxu0  ;;  %v6147_v16 = vpop.f32.mrf.mxu1 }
 0x25f   : > { %v7252_v17 = vadd.f32 %v1989_v45, %v1885_v11 }
 0x260   : > { %v1871_v62 = vpop.f32.mrf.mxu0  ;;  %v2287_v18 = vpop.f32.mrf.mxu1 }
 0x261   : > { %v1886_v20 = vadd.f32 %v1871_v62, %v7215_v43 }
 0x262   : > { %v6097_v47 = vpop.f32.mrf.mxu0  ;;  %v6148_v8 = vpop.f32.mrf.mxu1 }
 0x263   : > { %v7255_v58 = vadd.f32 %v1994_v61, %v1886_v20 }
 0x264   : > { %v1874_v48 = vpop.f32.mrf.mxu0  ;;  %v2292_v25 = vpop.f32.mrf.mxu1 }
 0x265   : > { %v1887_v3 = vadd.f32 %v1874_v48, %v7217_v49 }
 0x266   : > { %v6098_v10 = vpop.f32.mrf.mxu0  ;;  %v6151_v13 = vpop.f32.mrf.mxu1 }
 0x267   : > { %v7258_v33 = vadd.f32 %v1997_v36, %v1887_v3 }
 0x268   : > { %v2119_v12 = vpop.f32.mrf.mxu0  ;;  %v2295_v23 = vpop.f32.mrf.mxu1 }
 0x269   : > { %v2158_v0 = vadd.f32 %v2119_v12, %v7222_v26 }
 0x26a   : > { %v6125_v51 = vpop.f32.mrf.mxu0  ;;  %v6152_v19 = vpop.f32.mrf.mxu1 }
 0x26b   : > { %v2323_v55 = vadd.f32 %v2284_v2, %v2158_v0  ;;  %v2561_v0 = vld [vmem:[#allocation5 + $0x4] sm:$0xe] }
 0x26c   : > { %v2122_v27 = vpop.f32.mrf.mxu0  ;;  %v7260_v29 = vpop.f32.mrf.mxu1 }
 0x26d   : > { %v2159_v60 = vadd.f32 %v2122_v27, %v7226_v34 }
 0x26e   : > { %v6126_v43 = vpop.f32.mrf.mxu0  ;;  %v6155_v22 = vpop.f32.mrf.mxu1 }
 0x26f   : > { %v2324_v20 = vadd.f32 %v2287_v18, %v2159_v60 }
 0x270   : > { %v2127_v24 = vpop.f32.mrf.mxu0  ;;  %v7262_v15 = vpop.f32.mrf.mxu1 }
 0x271   : > { %v2160_v16 = vadd.f32 %v2127_v24, %v7237_v46 }
 0x272   : > { %v6129_v44 = vpop.f32.mrf.mxu0  ;;  %v6156_v37 = vpop.f32.mrf.mxu1 }
 0x273   : > { %v2325_v10 = vadd.f32 %v2292_v25, %v2160_v16 }
 0x274   : > { %v2130_v38 = vpop.f32.mrf.mxu0  ;;  %v7264_v49 = vpop.f32.mrf.mxu1 }
 0x275   : > { %v2161_v34 = vadd.f32 %v2130_v38, %v7240_v4 }
 0x276   : > { %v6130_v41 = vpop.f32.mrf.mxu0  ;;  %v6159_v42 = vpop.f32.mrf.mxu1 }
 0x277   : > { %v2326_v43 = vadd.f32 %v2295_v23, %v2161_v34 }
 0x278   : > { %v2135_v28 = vpop.f32.mrf.mxu0  ;;  %v7266_v31 = vpop.f32.mrf.mxu1 }
 0x279   : > { %v2162_v46 = vadd.f32 %v2135_v28, %v7243_v57 }
 0x27a   : > { %v6133_v40 = vpop.f32.mrf.mxu0  ;;  %v6160_v52 = vpop.f32.mrf.mxu1 }
 0x27b   : > { %v2327_v38 = vadd.f32 %v7260_v29, %v2162_v46 }
 0x27c   : > { %v2138_v53 = vpop.f32.mrf.mxu0  ;;  %v7268_v32 = vpop.f32.mrf.mxu1 }
 0x27d   : > { %v2163_v41 = vadd.f32 %v2138_v53, %v7246_v9 }
 0x27e   : > { %v6134_v35 = vpop.f32.mrf.mxu0  ;;  %v6163_v39 = vpop.f32.mrf.mxu1 }
 0x280   : > { %v2143_v45 = vpop.f32.mrf.mxu0  ;;  %v7270_v21 = vpop.f32.mrf.mxu1 }
 0x281   : > { %v2164_v35 = vadd.f32 %v2143_v45, %v7249_v6  ;;  %v2328_v6 = vadd.f32 %v7262_v15, %v2163_v41 }
 0x282   : > { %v6137_v56 = vpop.f32.mrf.mxu0  ;;  %v6164_v7 = vpop.f32.mrf.mxu1 }
 0x284   : > { %v2146_v59 = vpop.f32.mrf.mxu0 }
 0x285   : > { %v2165_v39 = vadd.f32 %v2146_v59, %v7252_v17 }
 0x286   : > { %v6138_v61 = vpop.f32.mrf.mxu0 }
 0x287   : > { %v7313_v15 = vadd.f32 %v7266_v31, %v2165_v39 }
 0x288   : > { %v2151_v63 = vpop.f32.mrf.mxu0 }
 0x289   : > { %v2166_v53 = vadd.f32 %v2151_v63, %v7255_v58 }
 0x28a   : > { %v6141_v30 = vpop.f32.mrf.mxu0 }
 0x28c   : > { %v7273_v50 = vpop.f32.mrf.mxu0 }
 0x28e   : > { %v6142_v36 = vpop.f32.mrf.mxu0 }
 0x290   : > { %v2407_v5 = vpop.f32.mrf.mxu0 }
 0x291   : > { %v2446_v11 = vadd.f32 %v2407_v5, %v2323_v55 }
 0x292   : > { %v6169_v14 = vpop.f32.mrf.mxu0 }
 0x293   : > { %v2463_v62 = vadd.f32 %v7279_v54, %v2446_v11  ;;  %v2329_v11 = vadd.f32 %v7264_v49, %v2164_v35  ;;  %v2595_v49 = vld [vmem:[#allocation5 + $0x8] sm:$0xc] }
 0x294   : > { %v2410_v26 = vpop.f32.mrf.mxu0 }
 0x295   : > { %v2473_v47 = vmax.f32 %v2463_v62, 0.0  ;;  %v2447_v8 = vadd.f32 %v2410_v26, %v2324_v20 }
 0x296   : > { %v6170_v48 = vpop.f32.mrf.mxu0 }
 0x297   : > { %v5750_v2 = vpack.c.bf16 %v2473_v47, %v2473_v47  ;;  %v2464_v3 = vadd.f32 %v7279_v54, %v2447_v8  ;;  %v2566_v47 = vld [vmem:[#allocation5 + $0x8] sm:$0x3]  ;;  %v7325_v8 = vadd.f32 %v7273_v50, %v7258_v33 }
 0x298   : > { %v2415_v13 = vpop.f32.mrf.mxu0 }
 0x299   : > { %2524 = vst.msk [vmem:[#allocation4] sm:$0xf] %vm8975_vm4, %v5750_v2  ;;  %v2474_v12 = vmax.f32 %v2464_v3, 0.0  ;;  %v2448_v51 = vadd.f32 %v2415_v13, %v2325_v10  ;;  %vm7299_vm4 = vmand %vm2559_vm6, %vm8978_vm8  ;;  %vm2625_vm6 = vcmask 257027   ;;  %vm8984_vm8 = vsmask.f32 1280 }
 0x29a   : > { %v6173_v19 = vpop.f32.mrf.mxu0  ;;  %v2331_v10 = vadd.f32 %v7268_v32, %v2166_v53 }
 0x29b   : > { %v5751_v27 = vpack.c.bf16 %v2474_v12, %v2474_v12  ;;  %v2465_v18 = vadd.f32 %v7279_v54, %v2448_v51 }
 0x29c   : > { %v2418_v22 = vpop.f32.mrf.mxu0 }
 0x29d   : > { %2525 = vst.msk [vmem:[#allocation4 + $0x4] sm:$0xf] %vm8976_vm11, %v5751_v27  ;;  %v2475_v4 = vmax.f32 %v2465_v18, 0.0  ;;  %v2449_v24 = vadd.f32 %v2418_v22, %v2326_v43  ;;  %vm2564_vm11 = vcmask 254976  }
 0x29e   : > { %v6174_v44 = vpop.f32.mrf.mxu0  ;;  %vm7319_vm0 = vmand %vm2564_vm11, %vm8984_vm8  ;;  %vm8988_vm8 = vsmask.f32 7950 }
 0x29f   : > { %v5752_v37 = vpack.c.bf16 %v2475_v4, %v2475_v4  ;;  %v2466_v25 = vadd.f32 %v7279_v54, %v2449_v24  ;;  %vm8987_vm11 = vmmov %vm8977_vm15  ;;  %v2627_v44 = vld [vmem:[#allocation5 + $0xc] sm:$0x8] }
 0x2a0   : > { %v2547_v42 = vld [vmem:[#allocation4] sm:$0xf]  ;;  %v2423_v57 = vpop.f32.mrf.mxu0  ;;  %vm7336_vm12 = vmand %vm2625_vm6, %vm8988_vm8  ;;  %vm8994_vm6 = vsmask.f32 2304 }
 0x2a1   : > { %v2549_v28 = vshrl.u32 %v2547_v42, 16  ;;  %v2552_v40 = vshll.u32 %v2547_v42, 16  ;;  %2526 = vst.msk [vmem:[#allocation4 + $0x8] sm:$0xf] %vm8977_vm15, %v5752_v37  ;;  %v2476_v23 = vmax.f32 %v2466_v25, 0.0  ;;  %v2450_v52 = vadd.f32 %v2423_v57, %v2327_v38  ;;  %vm7349_vm8 = vmand %vm2598_vm13, %vm8994_vm6 }
 0x2a2   : > { %v6177_v56 = vpop.f32.mrf.mxu0 }
 0x2a3   : > { %v2551_v7 = vrot.slane %v2549_v28, 6  ;;  %v2554_v29 = vrot.slane %v2552_v40, 7  ;;  %v5753_v61 = vpack.c.bf16 %v2476_v23, %v2476_v23  ;;  %v2467_v9 = vadd.f32 %v7279_v54, %v2450_v52 }
 0x2a4   : > { %v2569_v36 = vld [vmem:[#allocation4 + $0x4] sm:$0xe]  ;;  %v2426_v17 = vpop.f32.mrf.mxu0 }
 0x2a5   : > { %v2555_v45 = vor.u32 %v2554_v29, %v2551_v7  ;;  %v2574_v59 = vshrl.u32 %v2569_v36, 16  ;;  %v2577_v60 = vshll.u32 %v2569_v36, 16  ;;  %2527 = vst.msk [vmem:[#allocation4 + $0xc] sm:$0xf] %vm8977_vm15, %v5753_v61  ;;  %v2477_v55 = vmax.f32 %v2467_v9, 0.0 }
 0x2a6   : > { %v2451_v63 = vadd.f32 %v2426_v17, %v2328_v6  ;;  %v6178_v5 = vpop.f32.mrf.mxu0  ;;  %vm2662_vm15 = vcmask 253952   ;;  %v2600_v36 = vld [vmem:[#allocation5 + $0xc] sm:$0x7] }
 0x2a7   : > { %v2556_v14 = vrot.slane %v2555_v45, 4  ;;  %v2562_v16 = vsel %vm7299_vm4, %v2555_v45, %v2561_v0  ;;  %v2576_v62 = vrot.slane %v2574_v59, 6  ;;  %v2579_v20 = vrot.slane %v2577_v60, 7  ;;  %v2770_v0 = vld [vmem:[#allocation5] sm:$0xf] }
 0x2a8   : > { %2563 = vst [vmem:[#allocation5 + $0x4] sm:$0xe] %v2562_v16  ;;  %v2570_v31 = vld [vmem:[#allocation4 + $0x8] sm:$0x1]  ;;  %v2603_v48 = vld [vmem:[#allocation4 + $0x8] sm:$0xc]  ;;  %v5754_v34 = vpack.c.bf16 %v2477_v55, %v2477_v55  ;;  %v2468_v2 = vadd.f32 %v7279_v54, %v2451_v63  ;;  %v2431_v3 = vpop.f32.mrf.mxu0 }
 0x2a9   : > { %v2580_v13 = vor.u32 %v2579_v20, %v2576_v62  ;;  %v2583_v12 = vshrl.u32 %v2570_v31, 16  ;;  %v2586_v51 = vshll.u32 %v2570_v31, 16  ;;  %v2606_v19 = vshll.u32 %v2603_v48, 16  ;;  %v6474_v16 = vld [vmem:[%s8874_s5 + $0x38] sm:$0xff]  }
 0x2aa   : > { %v2609_v46 = vshrl.u32 %v2603_v48, 16  ;;  %2528 = vst.msk [vmem:[#allocation4 + $0x10] sm:$0xf] %vm8987_vm11, %v5754_v34  ;;  %v2478_v33 = vmax.f32 %v2468_v2, 0.0  ;;  %v2452_v50 = vadd.f32 %v2431_v3, %v2329_v11  ;;  %v6181_v27 = vpop.f32.mrf.mxu0  ;;  %v2567_v18 = vsel %vm7319_vm0, %v2556_v14, %v2566_v47 }
 0x2ab   : > { %v2581_v43 = vrot.slane %v2580_v13, 4  ;;  %v2596_v22 = vsel %vm7307_vm1, %v2580_v13, %v2595_v49  ;;  %v2585_v32 = vrot.slane %v2583_v12, 6  ;;  %v2588_v4 = vrot.slane %v2586_v51, 7  ;;  %2568 = vst [vmem:[#allocation5 + $0x8] sm:$0x3] %v2567_v18 }
 0x2ac   : > { %vm8991_vm11 = vsmask.f32 1280  ;;  %2597 = vst [vmem:[#allocation5 + $0x8] sm:$0xc] %v2596_v22  ;;  %v2608_v25 = vrot.slane %v2606_v19, 7  ;;  %v2611_v38 = vrot.slane %v2609_v46, 6  ;;  %v5755_v57 = vpack.c.bf16 %v2478_v33, %v2478_v33  ;;  %v2434_v40 = vpop.f32.mrf.mxu0 }
 0x2ad   : > { %vm7342_vm14 = vmor %vm8991_vm11, %vm2571_vm7  ;;  %v2604_v41 = vld [vmem:[#allocation4 + $0xc] sm:$0x3]  ;;  %v2635_v42 = vld [vmem:[#allocation4 + $0xc] sm:$0x8]  ;;  %v2469_v28 = vadd.f32 %v7279_v54, %v2452_v50  ;;  %v2589_v23 = vor.u32 %v2588_v4, %v2585_v32  ;;  %vm8997_vm7 = vcmask 257024   ;;  %v2453_v11 = vadd.f32 %v2434_v40, %v7313_v15 }
 0x2ae   : > { %v2615_v52 = vshrl.u32 %v2604_v41, 16  ;;  %v2618_v35 = vshll.u32 %v2604_v41, 16  ;;  %v2638_v39 = vshrl.u32 %v2635_v42, 16  ;;  %v2612_v7 = vor.u32 %v2611_v38, %v2608_v25  ;;  %2529 = vst.msk [vmem:[#allocation4 + $0x14] sm:$0xf] %vm8997_vm7, %v5755_v57  ;;  %v6182_v53 = vpop.f32.mrf.mxu0  ;;  %vm8998_vm13 = vmmov %vm8997_vm7 }
 0x2af   : > { %v2628_v29 = vsel %vm7336_vm12, %v2608_v25, %v2627_v44  ;;  %v2641_v61 = vshll.u32 %v2635_v42, 16  ;;  %v2479_v9 = vmax.f32 %v2469_v28, 0.0  ;;  %v2590_v6 = vsel %vm7342_vm14, %v2581_v43, %v2589_v23  ;;  %v7358_v60 = vld [vmem:[#allocation5 + $0x4] sm:$0xf]  ;;  %vm8999_vm11 = vmmov %vm8997_vm7  ;;  %v6475_v43 = vld [vmem:[%s8874_s5 + $0x30] sm:$0xff]  }
 0x2b0   : > { %2629 = vst [vmem:[#allocation5 + $0xc] sm:$0x8] %v2628_v29  ;;  %v2617_v17 = vrot.slane %v2615_v52, 6  ;;  %v2620_v45 = vrot.slane %v2618_v35, 7  ;;  %v2640_v59 = vrot.slane %v2638_v39, 6  ;;  %v2613_v55 = vrot.slane %v2612_v7, 4  ;;  %v2439_v14 = vpop.f32.mrf.mxu0  ;;  %vm7373_vm6 = vmand %vm8999_vm11, %vm1057_vm9 }
 0x2b1   : > { %v2643_v63 = vrot.slane %v2641_v61, 7  ;;  %v5756_v5 = vpack.c.bf16 %v2479_v9, %v2479_v9  ;;  %v2636_v20 = vld [vmem:[#allocation4 + $0x10] sm:$0x7]  ;;  %v2454_v47 = vadd.f32 %v2439_v14, %v2331_v10  ;;  %v7365_v49 = vcombine.low %v2770_v0, %v7358_v60  ;;  %v2632_v10 = vld [vmem:[#allocation5 + $0x10] sm:$0xf]  ;;  %vm7392_vm9 = vmand %vm2662_vm15, %vm1082_vm3 }
 0x2b2   : > { %v2621_v62 = vor.u32 %v2620_v45, %v2617_v17  ;;  %v2601_v31 = vsel %vm7349_vm8, %v2590_v6, %v2600_v36  ;;  %v2647_v34 = vshrl.u32 %v2636_v20, 16  ;;  %v2650_v2 = vshll.u32 %v2636_v20, 16  ;;  %v6185_v3 = vpop.f32.mrf.mxu0  ;;  %v2659_v23 = vld [vmem:[#allocation5 + $0x14] sm:$0xf]  ;;  %v2679_v0 = vld [vmem:[#allocation5 + $0x18] sm:$0xe] }
 0x2b3   : > { %v2644_v48 = vor.u32 %v2643_v63, %v2640_v59  ;;  %2530 = vst.msk [vmem:[#allocation4 + $0x18] sm:$0xf] %vm8998_vm13, %v5756_v5  ;;  %v2470_v15 = vadd.f32 %v7279_v54, %v2453_v11  ;;  %2602 = vst [vmem:[#allocation5 + $0xc] sm:$0x7] %v2601_v31  ;;  %v2471_v51 = vadd.f32 %v7279_v54, %v2454_v47  ;;  %6216 = vmatmul.mubr.msk.bf16.vlgmr.msra.gmra.mxu0 %vm2874_vm2, %v7365_v49  ;;  %vm9004_vm7 = vsmask.f32 7938 }
 0x2b4   : > { %v2622_v12 = vsel %vm7342_vm14, %v2613_v55, %v2621_v62  ;;  %v2332_v19 = vadd.f32 %v7270_v21, %v7325_v8  ;;  %v2821_v46 = vshll.u32 %v7365_v49, 16  ;;  %v2649_v33 = vrot.slane %v2647_v34, 6  ;;  %v2442_v18 = vpop.f32.mrf.mxu0  ;;  %6219 = vmatprep.mubr.msk.bf16.mxu0 %vm8918_vm10, %v6511_v1  ;;  %6260 = vmatpush3.bf16.msra.mxu0 %v6474_v16  ;;  %v2664_v21 = vld [vmem:[#allocation5 + $0x18] sm:$0x1]  ;;  %vm9005_vm13 = vmmov %vm8999_vm11  ;;  %v2682_v14 = vld [vmem:[#allocation5 + $0x1c] sm:$0x3] }
 0x2b5   : > { %v2652_v50 = vrot.slane %v2650_v2, 7  ;;  %v2480_v27 = vmax.f32 %v2470_v15, 0.0  ;;  %v2645_v22 = vrot.slane %v2644_v48, 4  ;;  %v2667_v8 = vld [vmem:[#allocation4 + $0x14] sm:$0xf]  ;;  %v2481_v4 = vmax.f32 %v2471_v51, 0.0  ;;  %6261 = vmatprep.subr.bf16.mxu0 %v6511_v1  ;;  %vm7401_vm11 = vmand %vm9005_vm13, %vm9004_vm7 }
 0x2b6   : > { %v2455_v44 = vadd.f32 %v2442_v18, %v2332_v19  ;;  %v2633_v25 = vsel %vm7373_vm6, %v2622_v12, %v2632_v10  ;;  %v2655_v42 = vrot.slane %v2649_v33, 4  ;;  %v2669_v57 = vshrl.u32 %v2667_v8, 16  ;;  %v6186_v40 = vpop.f32.mrf.mxu0  ;;  %vm9008_vm3 = vmmov %vm9005_vm13  ;;  %v2707_v31 = vld [vmem:[#allocation5 + $0x1c] sm:$0xc]  ;;  %v6473_v3 = vld [vmem:[%s8874_s5 + $0x20] sm:$0xff]  }
 0x2b7   : > { %v2653_v41 = vor.u32 %v2652_v50, %v2649_v33  ;;  %v2672_v28 = vshll.u32 %v2667_v8, 16  ;;  %2634 = vst [vmem:[#allocation5 + $0x10] sm:$0xf] %v2633_v25  ;;  %v5757_v52 = vpack.c.bf16 %v2480_v27, %v2480_v27  ;;  %v5758_v35 = vpack.c.bf16 %v2481_v4, %v2481_v4  ;;  %vm9009_vm15 = vmmov %vm9008_vm3 }
 0x2b8   : > { %v2472_v39 = vadd.f32 %v7279_v54, %v2455_v44  ;;  %v2823_v7 = vrot.slane %v2821_v46, 1  ;;  %v2665_v61 = vsel %vm7392_vm9, %v2655_v42, %v2664_v21  ;;  %v2671_v9 = vrot.slane %v2669_v57, 6  ;;  %6262 = vmatpush3.bf16.msra.mxu0 %v6475_v43  ;;  %vm9010_vm7 = vmmov %vm9008_vm3  ;;  %v2735_v46 = vld [vmem:[#allocation5 + $0x20] sm:$0x8]  ;;  %v2710_v42 = vld [vmem:[#allocation5 + $0x20] sm:$0x7] }
 0x2b9   : > { %v2654_v29 = vsel %vm7342_vm14, %v2645_v22, %v2653_v41  ;;  %v2674_v53 = vrot.slane %v2672_v28, 7  ;;  %2666 = vst [vmem:[#allocation5 + $0x18] sm:$0x1] %v2665_v61  ;;  %2531 = vst.msk [vmem:[#allocation4 + $0x1c] sm:$0xf] %vm9008_vm3, %v5757_v52  ;;  %6307 = vmatprep.subr.bf16.mxu0 %v6511_v1  ;;  %v2819_v5 = vshrl.u32 %v7365_v49, 16 }
 0x2ba   : > { %v2685_v36 = vld [vmem:[#allocation4 + $0x18] sm:$0xe]  ;;  %2532 = vst.msk [vmem:[#allocation4 + $0x20] sm:$0xf] %vm9009_vm15, %v5758_v35  ;;  %v2482_v6 = vmax.f32 %v2472_v39, 0.0  ;;  %v7412_v17 = vld [vmem:[#allocation5 + $0x8] sm:$0xff]   ;;  %v2660_v54 = vsel %vm7401_vm11, %v2654_v29, %v2659_v23 }
 0x2bb   : > { %v2675_v45 = vor.u32 %v2674_v53, %v2671_v9  ;;  %v2688_v59 = vshrl.u32 %v2685_v36, 16  ;;  %v2691_v55 = vshll.u32 %v2685_v36, 16  ;;  %2661 = vst [vmem:[#allocation5 + $0x14] sm:$0xf] %v2660_v54  ;;  %6220 = vmatmul.mubr.msk.bf16.gmra.mxu0 %vm2874_vm2, %v7412_v17  ;;  %v2826_v11 = vshll.u32 %v7412_v17, 16  ;;  %v6469_v49 = vld [vmem:[%s8874_s5 + $0x28] sm:$0xff]  }
 0x2bc   : > { %v5759_v63 = vpack.c.bf16 %v2482_v6, %v2482_v6  ;;  %6223 = vmatprep.mubr.msk.bf16.mxu0 %vm8918_vm10, %v6511_v1  ;;  %v2824_v48 = vor.u32 %v2823_v7, %v2819_v5  ;;  %v2830_v33 = vshrl.u32 %v7412_v17, 16  ;;  %v2738_v61 = vld [vmem:[#allocation5 + $0x24] sm:$0xf] }
 0x2bd   : > { %v2676_v16 = vrot.slane %v2675_v45, 4  ;;  %v2680_v62 = vsel %vm7299_vm4, %v2675_v45, %v2679_v0  ;;  %v2690_v20 = vrot.slane %v2688_v59, 6  ;;  %v2693_v47 = vrot.slane %v2691_v55, 7 }
 0x2be   : > { %2681 = vst [vmem:[#allocation5 + $0x18] sm:$0xe] %v2680_v62  ;;  %2533 = vst.msk [vmem:[#allocation4 + $0x24] sm:$0xf] %vm9010_vm7, %v5759_v63  ;;  %v2828_v34 = vrot.slane %v2826_v11, 1 }
 0x2bf   : > { %v2694_v2 = vor.u32 %v2693_v47, %v2690_v20  ;;  %v2683_v30 = vsel %vm7319_vm0, %v2676_v16, %v2682_v14  ;;  %vm9011_vm4 = vsmask.f32 7424  ;;  %v2764_v11 = vld [vmem:[#allocation5 + $0x28] sm:$0xf]  ;;  %v2767_v47 = vld [vmem:[#allocation5 + $0x2c] sm:$0x1] }
 0x2c0   : > { %v2829_v15 = vsel %vm9011_vm4, %v2824_v48, %v2828_v34  ;;  %2684 = vst [vmem:[#allocation5 + $0x1c] sm:$0x3] %v2683_v30  ;;  %v2686_v51 = vld [vmem:[#allocation4 + $0x1c] sm:$0x1]  ;;  %v2713_v19 = vld [vmem:[#allocation4 + $0x1c] sm:$0xc]  ;;  %v2832_v62 = vor.u32 %v2830_v33, %v2828_v34 }
 0x2c1   : > { %v2695_v10 = vrot.slane %v2694_v2, 4  ;;  %v2708_v12 = vsel %vm7307_vm1, %v2694_v2, %v2707_v31  ;;  %6192 = vmatmul.mubr.msk.bf16.vlgmr.msra.gmra.mxu1 %vm2874_vm2, %v2829_v15  ;;  %v2697_v26 = vshrl.u32 %v2686_v51, 16  ;;  %v2700_v50 = vshll.u32 %v2686_v51, 16  ;;  %v2714_v43 = vld [vmem:[#allocation4 + $0x20] sm:$0x3]  ;;  %vm9014_vm1 = vmmov %vm9011_vm4 }
 0x2c2   : > { %2709 = vst [vmem:[#allocation5 + $0x1c] sm:$0xc] %v2708_v12  ;;  %v2716_v27 = vshll.u32 %v2713_v19, 16  ;;  %v2719_v18 = vshrl.u32 %v2713_v19, 16  ;;  %6236 = vmatpush3.bf16.msra.mxu1 %v6469_v49  ;;  %6195 = vmatprep.mubr.msk.bf16.mxu1 %vm8918_vm10, %v6511_v1  ;;  %v2725_v22 = vshrl.u32 %v2714_v43, 16  ;;  %v2728_v58 = vshll.u32 %v2714_v43, 16 }
 0x2c3   : > { %v2741_v21 = vld [vmem:[#allocation4 + $0x20] sm:$0x8]  ;;  %6237 = vmatprep.subr.bf16.mxu1 %v6511_v1  ;;  %v2699_v8 = vrot.slane %v2697_v26, 6  ;;  %v2702_v4 = vrot.slane %v2700_v50, 7  ;;  %v7442_v41 = vld [vmem:[#allocation5 + $0x10] sm:$0xff]   ;;  %vm9015_vm0 = vcmask 1046528  }
 0x2c4   : > { %v2718_v44 = vrot.slane %v2716_v27, 7  ;;  %v2721_v25 = vrot.slane %v2719_v18, 6  ;;  %v2727_v57 = vrot.slane %v2725_v22, 6  ;;  %v2730_v28 = vrot.slane %v2728_v58, 7  ;;  %6224 = vmatmul.mubr.msk.bf16.gmra.mxu0 %vm2874_vm2, %v7442_v41  ;;  %v7481_v51 = vld [vmem:[#allocation5 + $0x8] sm:$0xf]  ;;  %vm9019_vm13 = vmmov %vm9015_vm0 }
 0x2c5   : > { %v2744_v40 = vshrl.u32 %v2741_v21, 16  ;;  %v2747_v23 = vshll.u32 %v2741_v21, 16  ;;  %v2742_v52 = vld [vmem:[#allocation4 + $0x24] sm:$0x7]  ;;  %v2703_v35 = vor.u32 %v2702_v4, %v2699_v8  ;;  %6227 = vmatprep.mubr.msk.bf16.mxu0 %vm8918_vm10, %v6511_v1  ;;  %v2834_v45 = vshll.u32 %v7442_v41, 16  ;;  %v7485_v19 = vld [vmem:[#allocation5 + $0xc] sm:$0xff]   ;;  %vm9021_vm3 = vmmov %vm9015_vm0 }
 0x2c6   : > { %v2722_v39 = vor.u32 %v2721_v25, %v2718_v44  ;;  %v2736_v7 = vsel %vm7336_vm12, %v2718_v44, %v2735_v46  ;;  %v2753_v29 = vshrl.u32 %v2742_v52, 16  ;;  %6238 = vmatpush3.bf16.msra.mxu1 %v6473_v3  ;;  %v2731_v9 = vor.u32 %v2730_v28, %v2727_v57  ;;  %vm9012_vm12 = vmmov %vm9011_vm4  ;;  %v3188_v46 = vld [vmem:[#allocation5 + $0x4] sm:$0xe]  ;;  %v6485_v58 = vld [vmem:[%s8874_s5 + $0x58] sm:$0xff]  }
 0x2c7   : > { %2737 = vst [vmem:[#allocation5 + $0x20] sm:$0x8] %v2736_v7  ;;  %v2746_v53 = vrot.slane %v2744_v40, 6  ;;  %v2749_v0 = vrot.slane %v2747_v23, 7  ;;  %v2756_v36 = vshll.u32 %v2742_v52, 16  ;;  %6283 = vmatprep.subr.bf16.mxu1 %v6511_v1  ;;  %v2704_v24 = vsel %vm7342_vm14, %v2695_v10, %v2703_v35  ;;  %v7508_v4 = vld [vmem:[#allocation5 + $0x14] sm:$0xff]   ;;  %vm9022_vm15 = vmmov %vm9015_vm0 }
 0x2c8   : > { %v2723_v6 = vrot.slane %v2722_v39, 4  ;;  %v2755_v54 = vrot.slane %v2753_v29, 6  ;;  %v2711_v5 = vsel %vm7349_vm8, %v2704_v24, %v2710_v42  ;;  %v2836_v20 = vrot.slane %v2834_v45, 1  ;;  %v6486_v44 = vld [vmem:[%s8874_s5 + $0x50] sm:$0xff]   ;;  %v3058_v40 = vld [vmem:[#allocation5] sm:$0xe]  ;;  %vm9016_vm8 = vmmov %vm9014_vm1 }
 0x2c9   : > { %v2750_v59 = vor.u32 %v2749_v0, %v2746_v53  ;;  %v2758_v55 = vrot.slane %v2756_v36, 7  ;;  %v7454_v63 = vld [vmem:[#allocation5 + $0x18] sm:$0xff]   ;;  %2712 = vst [vmem:[#allocation5 + $0x20] sm:$0x7] %v2711_v5  ;;  %v2838_v34 = vshrl.u32 %v7442_v41, 16  ;;  %v7495_v26 = vcombine.low %v3188_v46, %v7481_v51  ;;  %vm9023_vm7 = vmmov %vm9015_vm0 }
 0x2ca   : > { %v2732_v14 = vsel %vm7342_vm14, %v2723_v6, %v2731_v9  ;;  %v2761_v16 = vrot.slane %v2755_v54, 4  ;;  %v2842_v49 = vshll.u32 %v7454_v63, 16  ;;  %v2837_v30 = vsel %vm9012_vm12, %v2832_v62, %v2836_v20  ;;  %v6480_v9 = vld [vmem:[%s8874_s5 + $0x48] sm:$0xff]   ;;  %vm9025_vm12 = vmmov %vm9015_vm0 }
 0x2cb   : > { %v2751_v31 = vrot.slane %v2750_v59, 4  ;;  %v2759_v48 = vor.u32 %v2758_v55, %v2755_v54  ;;  %v2739_v2 = vsel %vm7373_vm6, %v2732_v14, %v2738_v61  ;;  %6196 = vmatmul.mubr.msk.bf16.gmra.mxu1 %vm2874_vm2, %v2837_v30  ;;  %v2840_v37 = vor.u32 %v2838_v34, %v2836_v20  ;;  %vm9017_vm6 = vmmov %vm9015_vm0  ;;  %v6491_v20 = vld [vmem:[%s8874_s5 + $0x78] sm:$0xff]  }
 0x2cc   : > { %2740 = vst [vmem:[#allocation5 + $0x24] sm:$0xf] %v2739_v2  ;;  %6228 = vmatmul.mubr.msk.bf16.gmra.mxu0 %vm2874_vm2, %v7454_v63  ;;  %6199 = vmatprep.mubr.msk.bf16.mxu1 %vm8918_vm10, %v6511_v1  ;;  %v2844_v15 = vrot.slane %v2842_v49, 1  ;;  %v2768_v3 = vsel %vm7392_vm9, %v2761_v16, %v2767_v47  ;;  %v2846_v32 = vshrl.u32 %v7454_v63, 16  ;;  %v3233_v18 = vrot.slane %v7485_v19, 1  ;;  %vm9018_vm9 = vmmov %vm9015_vm0 }
 0x2cd   : > { %v2760_v56 = vsel %vm7342_vm14, %v2751_v31, %v2759_v48  ;;  %6231 = vmatprep.mubr.msk.bf16.mxu0 %vm8918_vm10, %v6511_v1  ;;  %2769 = vst [vmem:[#allocation5 + $0x2c] sm:$0x1] %v2768_v3  ;;  %vm9013_vm14 = vmmov %vm9011_vm4  ;;  %v3232_v22 = vrot.slane %v7495_v26, 1  ;;  %v3235_v57 = vrot.slane %v7508_v4, 1  ;;  %v5498_v39 = vcombine.low %v3058_v40, %v7358_v60  ;;  %v6484_v60 = vld [vmem:[%s8874_s5 + $0x40] sm:$0xff]   ;;  %v6492_v48 = vld [vmem:[%s8874_s5 + $0x70] sm:$0xff]  }
 0x2ce   : > { %v2765_v13 = vsel %vm7401_vm11, %v2760_v56, %v2764_v11  ;;  %v2845_v10 = vsel %vm9013_vm14, %v2840_v37, %v2844_v15  ;;  %v2848_v50 = vor.u32 %v2846_v32, %v2844_v15  ;;  %v3068_v7 = vrot.slane %v7412_v17, 1  ;;  %vm9020_vm11 = vmmov %vm9015_vm0  ;;  %v3525_v11 = vld [vmem:[#allocation5 + $0x4] sm:$0xc] }
 0x2cf   : > { %2766 = vst [vmem:[#allocation5 + $0x28] sm:$0xf] %v2765_v13  ;;  %v3234_v8 = vsel %vm9015_vm0, %v3232_v22, %v3233_v18  ;;  %v3236_v52 = vsel %vm9017_vm6, %v3233_v18, %v3235_v57  ;;  %v3067_v61 = vrot.slane %v5498_v39, 1  ;;  %v3070_v17 = vrot.slane %v7442_v41, 1  ;;  %vm9024_vm4 = vmmov %vm9015_vm0  ;;  %v6490_v22 = vld [vmem:[%s8874_s5 + $0x60] sm:$0xff]  }
 0x2d0   : > { %v7525_v35 = vld [vmem:[#allocation5 + $0x1c] sm:$0xff]   ;;  %v3072_v41 = vrot.slane %v7454_v63, 1  ;;  %v5539_v14 = vcombine.low %v3525_v11, %v7481_v51  ;;  %v3535_v16 = vrot.slane %v7485_v19, 2  ;;  %v3371_v2 = vshrl.u32 %v7485_v19, 16 }
 0x2d1   : > { %v3237_v29 = vrot.slane %v7525_v35, 1  ;;  %v3069_v53 = vsel %vm9018_vm9, %v3067_v61, %v3068_v7  ;;  %v3071_v6 = vsel %vm9020_vm11, %v3068_v7, %v3070_v17  ;;  %v3374_v30 = vshll.u32 %v7485_v19, 16 }
 0x2d2   : > { %v3073_v55 = vsel %vm9022_vm15, %v3070_v17, %v3072_v41  ;;  %v3534_v62 = vrot.slane %v5539_v14, 2  ;;  %v3537_v56 = vrot.slane %v7508_v4, 2  ;;  %v3363_v34 = vshrl.u32 %v7495_v26, 16 }
 0x2d3   : > { %v7479_v12 = vld [vmem:[#allocation5 + $0x20] sm:$0xff]   ;;  %6200 = vmatmul.mubr.msk.bf16.gmra.mxu1 %vm2874_vm2, %v2845_v10  ;;  %v3238_v0 = vsel %vm9019_vm13, %v3235_v57, %v3237_v29  ;;  %v3366_v15 = vshll.u32 %v7495_v26, 16  ;;  %v3373_v3 = vrot.slane %v3371_v2, 1  ;;  %v3376_v37 = vrot.slane %v3374_v30, 2  ;;  %v6488_v26 = vld [vmem:[%s8874_s5 + $0x68] sm:$0xff]  }
 0x2d4   : > { %v2850_v38 = vshll.u32 %v7479_v12, 16  ;;  %6232 = vmatmul.mubr.msk.bf16.gmra.mxu0 %vm2874_vm2, %v7479_v12  ;;  %6203 = vmatprep.mubr.msk.bf16.mxu1 %vm8918_vm10, %v6511_v1  ;;  %v2854_v25 = vshrl.u32 %v7479_v12, 16  ;;  %v6483_v45 = vld [vmem:[#allocation5 + $0x2c] ss:$0 sps:$4 sm:$0x11]   ;;  %v3074_v63 = vrot.slane %v7479_v12, 1  ;;  %v3536_v31 = vsel %vm1895_vm5, %v3534_v62, %v3535_v16 }
 0x2d5   : > { %6263 = vmatprep.mubr.msk.bf16.mxu0 %vm8918_vm10, %v6511_v1  ;;  %v3241_v59 = vrot.slane %v6483_v45, 1  ;;  %v3538_v10 = vsel %vm1895_vm5, %v3535_v16, %v3537_v56  ;;  %v3365_v12 = vrot.slane %v3363_v34, 1  ;;  %v3368_v51 = vrot.slane %v3366_v15, 2  ;;  %v7627_v57 = vld [vmem:[#allocation5 + $0xc] sm:$0xf] }
 0x2d6   : > { %v2852_v33 = vrot.slane %v2850_v38, 1  ;;  %v7497_v27 = vld [vmem:[#allocation5 + $0x28] ss:$0 sps:$4 sm:$0x11]   ;;  %v3075_v47 = vsel %vm9024_vm4, %v3072_v41, %v3074_v63  ;;  %v3377_v38 = vor.u32 %v3376_v37, %v3373_v3  ;;  %v3380_v19 = vshrl.u32 %v7508_v4, 16 }
 0x2d7   : > { %v2858_v21 = vshll.u32 %v7497_v27, 16  ;;  %v7541_v36 = vld [vmem:[#allocation5 + $0x24] sm:$0xff]   ;;  %v3076_v49 = vrot.slane %v7497_v27, 1  ;;  %v3383_v32 = vshll.u32 %v7508_v4, 16  ;;  %v3539_v46 = vrot.slane %v7525_v35, 2 }
 0x2d8   : > { %v2853_v43 = vsel %vm9014_vm1, %v2848_v50, %v2852_v33  ;;  %v2856_v28 = vor.u32 %v2854_v25, %v2852_v33  ;;  %v3239_v24 = vrot.slane %v7541_v36, 1  ;;  %v3369_v33 = vor.u32 %v3368_v51, %v3365_v12  ;;  %v6489_v40 = vld [vmem:[#allocation5 + $0x2c] ss:$0 sps:$4 sm:$0x33]  }
 0x2d9   : > { %v2860_v42 = vrot.slane %v2858_v21, 1  ;;  %v3077_v13 = vsel %vm9025_vm12, %v3074_v63, %v3076_v49  ;;  %vm9026_vm14 = vsmask.f32 6400  ;;  %v3382_v27 = vrot.slane %v3380_v19, 1 }
 0x2da   : > { %v3240_v54 = vsel %vm9021_vm3, %v3237_v29, %v3239_v24  ;;  %v3242_v5 = vsel %vm9023_vm7, %v3239_v24, %v3241_v59  ;;  %v3378_v50 = vsel %vm9026_vm14, %v3369_v33, %v3377_v38  ;;  %v3385_v18 = vrot.slane %v3383_v32, 2  ;;  %vm9027_vm1 = vmmov %vm9026_vm14  ;;  %v7646_v59 = vld [vmem:[#allocation5 + $0x18] sm:$0xff]  }
 0x2db   : > { %6204 = vmatmul.mubr.msk.bf16.gmra.mxu1 %vm2874_vm2, %v2853_v43  ;;  %v2861_v23 = vsel %vm9016_vm8, %v2856_v28, %v2860_v42  ;;  %v3540_v43 = vsel %vm1895_vm5, %v3537_v56, %v3539_v46  ;;  %v3389_v21 = vshrl.u32 %v7525_v35, 16  ;;  %v3541_v4 = vrot.slane %v7541_v36, 2  ;;  %vm9028_vm0 = vmmov %vm9027_vm1  ;;  %v7658_v56 = vld [vmem:[#allocation5 + $0x20] sm:$0xff]  }
 0x2dc   : > { %6264 = vmatmul.mubr.msk.bf16.vlgmr.msra.gmra.mxu0 %vm2874_vm2, %v3234_v8  ;;  %6207 = vmatprep.mubr.msk.bf16.mxu1 %vm8918_vm10, %v6511_v1  ;;  %v3392_v8 = vshll.u32 %v7525_v35, 16  ;;  %v3398_v7 = vshrl.u32 %v7541_v36, 16  ;;  %v3401_v29 = vshll.u32 %v7541_v36, 16  ;;  %v3543_v61 = vrot.slane %v6489_v40, 2  ;;  %vm9029_vm8 = vmmov %vm9028_vm0 }
 0x2dd   : > { %6267 = vmatprep.mubr.msk.bf16.mxu0 %vm8918_vm10, %v6511_v1  ;;  %6308 = vmatpush3.bf16.msra.mxu0 %v6485_v58  ;;  %v3386_v58 = vor.u32 %v3385_v18, %v3382_v27  ;;  %v3391_v25 = vrot.slane %v3389_v21, 1  ;;  %v3542_v28 = vsel %vm1895_vm5, %v3539_v46, %v3541_v4  ;;  %v3407_v11 = vshrl.u32 %v6489_v40, 16  ;;  %vm9031_vm9 = vmmov %vm9028_vm0  ;;  %v6500_v21 = vld [vmem:[%s8874_s5 + $0x80] sm:$0xff]  }
 0x2de   : > { %6309 = vmatprep.subr.bf16.mxu0 %v6511_v1  ;;  %v3394_v42 = vrot.slane %v3392_v8, 2  ;;  %v3400_v24 = vrot.slane %v3398_v7, 1  ;;  %v3410_v14 = vshll.u32 %v6489_v40, 16  ;;  %v3847_v16 = vshrl.u32 %v7646_v59, 16 }
 0x2df   : > { %v3850_v62 = vshll.u32 %v7646_v59, 16  ;;  %vm9030_vm6 = vsmask.f32 5376  ;;  %v3859_v3 = vshll.u32 %v7658_v56, 16  ;;  %v3702_v8 = vrot.slane %v7646_v59, 2 }
 0x2e0   : > { %v3395_v39 = vor.u32 %v3394_v42, %v3391_v25  ;;  %v3849_v2 = vrot.slane %v3847_v16, 2  ;;  %vm9032_vm13 = vmmov %vm9030_vm6  ;;  %vm9036_vm7 = vcmask 1044480  }
 0x2e1   : > { %6310 = vmatpush3.bf16.msra.mxu0 %v6486_v44  ;;  %v3387_v44 = vsel %vm9027_vm1, %v3377_v38, %v3386_v58  ;;  %v3852_v30 = vrot.slane %v3850_v62, 3  ;;  %v3861_v51 = vrot.slane %v3859_v3, 3  ;;  %v7670_v38 = vld [vmem:[#allocation5 + $0x28] sm:$0xff]   ;;  %vm9033_vm11 = vmmov %vm9030_vm6 }
 0x2e2   : > { %6355 = vmatprep.subr.bf16.mxu0 %v6511_v1  ;;  %v3396_v17 = vsel %vm9028_vm0, %v3386_v58, %v3395_v39  ;;  %v3865_v46 = vshrl.u32 %v7670_v38, 16  ;;  %v3868_v33 = vshll.u32 %v7670_v38, 16  ;;  %v7686_v58 = vld [vmem:[#allocation5 + $0x30] ss:$0 sps:$4 sm:$0x77]   ;;  %vm9034_vm3 = vmmov %vm9030_vm6 }
 0x2e3   : > { %6208 = vmatmul.mubr.msk.bf16.gmra.mxu1 %vm2874_vm2, %v2861_v23  ;;  %v7631_v23 = vld [vmem:[#allocation5 + $0x10] sm:$0xff]   ;;  %v3853_v15 = vor.u32 %v3852_v30, %v3849_v2  ;;  %v3877_v25 = vshll.u32 %v7686_v58, 16  ;;  %vm9035_vm15 = vmmov %vm9034_vm3 }
 0x2e4   : > { %6268 = vmatmul.mubr.msk.bf16.gmra.mxu0 %vm2874_vm2, %v3236_v52  ;;  %6239 = vmatprep.mubr.msk.bf16.mxu1 %vm8918_vm10, %v6511_v1  ;;  %v3655_v52 = vld [vmem:[#allocation5 + $0x8] sm:$0xc]  ;;  %v3700_v19 = vrot.slane %v7631_v23, 2 }
 0x2e5   : > { %6271 = vmatprep.mubr.msk.bf16.mxu0 %vm8918_vm10, %v6511_v1  ;;  %v5551_v35 = vcombine.low %v3655_v52, %v7627_v57  ;;  %v3879_v52 = vrot.slane %v3877_v25, 3 }
 0x2e6   : > { %v3703_v42 = vsel %vm1895_vm5, %v3700_v19, %v3702_v8 }
 0x2eb   : > { %6240 = vmatmul.mubr.msk.bf16.vlgmr.msra.gmra.mxu1 %vm2874_vm2, %v3069_v53  ;;  %v3841_v53 = vshll.u32 %v7631_v23, 16 }
 0x2ec   : > { %6284 = vmatpush3.bf16.msra.mxu1 %v6480_v9  ;;  %6272 = vmatmul.mubr.msk.bf16.gmra.mxu0 %vm2874_vm2, %v3238_v0  ;;  %v3838_v9 = vshrl.u32 %v7631_v23, 16  ;;  %v3830_v0 = vshrl.u32 %v5551_v35, 16 }
 0x2ed   : > { %6243 = vmatprep.mubr.msk.bf16.mxu1 %vm8918_vm10, %v6511_v1  ;;  %6275 = vmatprep.mubr.msk.bf16.mxu0 %vm8918_vm10, %v6511_v1  ;;  %v3843_v41 = vrot.slane %v3841_v53, 3  ;;  %v6501_v53 = vld [vmem:[#allocation5 + $0x30] ss:$0 sps:$4 sm:$0x33]  }
 0x2ee   : > { %6285 = vmatprep.subr.bf16.mxu1 %v6511_v1  ;;  %v3840_v45 = vrot.slane %v3838_v9, 2  ;;  %v3832_v36 = vrot.slane %v3830_v0, 2  ;;  %v3708_v0 = vrot.slane %v6501_v53, 2 }
 0x2f0   : > { %6286 = vmatpush3.bf16.msra.mxu1 %v6484_v60  ;;  %v3833_v60 = vshll.u32 %v5551_v35, 16  ;;  %v3844_v63 = vor.u32 %v3843_v41, %v3840_v45  ;;  %v4004_v41 = vrot.slane %v7646_v59, 3  ;;  %v4008_v59 = vrot.slane %v7670_v38, 3 }
 0x2f1   : > { %6331 = vmatprep.subr.bf16.mxu1 %v6511_v1 }
 0x2f3   : > { %6244 = vmatmul.mubr.msk.bf16.gmra.mxu1 %vm2874_vm2, %v3071_v6  ;;  %v3403_v6 = vrot.slane %v3401_v29, 2 }
 0x2f4   : > { %6276 = vmatmul.mubr.msk.bf16.gmra.mxu0 %vm2874_vm2, %v3240_v54  ;;  %6247 = vmatprep.mubr.msk.bf16.mxu1 %vm8918_vm10, %v6511_v1  ;;  %v3544_v54 = vsel %vm1895_vm5, %v3541_v4, %v3543_v61  ;;  %v3706_v61 = vrot.slane %v7670_v38, 2 }
 0x2f5   : > { %6279 = vmatprep.mubr.msk.bf16.mxu0 %vm8918_vm10, %v6511_v1 }
 0x2fb   : > { %6248 = vmatmul.mubr.msk.bf16.gmra.mxu1 %vm2874_vm2, %v3073_v55  ;;  %v3835_v55 = vrot.slane %v3833_v60, 3  ;;  %v3709_v60 = vsel %vm1895_vm5, %v3706_v61, %v3708_v0 }
 0x2fc   : > { %6280 = vmatmul.mubr.msk.bf16.gmra.mxu0 %vm2874_vm2, %v3242_v5  ;;  %6251 = vmatprep.mubr.msk.bf16.mxu1 %vm8918_vm10, %v6511_v1  ;;  %v3404_v5 = vor.u32 %v3403_v6, %v3400_v24  ;;  %v4002_v6 = vrot.slane %v7631_v23, 3 }
 0x2fd   : > { %6311 = vmatprep.mubr.msk.bf16.mxu0 %vm8918_vm10, %v6511_v1 }
 0x303   : > { %6252 = vmatmul.mubr.msk.bf16.gmra.mxu1 %vm2874_vm2, %v3075_v47  ;;  %v3405_v47 = vsel %vm9029_vm8, %v3395_v39, %v3404_v5 }
 0x304   : > { %6312 = vmatmul.mubr.msk.bf16.vlgmr.msra.gmra.mxu0 %vm2874_vm2, %v3536_v31  ;;  %6255 = vmatprep.mubr.msk.bf16.mxu1 %vm8918_vm10, %v6511_v1  ;;  %v3409_v31 = vrot.slane %v3407_v11, 1 }
 0x305   : > { %6315 = vmatprep.mubr.msk.bf16.mxu0 %vm8918_vm10, %v6511_v1  ;;  %6356 = vmatpush3.bf16.msra.mxu0 %v6491_v20  ;;  %v3836_v20 = vor.u32 %v3835_v55, %v3832_v36 }
 0x306   : > { %6357 = vmatprep.subr.bf16.mxu0 %v6511_v1 }
 0x307   : > { %v3845_v49 = vsel %vm9030_vm6, %v3836_v20, %v3844_v63 }
 0x309   : > { %6358 = vmatpush3.bf16.msra.mxu0 %v6492_v48  ;;  %v3412_v48 = vrot.slane %v3410_v14, 2 }
 0x30b   : > { %6256 = vmatmul.mubr.msk.bf16.gmra.mxu1 %vm2874_vm2, %v3077_v13  ;;  %v3413_v34 = vor.u32 %v3412_v48, %v3409_v31  ;;  %v3856_v13 = vshrl.u32 %v7658_v56, 16 }
 0x30c   : > { %6316 = vmatmul.mubr.msk.bf16.gmra.mxu0 %vm2874_vm2, %v3538_v10  ;;  %6287 = vmatprep.mubr.msk.bf16.mxu1 %vm8918_vm10, %v6511_v1  ;;  %v3854_v10 = vsel %vm9032_vm13, %v3844_v63, %v3853_v15 }
 0x30d   : > { %6319 = vmatprep.mubr.msk.bf16.mxu0 %vm8918_vm10, %v6511_v1  ;;  %v3414_v37 = vsel %vm9031_vm9, %v3404_v5, %v3413_v34  ;;  %v3858_v12 = vrot.slane %v3856_v13, 2 }
 0x30f   : > { %v3862_v32 = vor.u32 %v3861_v51, %v3858_v12 }
 0x311   : > { %v3863_v18 = vsel %vm9033_vm11, %v3853_v15, %v3862_v32 }
 0x313   : > { %6288 = vmatmul.mubr.msk.bf16.vlgmr.msra.gmra.mxu1 %vm2874_vm2, %v3378_v50  ;;  %v6496_v50 = vld [vmem:[%s8874_s5 + $0x88] sm:$0xff]  }
 0x314   : > { %6332 = vmatpush3.bf16.msra.mxu1 %v6488_v26  ;;  %6320 = vmatmul.mubr.msk.bf16.gmra.mxu0 %vm2874_vm2, %v3540_v43  ;;  %v3699_v26 = vrot.slane %v5551_v35, 2  ;;  %v3867_v43 = vrot.slane %v3865_v46, 2  ;;  %v3704_v35 = vrot.slane %v7658_v56, 2 }
 0x315   : > { %6291 = vmatprep.mubr.msk.bf16.mxu1 %vm8918_vm10, %v6511_v1  ;;  %6323 = vmatprep.mubr.msk.bf16.mxu0 %vm8918_vm10, %v6511_v1 }
 0x316   : > { %6333 = vmatprep.subr.bf16.mxu1 %v6511_v1  ;;  %v3701_v27 = vsel %vm1895_vm5, %v3699_v26, %v3700_v19  ;;  %v3705_v7 = vsel %vm1895_vm5, %v3702_v8, %v3704_v35  ;;  %v3707_v9 = vsel %vm1895_vm5, %v3704_v35, %v3706_v61  ;;  %vm9037_vm5 = vmmov %vm9036_vm7 }
 0x317   : > { %v4005_v36 = vsel %vm9037_vm5, %v4002_v6, %v4004_v41  ;;  %vm9038_vm4 = vmmov %vm9037_vm5 }
 0x318   : > { %6334 = vmatpush3.bf16.msra.mxu1 %v6490_v22  ;;  %v3870_v22 = vrot.slane %v3868_v33, 3  ;;  %vm9039_vm12 = vmmov %vm9038_vm4 }
 0x319   : > { %6379 = vmatprep.subr.bf16.mxu1 %v6511_v1  ;;  %vm9040_vm14 = vmmov %vm9038_vm4 }
 0x31a   : > { %v3871_v4 = vor.u32 %v3870_v22, %v3867_v43 }
 0x31b   : > { %6292 = vmatmul.mubr.msk.bf16.gmra.mxu1 %vm2874_vm2, %v3387_v44  ;;  %v3874_v44 = vshrl.u32 %v7686_v58, 16 }
 0x31c   : > { %6324 = vmatmul.mubr.msk.bf16.gmra.mxu0 %vm2874_vm2, %v3542_v28  ;;  %6295 = vmatprep.mubr.msk.bf16.mxu1 %vm8918_vm10, %v6511_v1  ;;  %v3872_v28 = vsel %vm9034_vm3, %v3862_v32, %v3871_v4 }
 0x31d   : > { %6327 = vmatprep.mubr.msk.bf16.mxu0 %vm8918_vm10, %v6511_v1  ;;  %v3876_v40 = vrot.slane %v3874_v44, 2 }
 0x31f   : > { %v3880_v39 = vor.u32 %v3879_v52, %v3876_v40 }
 0x321   : > { %v3881_v29 = vsel %vm9035_vm15, %v3871_v4, %v3880_v39 }
 0x323   : > { %6296 = vmatmul.mubr.msk.bf16.gmra.mxu1 %vm2874_vm2, %v3396_v17  ;;  %v3992_v17 = vld [vmem:[#allocation5 + $0x8] sm:$0x8] }
 0x324   : > { %6328 = vmatmul.mubr.msk.bf16.gmra.mxu0 %vm2874_vm2, %v3544_v54  ;;  %6299 = vmatprep.mubr.msk.bf16.mxu1 %vm8918_vm10, %v6511_v1  ;;  %v5580_v24 = vcombine.low %v3992_v17, %v7627_v57  ;;  %v4006_v57 = vrot.slane %v7658_v56, 3 }
 0x325   : > { %6359 = vmatprep.mubr.msk.bf16.mxu0 %vm8918_vm10, %v6511_v1 }
 0x326   : > { %v4001_v54 = vrot.slane %v5580_v24, 3  ;;  %v4007_v23 = vsel %vm9038_vm4, %v4004_v41, %v4006_v57  ;;  %v4009_v63 = vsel %vm9039_vm12, %v4006_v57, %v4008_v59 }
 0x328   : > { %v4003_v45 = vsel %vm9036_vm7, %v4001_v54, %v4002_v6 }
 0x32b   : > { %6300 = vmatmul.mubr.msk.bf16.gmra.mxu1 %vm2874_vm2, %v3405_v47  ;;  %v4010_v47 = vrot.slane %v7686_v58, 3 }
 0x32c   : > { %6360 = vmatmul.mubr.msk.bf16.vlgmr.msra.gmra.mxu0 %vm2874_vm2, %v3845_v49  ;;  %6303 = vmatprep.mubr.msk.bf16.mxu1 %vm8918_vm10, %v6511_v1 }
 0x32d   : > { %6363 = vmatprep.mubr.msk.bf16.mxu0 %vm8918_vm10, %v6511_v1  ;;  %v4011_v30 = vsel %vm9040_vm14, %v4008_v59, %v4010_v47 }
 0x333   : > { %6304 = vmatmul.mubr.msk.bf16.gmra.mxu1 %vm2874_vm2, %v3414_v37 }
 0x334   : > { %6364 = vmatmul.mubr.msk.bf16.gmra.mxu0 %vm2874_vm2, %v3854_v10  ;;  %6335 = vmatprep.mubr.msk.bf16.mxu1 %vm8918_vm10, %v6511_v1 }
 0x335   : > { %6367 = vmatprep.mubr.msk.bf16.mxu0 %vm8918_vm10, %v6511_v1 }
 0x33b   : > { %6336 = vmatmul.mubr.msk.bf16.vlgmr.msra.gmra.mxu1 %vm2874_vm2, %v3701_v27 }
 0x33c   : > { %6380 = vmatpush3.bf16.msra.mxu1 %v6496_v50  ;;  %6368 = vmatmul.mubr.msk.bf16.gmra.mxu0 %vm2874_vm2, %v3863_v18 }
 0x33d   : > { %6339 = vmatprep.mubr.msk.bf16.mxu1 %vm8918_vm10, %v6511_v1  ;;  %6371 = vmatprep.mubr.msk.bf16.mxu0 %vm8918_vm10, %v6511_v1 }
 0x33e   : > { %6381 = vmatprep.subr.bf16.mxu1 %v6511_v1 }
 0x340   : > { %6382 = vmatpush3.bf16.msra.mxu1 %v6500_v21 }
 0x343   : > { %6340 = vmatmul.mubr.msk.bf16.gmra.mxu1 %vm2874_vm2, %v3703_v42 }
 0x344   : > { %6372 = vmatmul.mubr.msk.bf16.gmra.mxu0 %vm2874_vm2, %v3872_v28  ;;  %6343 = vmatprep.mubr.msk.bf16.mxu1 %vm8918_vm10, %v6511_v1 }
 0x345   : > { %6375 = vmatprep.mubr.msk.bf16.mxu0 %vm8918_vm10, %v6511_v1 }
 0x34b   : > { %6344 = vmatmul.mubr.msk.bf16.gmra.mxu1 %vm2874_vm2, %v3705_v7 }
 0x34c   : > { %6376 = vmatmul.mubr.msk.bf16.gmra.mxu0 %vm2874_vm2, %v3881_v29  ;;  %6347 = vmatprep.mubr.msk.bf16.mxu1 %vm8918_vm10, %v6511_v1 }
 0x353   : > { %6348 = vmatmul.mubr.msk.bf16.gmra.mxu1 %vm2874_vm2, %v3707_v9 }
 0x354   : > { %6351 = vmatprep.mubr.msk.bf16.mxu1 %vm8918_vm10, %v6511_v1 }
 0x35b   : > { %6352 = vmatmul.mubr.msk.bf16.gmra.mxu1 %vm2874_vm2, %v3709_v60 }
 0x35c   : > { %6383 = vmatprep.mubr.msk.bf16.mxu1 %vm8918_vm10, %v6511_v1 }
 0x363   : > { %6384 = vmatmul.mubr.msk.bf16.vlgmr.msra.gmra.mxu1 %vm2874_vm2, %v4003_v45 }
 0x364   : > { %6387 = vmatprep.mubr.msk.bf16.mxu1 %vm8918_vm10, %v6511_v1 }
 0x36b   : > { %6388 = vmatmul.mubr.msk.bf16.gmra.mxu1 %vm2874_vm2, %v4005_v36 }
 0x36c   : > { %6391 = vmatprep.mubr.msk.bf16.mxu1 %vm8918_vm10, %v6511_v1 }
 0x373   : > { %v3019_v55 = vpop.f32.mrf.mxu0  ;;  %6392 = vmatmul.mubr.msk.bf16.gmra.mxu1 %vm2874_vm2, %v4007_v23 }
 0x374   : > { %6395 = vmatprep.mubr.msk.bf16.mxu1 %vm8918_vm10, %v6511_v1 }
 0x375   : > { %v6217_v5 = vpop.f32.mrf.mxu0 }
 0x377   : > { %v3022_v11 = vpop.f32.mrf.mxu0 }
 0x379   : > { %v6218_v14 = vpop.f32.mrf.mxu0 }
 0x37b   : > { %v3027_v16 = vpop.f32.mrf.mxu0  ;;  %6396 = vmatmul.mubr.msk.bf16.gmra.mxu1 %vm2874_vm2, %v4009_v63 }
 0x37c   : > { %6399 = vmatprep.mubr.msk.bf16.mxu1 %vm8918_vm10, %v6511_v1 }
 0x37d   : > { %v6221_v62 = vpop.f32.mrf.mxu0 }
 0x37f   : > { %v3030_v20 = vpop.f32.mrf.mxu0 }
 0x381   : > { %v2924_v31 = vpop.f32.mrf.mxu1  ;;  %v6222_v49 = vpop.f32.mrf.mxu0 }
 0x382   : > { %v3020_v48 = vadd.f32 %v3019_v55, %v2924_v31 }
 0x383   : > { %v6193_v2 = vpop.f32.mrf.mxu1  ;;  %6400 = vmatmul.mubr.msk.bf16.gmra.mxu1 %vm2874_vm2, %v4011_v30 }
 0x384   : > { %v3035_v34 = vpop.f32.mrf.mxu0 }
 0x385   : > { %v2927_v56 = vpop.f32.mrf.mxu1 }
 0x386   : > { %v3023_v15 = vadd.f32 %v3022_v11, %v2927_v56  ;;  %v6225_v3 = vpop.f32.mrf.mxu0 }
 0x387   : > { %v6194_v13 = vpop.f32.mrf.mxu1 }
 0x388   : > { %v3038_v37 = vpop.f32.mrf.mxu0 }
 0x38a   : > { %v6226_v10 = vpop.f32.mrf.mxu0 }
 0x38b   : > { %v2932_v12 = vpop.f32.mrf.mxu1 }
 0x38c   : > { %v3028_v1 = vadd.f32 %v3027_v16, %v2932_v12  ;;  %v3043_v51 = vpop.f32.mrf.mxu0 }
 0x38d   : > { %v6197_v38 = vpop.f32.mrf.mxu1 }
 0x38e   : > { %v6229_v19 = vpop.f32.mrf.mxu0 }
 0x38f   : > { %v2935_v32 = vpop.f32.mrf.mxu1 }
 0x390   : > { %v3031_v46 = vadd.f32 %v3030_v20, %v2935_v32  ;;  %v3046_v33 = vpop.f32.mrf.mxu0 }
 0x391   : > { %v6198_v26 = vpop.f32.mrf.mxu1 }
 0x392   : > { %v6230_v50 = vpop.f32.mrf.mxu0 }
 0x393   : > { %v2940_v27 = vpop.f32.mrf.mxu1 }
 0x394   : > { %v3036_v18 = vadd.f32 %v3035_v34, %v2940_v27  ;;  %v3051_v43 = vpop.f32.mrf.mxu0 }
 0x395   : > { %v6201_v22 = vpop.f32.mrf.mxu1 }
 0x396   : > { %v6233_v58 = vpop.f32.mrf.mxu0 }
 0x397   : > { %v2943_v21 = vpop.f32.mrf.mxu1 }
 0x398   : > { %v3039_v8 = vadd.f32 %v3038_v37, %v2943_v21  ;;  %v3054_v4 = vpop.f32.mrf.mxu0 }
 0x399   : > { %v6202_v44 = vpop.f32.mrf.mxu1 }
 0x39a   : > { %v6234_v25 = vpop.f32.mrf.mxu0 }
 0x39b   : > { %v2948_v42 = vpop.f32.mrf.mxu1 }
 0x39c   : > { %v3044_v28 = vadd.f32 %v3043_v51, %v2948_v42  ;;  %v3304_v40 = vpop.f32.mrf.mxu0 }
 0x39d   : > { %v6205_v52 = vpop.f32.mrf.mxu1 }
 0x39e   : > { %v6265_v35 = vpop.f32.mrf.mxu0 }
 0x39f   : > { %v2951_v39 = vpop.f32.mrf.mxu1 }
 0x3a0   : > { %v3047_v7 = vadd.f32 %v3046_v33, %v2951_v39  ;;  %v3307_v29 = vpop.f32.mrf.mxu0 }
 0x3a1   : > { %v6206_v61 = vpop.f32.mrf.mxu1 }
 0x3a2   : > { %v6266_v9 = vpop.f32.mrf.mxu0 }
 0x3a3   : > { %v2956_v53 = vpop.f32.mrf.mxu1 }
 0x3a4   : > { %v3052_v0 = vadd.f32 %v3051_v43, %v2956_v53  ;;  %v3312_v60 = vpop.f32.mrf.mxu0 }
 0x3a5   : > { %v6209_v17 = vpop.f32.mrf.mxu1 }
 0x3a6   : > { %v6269_v24 = vpop.f32.mrf.mxu0 }
 0x3a7   : > { %v2959_v6 = vpop.f32.mrf.mxu1 }
 0x3a8   : > { %v3055_v54 = vadd.f32 %v3054_v4, %v2959_v6  ;;  %v3315_v45 = vpop.f32.mrf.mxu0 }
 0x3a9   : > { %v6210_v41 = vpop.f32.mrf.mxu1 }
 0x3aa   : > { %v6270_v36 = vpop.f32.mrf.mxu0 }
 0x3ab   : > { %v3139_v57 = vpop.f32.mrf.mxu1 }
 0x3ac   : > { %v3178_v23 = vadd.f32 %v3139_v57, %v3020_v48  ;;  %v3320_v55 = vpop.f32.mrf.mxu0 }
 0x3ad   : > { %v6241_v5 = vpop.f32.mrf.mxu1 }
 0x3ae   : > { %v6273_v11 = vpop.f32.mrf.mxu0  ;;  %v3343_v59 = vadd.f32 %v3304_v40, %v3178_v23 }
 0x3af   : > { %v3142_v14 = vpop.f32.mrf.mxu1 }
 0x3b0   : > { %v3179_v63 = vadd.f32 %v3142_v14, %v3023_v15  ;;  %v3323_v16 = vpop.f32.mrf.mxu0 }
 0x3b1   : > { %v6242_v62 = vpop.f32.mrf.mxu1 }
 0x3b2   : > { %v6274_v20 = vpop.f32.mrf.mxu0  ;;  %v3344_v47 = vadd.f32 %v3307_v29, %v3179_v63 }
 0x3b3   : > { %v3147_v31 = vpop.f32.mrf.mxu1 }
 0x3b4   : > { %v3180_v49 = vadd.f32 %v3147_v31, %v3028_v1  ;;  %v3328_v2 = vpop.f32.mrf.mxu0 }
 0x3b5   : > { %v6245_v30 = vpop.f32.mrf.mxu1 }
 0x3b6   : > { %v6277_v56 = vpop.f32.mrf.mxu0  ;;  %v3345_v34 = vadd.f32 %v3312_v60, %v3180_v49 }
 0x3b7   : > { %v3150_v13 = vpop.f32.mrf.mxu1 }
 0x3b8   : > { %v3181_v3 = vadd.f32 %v3150_v13, %v3031_v46  ;;  %v3331_v37 = vpop.f32.mrf.mxu0 }
 0x3b9   : > { %v6246_v48 = vpop.f32.mrf.mxu1 }
 0x3ba   : > { %v6278_v10 = vpop.f32.mrf.mxu0  ;;  %v3346_v12 = vadd.f32 %v3315_v45, %v3181_v3 }
 0x3bb   : > { %v3155_v51 = vpop.f32.mrf.mxu1 }
 0x3bc   : > { %v3182_v38 = vadd.f32 %v3155_v51, %v3036_v18  ;;  %v3336_v19 = vpop.f32.mrf.mxu0 }
 0x3bd   : > { %v6249_v15 = vpop.f32.mrf.mxu1 }
 0x3be   : > { %v6281_v32 = vpop.f32.mrf.mxu0  ;;  %v3347_v33 = vadd.f32 %v3320_v55, %v3182_v38 }
 0x3bf   : > { %v3158_v26 = vpop.f32.mrf.mxu1 }
 0x3c0   : > { %v3183_v50 = vadd.f32 %v3158_v26, %v3039_v8  ;;  %v3339_v27 = vpop.f32.mrf.mxu0 }
 0x3c1   : > { %v6250_v1 = vpop.f32.mrf.mxu1 }
 0x3c2   : > { %v6282_v43 = vpop.f32.mrf.mxu0  ;;  %v3348_v22 = vadd.f32 %v3323_v16, %v3183_v50 }
 0x3c3   : > { %v3163_v58 = vpop.f32.mrf.mxu1 }
 0x3c4   : > { %v3184_v21 = vadd.f32 %v3163_v58, %v3044_v28  ;;  %v3606_v4 = vpop.f32.mrf.mxu0 }
 0x3c5   : > { %v6253_v46 = vpop.f32.mrf.mxu1 }
 0x3c6   : > { %v6313_v44 = vpop.f32.mrf.mxu0  ;;  %v3349_v25 = vadd.f32 %v3328_v2, %v3184_v21 }
 0x3c7   : > { %v3166_v42 = vpop.f32.mrf.mxu1 }
 0x3c8   : > { %v3185_v40 = vadd.f32 %v3166_v42, %v3047_v7  ;;  %v3609_v52 = vpop.f32.mrf.mxu0 }
 0x3c9   : > { %v6254_v18 = vpop.f32.mrf.mxu1 }
 0x3ca   : > { %v6314_v35 = vpop.f32.mrf.mxu0  ;;  %v3350_v39 = vadd.f32 %v3331_v37, %v3185_v40 }
 0x3cb   : > { %v3171_v29 = vpop.f32.mrf.mxu1 }
 0x3cc   : > { %v3186_v61 = vadd.f32 %v3171_v29, %v3052_v0  ;;  %v3614_v9 = vpop.f32.mrf.mxu0 }
 0x3cd   : > { %v6257_v8 = vpop.f32.mrf.mxu1 }
 0x3ce   : > { %v6317_v53 = vpop.f32.mrf.mxu0  ;;  %v3351_v60 = vadd.f32 %v3336_v19, %v3186_v61 }
 0x3cf   : > { %v3174_v17 = vpop.f32.mrf.mxu1 }
 0x3d0   : > { %v3187_v24 = vadd.f32 %v3174_v17, %v3055_v54  ;;  %v3617_v6 = vpop.f32.mrf.mxu0 }
 0x3d1   : > { %v6258_v28 = vpop.f32.mrf.mxu1 }
 0x3d2   : > { %v6318_v45 = vpop.f32.mrf.mxu0  ;;  %v3352_v41 = vadd.f32 %v3339_v27, %v3187_v24 }
 0x3d3   : > { %v3476_v36 = vpop.f32.mrf.mxu1 }
 0x3d4   : > { %v3515_v57 = vadd.f32 %v3476_v36, %v3343_v59  ;;  %v3622_v23 = vpop.f32.mrf.mxu0 }
 0x3d5   : > { %v6289_v7 = vpop.f32.mrf.mxu1 }
 0x3d6   : > { %v6321_v55 = vpop.f32.mrf.mxu0  ;;  %v7748_v5 = vadd.f32 %v3606_v4, %v3515_v57 }
 0x3d7   : > { %v3479_v11 = vpop.f32.mrf.mxu1 }
 0x3d8   : > { %v3516_v14 = vadd.f32 %v3479_v11, %v3344_v47  ;;  %v3625_v0 = vpop.f32.mrf.mxu0 }
 0x3d9   : > { %v6290_v63 = vpop.f32.mrf.mxu1 }
 0x3da   : > { %v6322_v16 = vpop.f32.mrf.mxu0  ;;  %v7750_v62 = vadd.f32 %v3609_v52, %v3516_v14 }
 0x3db   : > { %v3484_v20 = vpop.f32.mrf.mxu1 }
 0x3dc   : > { %v3517_v54 = vadd.f32 %v3484_v20, %v3345_v34  ;;  %v3630_v31 = vpop.f32.mrf.mxu0 }
 0x3dd   : > { %v6293_v49 = vpop.f32.mrf.mxu1 }
 0x3de   : > { %v6325_v2 = vpop.f32.mrf.mxu0  ;;  %v3647_v30 = vadd.f32 %v3614_v9, %v3517_v54 }
 0x3df   : > { %v3487_v56 = vpop.f32.mrf.mxu1 }
 0x3e0   : > { %v3518_v59 = vadd.f32 %v3487_v56, %v3346_v12  ;;  %v3633_v13 = vpop.f32.mrf.mxu0 }
 0x3e1   : > { %v6294_v3 = vpop.f32.mrf.mxu1 }
 0x3e2   : > { %v6326_v37 = vpop.f32.mrf.mxu0  ;;  %v3648_v48 = vadd.f32 %v3617_v6, %v3518_v59 }
 0x3e3   : > { %v3492_v10 = vpop.f32.mrf.mxu1 }
 0x3e4   : > { %v3519_v51 = vadd.f32 %v3492_v10, %v3347_v33  ;;  %v3638_v47 = vpop.f32.mrf.mxu0 }
 0x3e5   : > { %v6297_v38 = vpop.f32.mrf.mxu1 }
 0x3e6   : > { %v6329_v19 = vpop.f32.mrf.mxu0  ;;  %v3649_v15 = vadd.f32 %v3622_v23, %v3519_v51 }
 0x3e7   : > { %v3495_v32 = vpop.f32.mrf.mxu1 }
 0x3e8   : > { %v3520_v26 = vadd.f32 %v3495_v32, %v3348_v22  ;;  %v3641_v50 = vpop.f32.mrf.mxu0 }
 0x3e9   : > { %v6298_v34 = vpop.f32.mrf.mxu1 }
 0x3ea   : > { %v6330_v27 = vpop.f32.mrf.mxu0  ;;  %v3650_v1 = vadd.f32 %v3625_v0, %v3520_v26 }
 0x3eb   : > { %v3500_v43 = vpop.f32.mrf.mxu1 }
 0x3ec   : > { %v3521_v58 = vadd.f32 %v3500_v43, %v3349_v25  ;;  %v7752_v21 = vpop.f32.mrf.mxu0 }
 0x3ed   : > { %v6301_v12 = vpop.f32.mrf.mxu1 }
 0x3ee   : > { %v6361_v4 = vpop.f32.mrf.mxu0  ;;  %v3651_v46 = vadd.f32 %v3630_v31, %v3521_v58 }
 0x3ef   : > { %v3503_v44 = vpop.f32.mrf.mxu1 }
 0x3f0   : > { %v3522_v42 = vadd.f32 %v3503_v44, %v3350_v39  ;;  %v7754_v33 = vpop.f32.mrf.mxu0 }
 0x3f1   : > { %v6302_v40 = vpop.f32.mrf.mxu1 }
 0x3f2   : > { %v6362_v52 = vpop.f32.mrf.mxu0  ;;  %v3652_v18 = vadd.f32 %v3633_v13, %v3522_v42 }
 0x3f3   : > { %v3508_v35 = vpop.f32.mrf.mxu1 }
 0x3f4   : > { %v3523_v22 = vadd.f32 %v3508_v35, %v3351_v60  ;;  %v3951_v29 = vpop.f32.mrf.mxu0 }
 0x3f5   : > { %v6305_v61 = vpop.f32.mrf.mxu1 }
 0x3f6   : > { %v6365_v9 = vpop.f32.mrf.mxu0  ;;  %v3653_v8 = vadd.f32 %v3638_v47, %v3523_v22 }
 0x3f7   : > { %v3511_v53 = vpop.f32.mrf.mxu1  ;;  %v7776_v9 = vld [vmem:[%s8875_s6] ss:$0 sm:$0xff] }
 0x3f8   : > { %v3524_v25 = vadd.f32 %v3511_v53, %v3352_v41  ;;  %v3954_v17 = vpop.f32.mrf.mxu0 }
 0x3f9   : > { %v6306_v24 = vpop.f32.mrf.mxu1 }
 0x3fa   : > { %v6366_v6 = vpop.f32.mrf.mxu0  ;;  %v3654_v28 = vadd.f32 %v3641_v50, %v3524_v25 }
 0x3fb   : > { %v3771_v45 = vpop.f32.mrf.mxu1 }
 0x3fc   : > { %v3959_v36 = vpop.f32.mrf.mxu0 }
 0x3fd   : > { %v6337_v39 = vpop.f32.mrf.mxu1 }
 0x3fe   : > { %v6369_v57 = vpop.f32.mrf.mxu0 }
 0x3ff   : > { %v3774_v23 = vpop.f32.mrf.mxu1 }
 0x400   : > { %v3962_v7 = vpop.f32.mrf.mxu0 }
 0x401   : > { %v6338_v55 = vpop.f32.mrf.mxu1 }
 0x402   : > { %v6370_v11 = vpop.f32.mrf.mxu0 }
 0x403   : > { %v3779_v14 = vpop.f32.mrf.mxu1 }
 0x404   : > { %v3812_v60 = vadd.f32 %v3779_v14, %v3647_v30  ;;  %v3967_v0 = vpop.f32.mrf.mxu0 }
 0x405   : > { %v6341_v63 = vpop.f32.mrf.mxu1 }
 0x406   : > { %v6373_v16 = vpop.f32.mrf.mxu0  ;;  %v7756_v20 = vadd.f32 %v3951_v29, %v3812_v60 }
 0x407   : > { %v3782_v41 = vpop.f32.mrf.mxu1  ;;  %v5590_v16 = vld [vmem:[%s8876_s7 + $0x58] sm:$0xff] }
 0x408   : > { %v3813_v54 = vadd.f32 %v3782_v41, %v3648_v48  ;;  %v3970_v31 = vpop.f32.mrf.mxu0 }
 0x409   : > { %v6342_v49 = vpop.f32.mrf.mxu1 }
 0x40a   : > { %v6374_v2 = vpop.f32.mrf.mxu0  ;;  %v3985_v56 = vadd.f32 %v3954_v17, %v3813_v54 }
 0x40b   : > { %v3787_v59 = vpop.f32.mrf.mxu1 }
 0x40c   : > { %v3814_v13 = vadd.f32 %v3787_v59, %v3649_v15  ;;  %v3975_v3 = vpop.f32.mrf.mxu0 }
 0x40d   : > { %v6345_v37 = vpop.f32.mrf.mxu1 }
 0x40e   : > { %v6377_v10 = vpop.f32.mrf.mxu0  ;;  %v7758_v51 = vadd.f32 %v3959_v36, %v3814_v13  ;;  %v5609_v13 = vld [vmem:[%s8876_s7 + $0xf0] sm:$0xff]  ;;  %v5600_v37 = vld [vmem:[%s8876_s7 + $0xa8] sm:$0xff] }
 0x40f   : > { %v3790_v47 = vpop.f32.mrf.mxu1 }
 0x410   : > { %v3815_v30 = vadd.f32 %v3790_v47, %v3650_v1  ;;  %v3978_v38 = vpop.f32.mrf.mxu0  ;;  %v3810_v1 = vadd.f32 %v3771_v45, %v7748_v5 }
 0x411   : > { %v6346_v19 = vpop.f32.mrf.mxu1 }
 0x412   : > { %v6378_v32 = vpop.f32.mrf.mxu0  ;;  %v7760_v26 = vadd.f32 %v3962_v7, %v3815_v30  ;;  %v3982_v29 = vadd.f32 %v7752_v21, %v3810_v1  ;;  %v4151_v21 = vld [vmem:[%s8876_s7] sm:$0xff] }
 0x413   : > { %v3795_v50 = vpop.f32.mrf.mxu1 }
 0x414   : > { %v3816_v48 = vadd.f32 %v3795_v50, %v3651_v46  ;;  %v3811_v46 = vadd.f32 %v3774_v23, %v7750_v62  ;;  %v5699_v62 = vld [vmem:[%s8876_s7 + $0x3c0] sm:$0xff] }
 0x415   : > { %v6349_v34 = vpop.f32.mrf.mxu1  ;;  %v5619_v50 = vld [vmem:[%s8876_s7 + $0x140] sm:$0xff] }
 0x416   : > { %v7762_v27 = vadd.f32 %v3967_v0, %v3816_v48  ;;  %v3983_v25 = vadd.f32 %v7754_v33, %v3811_v46  ;;  %v5589_v33 = vld [vmem:[%s8876_s7 + $0x50] sm:$0xff]  ;;  %v5599_v0 = vld [vmem:[%s8876_s7 + $0xa0] sm:$0xff]  ;;  %v5610_v34 = vld [vmem:[%s8876_s7 + $0xf8] sm:$0xff] }
 0x417   : > { %v3798_v43 = vpop.f32.mrf.mxu1 }
 0x418   : > { %v3817_v58 = vadd.f32 %v3798_v43, %v3652_v18 }
 0x419   : > { %v6350_v15 = vpop.f32.mrf.mxu1 }
 0x41a   : > { %v7764_v12 = vadd.f32 %v3970_v31, %v3817_v58 }
 0x41b   : > { %v3803_v4 = vpop.f32.mrf.mxu1 }
 0x41c   : > { %v3818_v44 = vadd.f32 %v3803_v4, %v3653_v8 }
 0x41d   : > { %v6353_v42 = vpop.f32.mrf.mxu1 }
 0x41e   : > { %v7767_v40 = vadd.f32 %v3975_v3, %v3818_v44 }
 0x41f   : > { %v3806_v52 = vpop.f32.mrf.mxu1 }
 0x420   : > { %v3819_v35 = vadd.f32 %v3806_v52, %v3654_v28  ;;  %v5729_v28 = vld [vmem:[%s8876_s7 + $0x4b0] sm:$0xff] }
 0x421   : > { %v6354_v22 = vpop.f32.mrf.mxu1  ;;  %v5629_v52 = vld [vmem:[%s8876_s7 + $0x190] sm:$0xff] }
 0x422   : > { %v7771_v61 = vadd.f32 %v3978_v38, %v3819_v35  ;;  %v5620_v35 = vld [vmem:[%s8876_s7 + $0x148] sm:$0xff] }
 0x423   : > { %v4073_v18 = vpop.f32.mrf.mxu1 }
 0x424   : > { %v4112_v8 = vadd.f32 %v4073_v18, %v3982_v29 }
 0x425   : > { %v6385_v53 = vpop.f32.mrf.mxu1 }
 0x426   : > { %v4129_v5 = vadd.f32 %v7776_v9, %v4112_v8 }
 0x427   : > { %v4076_v17 = vpop.f32.mrf.mxu1 }
 0x428   : > { %v7786_v24 = vmax.f32 %v4129_v5, 0.0  ;;  %v4113_v6 = vadd.f32 %v4076_v17, %v3983_v25  ;;  %v5639_v5 = vld [vmem:[%s8876_s7 + $0x1e0] sm:$0xff]  ;;  %v5630_v17 = vld [vmem:[%s8876_s7 + $0x198] sm:$0xff] }
 0x429   : > { %v6386_v45 = vpop.f32.mrf.mxu1 }
 0x42a   : > { %v4130_v36 = vadd.f32 %v7776_v9, %v4113_v6  ;;  %v4989_v39 = vmul.f32 %v5699_v62, %v7786_v24  ;;  %v4161_v57 = vmul.f32 %v4151_v21, %v7786_v24  ;;  %v5196_v7 = vmul.f32 %v5729_v28, %v7786_v24 }
 0x42b   : > { %v7797_v23 = vpop.f32.mrf.mxu1  ;;  %v4230_v60 = vmul.f32 %v5589_v33, %v7786_v24  ;;  %v4299_v54 = vmul.f32 %v5599_v0, %v7786_v24  ;;  %v4368_v47 = vmul.f32 %v5609_v13, %v7786_v24  ;;  %v4437_v58 = vmul.f32 %v5619_v50, %v7786_v24  ;;  %v5679_v50 = vld [vmem:[%s8876_s7 + $0x320] sm:$0xff] }
 0x42c   : > { %v7800_v55 = vmax.f32 %v4130_v36, 0.0  ;;  %v4999_v11 = vsel %vm2874_vm2, %v4989_v39, 0.0  ;;  %v4171_v14 = vsel %vm2874_vm2, %v4161_v57, 0.0  ;;  %v5206_v49 = vsel %vm2874_vm2, %v5196_v7, 0.0  ;;  %v5649_v39 = vld [vmem:[%s8876_s7 + $0x230] sm:$0xff]  ;;  %v5640_v57 = vld [vmem:[%s8876_s7 + $0x1e8] sm:$0xff] }
 0x42d   : > { %v6389_v63 = vpop.f32.mrf.mxu1  ;;  %5000 = vadd.xlane.f32.xlu1 %v4999_v11  ;;  %4172 = vadd.xlane.f32.xlu0 %v4171_v14  ;;  %v4240_v2 = vsel %vm2874_vm2, %v4230_v60, 0.0  ;;  %v4309_v38 = vsel %vm2874_vm2, %v4299_v54, 0.0  ;;  %v4378_v4 = vsel %vm2874_vm2, %v4368_v47, 0.0  ;;  %v4447_v46 = vsel %vm2874_vm2, %v4437_v58, 0.0  ;;  %v5650_v54 = vld [vmem:[%s8876_s7 + $0x238] sm:$0xff]  ;;  %v5660_v47 = vld [vmem:[%s8876_s7 + $0x288] sm:$0xff] }
 0x42e   : > { %v4231_v59 = vmul.f32 %v5590_v16, %v7800_v55  ;;  %v4300_v32 = vmul.f32 %v5600_v37, %v7800_v55  ;;  %v4369_v42 = vmul.f32 %v5610_v34, %v7800_v55  ;;  %v4506_v8 = vmul.f32 %v5629_v52, %v7786_v24  ;;  %v5659_v16 = vld [vmem:[%s8876_s7 + $0x280] sm:$0xff] }
 0x42f   : > { %v4084_v41 = vpop.f32.mrf.mxu1  ;;  %v4438_v53 = vmul.f32 %v5620_v35, %v7800_v55  ;;  %v4575_v21 = vmul.f32 %v5639_v5, %v7786_v24  ;;  %v4507_v33 = vmul.f32 %v5630_v17, %v7800_v55  ;;  %v4644_v0 = vmul.f32 %v5649_v39, %v7786_v24  ;;  %v5710_v17 = vld [vmem:[%s8876_s7 + $0x418] sm:$0xff] }
 0x430   : > { %v4115_v31 = vadd.f32 %v4084_v41, %v3985_v56  ;;  %v4243_v19 = vsel %vm2874_vm2, %v4231_v59, 0.0  ;;  %v4312_v44 = vsel %vm2874_vm2, %v4300_v32, 0.0  ;;  %v4381_v18 = vsel %vm2874_vm2, %v4369_v42, 0.0 }
 0x431   : > { %v6390_v3 = vpop.f32.mrf.mxu1  ;;  %5207 = vadd.xlane.f32.xlu1 %v5206_v49  ;;  %4241 = vadd.xlane.f32.xlu0 %v4240_v2  ;;  %v4516_v28 = vsel %vm2874_vm2, %v4506_v8, 0.0  ;;  %v4450_v45 = vsel %vm2874_vm2, %v4438_v53, 0.0  ;;  %v4585_v11 = vsel %vm2874_vm2, %v4575_v21, 0.0  ;;  %v4519_v60 = vsel %vm2874_vm2, %v4507_v33, 0.0 }
 0x432   : > { %v7822_v10 = vadd.f32 %v7776_v9, %v4115_v31  ;;  %v4576_v63 = vmul.f32 %v5640_v57, %v7800_v55  ;;  %v4713_v49 = vmul.f32 %v5659_v16, %v7786_v24  ;;  %v4654_v59 = vsel %vm2874_vm2, %v4644_v0, 0.0  ;;  %v5700_v57 = vld [vmem:[%s8876_s7 + $0x3c8] sm:$0xff]  ;;  %v5701_v16 = vld [vmem:[%s8876_s7 + $0x3d0] sm:$0xff] }
 0x433   : > { %v4089_v56 = vpop.f32.mrf.mxu1  ;;  %v4645_v3 = vmul.f32 %v5650_v54, %v7800_v55  ;;  %v4714_v32 = vmul.f32 %v5660_v47, %v7800_v55  ;;  %v4851_v58 = vmul.f32 %v5679_v50, %v7786_v24  ;;  %v5601_v47 = vld [vmem:[%s8876_s7 + $0xb0] sm:$0xff]  ;;  %v5611_v50 = vld [vmem:[%s8876_s7 + $0x100] sm:$0xff] }
 0x434   : > { %v4116_v30 = vadd.f32 %v4089_v56, %v7758_v51  ;;  %v4588_v13 = vsel %vm2874_vm2, %v4576_v63, 0.0  ;;  %v5669_v56 = vld [vmem:[%s8876_s7 + $0x2d0] sm:$0xff]  ;;  %v5730_v63 = vld [vmem:[%s8876_s7 + $0x4b8] sm:$0xff] }
 0x435   : > { %v6393_v48 = vpop.f32.mrf.mxu1  ;;  %4310 = vadd.xlane.f32.xlu0 %v4309_v38  ;;  %4244 = vadd.xlane.f32.xlu1 %v4243_v19  ;;  %v4657_v38 = vsel %vm2874_vm2, %v4645_v3, 0.0  ;;  %v4782_v19 = vmul.f32 %v5669_v56, %v7786_v24  ;;  %v4861_v42 = vsel %vm2874_vm2, %v4851_v58, 0.0 }
 0x436   : > { %v7836_v43 = vadd.f32 %v7776_v9, %v4116_v30  ;;  %v5670_v48 = vld [vmem:[%s8876_s7 + $0x2d8] sm:$0xff] }
 0x437   : > { %v4092_v51 = vpop.f32.mrf.mxu1  ;;  %v4792_v34 = vsel %vm2874_vm2, %v4782_v19, 0.0 }
 0x438   : > { %v4117_v15 = vadd.f32 %v4092_v51, %v7760_v26  ;;  %v4726_v51 = vsel %vm2874_vm2, %v4714_v32, 0.0 }
 0x439   : > { %v6394_v1 = vpop.f32.mrf.mxu1  ;;  %4379 = vadd.xlane.f32.xlu0 %v4378_v4  ;;  %4313 = vadd.xlane.f32.xlu1 %v4312_v44  ;;  %v5689_v4 = vld [vmem:[%s8876_s7 + $0x370] sm:$0xff]  ;;  %v5680_v44 = vld [vmem:[%s8876_s7 + $0x328] sm:$0xff] }
 0x43a   : > { %v7850_v22 = vadd.f32 %v7776_v9, %v4117_v15  ;;  %v4783_v15 = vmul.f32 %v5670_v48, %v7800_v55  ;;  %v4920_v52 = vmul.f32 %v5689_v4, %v7786_v24  ;;  %v4852_v35 = vmul.f32 %v5680_v44, %v7800_v55  ;;  %v5592_v48 = vld [vmem:[%s8876_s7 + $0x68] sm:$0xff]  ;;  %v5621_v4 = vld [vmem:[%s8876_s7 + $0x150] sm:$0xff]  ;;  %v5602_v44 = vld [vmem:[%s8876_s7 + $0xb8] sm:$0xff] }
 0x43b   : > { %v4097_v26 = vpop.f32.mrf.mxu1 }
 0x43c   : > { %v4118_v29 = vadd.f32 %v4097_v26, %v7762_v27  ;;  %v4795_v1 = vsel %vm2874_vm2, %v4783_v15, 0.0  ;;  %v5709_v26 = vld [vmem:[%s8876_s7 + $0x410] sm:$0xff]  ;;  %v4864_v8 = vsel %vm2874_vm2, %v4852_v35, 0.0 }
 0x43d   : > { %v6397_v25 = vpop.f32.mrf.mxu1  ;;  %4448 = vadd.xlane.f32.xlu0 %v4447_v46  ;;  %4382 = vadd.xlane.f32.xlu1 %v4381_v18  ;;  %v5690_v46 = vld [vmem:[%s8876_s7 + $0x378] sm:$0xff]  ;;  %v4930_v18 = vsel %vm2874_vm2, %v4920_v52, 0.0  ;;  %v5058_v53 = vmul.f32 %v5709_v26, %v7786_v24  ;;  %v5631_v26 = vld [vmem:[%s8876_s7 + $0x1a0] sm:$0xff] }
 0x43e   : > { %v7864_v62 = vadd.f32 %v7776_v9, %v4118_v29  ;;  %v4114_v29 = vadd.f32 %v7797_v23, %v7756_v20  ;;  %v4921_v5 = vmul.f32 %v5690_v46, %v7800_v55  ;;  %v5719_v25 = vld [vmem:[%s8876_s7 + $0x460] sm:$0xff]  ;;  %v5612_v46 = vld [vmem:[%s8876_s7 + $0x108] sm:$0xff] }
 0x43f   : > { %v4100_v27 = vpop.f32.mrf.mxu1  ;;  %v5068_v23 = vsel %vm2874_vm2, %v5058_v53, 0.0  ;;  %v5127_v21 = vmul.f32 %v5719_v25, %v7786_v24  ;;  %v5622_v25 = vld [vmem:[%s8876_s7 + $0x158] sm:$0xff] }
 0x440   : > { %v4119_v6 = vadd.f32 %v4100_v27, %v7764_v12  ;;  %v4131_v20 = vadd.f32 %v7776_v9, %v4114_v29  ;;  %v4933_v27 = vsel %vm2874_vm2, %v4921_v5, 0.0  ;;  %v5641_v5 = vld [vmem:[%s8876_s7 + $0x1f0] sm:$0xff] }
 0x441   : > { %v6398_v36 = vpop.f32.mrf.mxu1  ;;  %4517 = vadd.xlane.f32.xlu0 %v4516_v28  ;;  %4451 = vadd.xlane.f32.xlu1 %v4450_v45  ;;  %v5720_v28 = vld [vmem:[%s8876_s7 + $0x468] sm:$0xff] }
 0x442   : > { %v7878_v7 = vadd.f32 %v7776_v9, %v4119_v6  ;;  %v5059_v6 = vmul.f32 %v5710_v17, %v7800_v55  ;;  %v4152_v45 = vld [vmem:[%s8876_s7 + $0x8] sm:$0xff]  ;;  %v7961_v33 = vmax.f32 %v4131_v20, 0.0  ;;  %v5128_v24 = vmul.f32 %v5720_v28, %v7800_v55 }
 0x443   : > { %v4105_v12 = vpop.f32.mrf.mxu1  ;;  %v4162_v39 = vmul.f32 %v4152_v45, %v7800_v55 }
 0x444   : > { %v4120_v14 = vadd.f32 %v4105_v12, %v7767_v40  ;;  %v5071_v36 = vsel %vm2874_vm2, %v5059_v6, 0.0  ;;  %v4153_v12 = vld [vmem:[%s8876_s7 + $0x10] sm:$0xff]  ;;  %v4301_v19 = vmul.f32 %v5601_v47, %v7961_v33  ;;  %v4370_v58 = vmul.f32 %v5611_v50, %v7961_v33  ;;  %v5632_v6 = vld [vmem:[%s8876_s7 + $0x1a8] sm:$0xff] }
 0x445   : > { %v6401_v41 = vpop.f32.mrf.mxu1  ;;  %4586 = vadd.xlane.f32.xlu0 %v4585_v11  ;;  %4520 = vadd.xlane.f32.xlu1 %v4519_v60  ;;  %v5140_v11 = vsel %vm2874_vm2, %v5128_v24, 0.0  ;;  %v4990_v60 = vmul.f32 %v5700_v57, %v7800_v55  ;;  %v4163_v0 = vmul.f32 %v4153_v12, %v7961_v33  ;;  %v4439_v52 = vmul.f32 %v5621_v4, %v7961_v33  ;;  %v5661_v24 = vld [vmem:[%s8876_s7 + $0x290] sm:$0xff] }
 0x446   : > { %v7892_v31 = vadd.f32 %v7776_v9, %v4120_v14  ;;  %v4174_v14 = vsel %vm2874_vm2, %v4162_v39, 0.0  ;;  %v5642_v39 = vld [vmem:[%s8876_s7 + $0x1f8] sm:$0xff] }
 0x447   : > { %v4108_v40 = vpop.f32.mrf.mxu1  ;;  %v5002_v41 = vsel %vm2874_vm2, %v4990_v60, 0.0  ;;  %v4177_v54 = vsel %vm2874_vm2, %v4163_v0, 0.0  ;;  %v4453_v29 = vsel %vm2874_vm2, %v4439_v52, 0.0  ;;  %v5671_v60 = vld [vmem:[%s8876_s7 + $0x2e0] sm:$0xff]  ;;  %v5652_v0 = vld [vmem:[%s8876_s7 + $0x248] sm:$0xff] }
 0x448   : > { %v4121_v2 = vadd.f32 %v4108_v40, %v7771_v61  ;;  %v4723_v61 = vsel %vm2874_vm2, %v4713_v49, 0.0  ;;  %v5197_v40 = vmul.f32 %v5730_v63, %v7800_v55  ;;  %v4991_v49 = vmul.f32 %v5701_v16, %v7961_v33  ;;  %v5692_v52 = vld [vmem:[%s8876_s7 + $0x388] sm:$0xff] }
 0x449   : > { %v6402_v37 = vpop.f32.mrf.mxu1  ;;  %4655 = vadd.xlane.f32.xlu0 %v4654_v59  ;;  %4589 = vadd.xlane.f32.xlu1 %v4588_v13  ;;  %v5711_v59 = vld [vmem:[%s8876_s7 + $0x420] sm:$0xff]  ;;  %v7994_v13 = vmax.f32 %v7822_v10, 0.0 }
 0x44a   : > { %v7906_v30 = vadd.f32 %v7776_v9, %v4121_v2  ;;  %v5137_v9 = vsel %vm2874_vm2, %v5127_v21, 0.0  ;;  %v5591_v2 = vld [vmem:[%s8876_s7 + $0x60] sm:$0xff]  ;;  %v5209_v3 = vsel %vm2874_vm2, %v5197_v40, 0.0  ;;  %v5005_v37 = vsel %vm2874_vm2, %v4991_v49, 0.0  ;;  %v5681_v40 = vld [vmem:[%s8876_s7 + $0x330] sm:$0xff]  ;;  %v5662_v49 = vld [vmem:[%s8876_s7 + $0x298] sm:$0xff] }
 0x44b   : > { %v4232_v55 = vmul.f32 %v5591_v2, %v7961_v33  ;;  %v5060_v56 = vmul.f32 %v5711_v59, %v7961_v33  ;;  %v4233_v15 = vmul.f32 %v5592_v48, %v7994_v13  ;;  %v4302_v35 = vmul.f32 %v5602_v44, %v7994_v13  ;;  %v5651_v21 = vld [vmem:[%s8876_s7 + $0x240] sm:$0xff] }
 0x44c   : > { %v4371_v53 = vmul.f32 %v5612_v46, %v7994_v13 }
 0x44d   : > { %4724 = vadd.xlane.f32.xlu0 %v4723_v61  ;;  %4658 = vadd.xlane.f32.xlu1 %v4657_v38  ;;  %v4154_v61 = vld [vmem:[%s8876_s7 + $0x18] sm:$0xff]  ;;  %v4246_v10 = vsel %vm2874_vm2, %v4232_v55, 0.0  ;;  %v5074_v38 = vsel %vm2874_vm2, %v5060_v56, 0.0  ;;  %v5691_v55 = vld [vmem:[%s8876_s7 + $0x380] sm:$0xff]  ;;  %v5672_v56 = vld [vmem:[%s8876_s7 + $0x2e8] sm:$0xff] }
 0x44e   : > { %v4164_v32 = vmul.f32 %v4154_v61, %v7994_v13  ;;  %v4387_v20 = vsel %vm2874_vm2, %v4371_v53, 0.0  ;;  %v5683_v53 = vld [vmem:[%s8876_s7 + $0x340] sm:$0xff] }
 0x451   : > { %4793 = vadd.xlane.f32.xlu0 %v4792_v34  ;;  %4727 = vadd.xlane.f32.xlu1 %v4726_v51  ;;  %v4315_v34 = vsel %vm2874_vm2, %v4301_v19, 0.0  ;;  %v4180_v51 = vsel %vm2874_vm2, %v4164_v32, 0.0  ;;  %v5721_v19 = vld [vmem:[%s8876_s7 + $0x470] sm:$0xff]  ;;  %v5682_v32 = vld [vmem:[%s8876_s7 + $0x338] sm:$0xff] }
 0x455   : > { %4862 = vadd.xlane.f32.xlu0 %v4861_v42  ;;  %4796 = vadd.xlane.f32.xlu1 %v4795_v1  ;;  %v4384_v42 = vsel %vm2874_vm2, %v4370_v58, 0.0  ;;  %v4249_v1 = vsel %vm2874_vm2, %v4233_v15, 0.0  ;;  %v5731_v58 = vld [vmem:[%s8876_s7 + $0x4c0] sm:$0xff]  ;;  %v5712_v15 = vld [vmem:[%s8876_s7 + $0x428] sm:$0xff] }
 0x459   : > { %4931 = vadd.xlane.f32.xlu0 %v4930_v18  ;;  %4865 = vadd.xlane.f32.xlu1 %v4864_v8  ;;  %v4318_v18 = vsel %vm2874_vm2, %v4302_v35, 0.0  ;;  %v4508_v8 = vmul.f32 %v5631_v26, %v7961_v33  ;;  %v5722_v35 = vld [vmem:[%s8876_s7 + $0x478] sm:$0xff]  ;;  %v8127_v26 = vmax.f32 %v7836_v43, 0.0 }
 0x45b   : > { %v4522_v17 = vsel %vm2874_vm2, %v4508_v8, 0.0  ;;  %v5702_v8 = vld [vmem:[%s8876_s7 + $0x3d8] sm:$0xff] }
 0x45d   : > { %5069 = vadd.xlane.f32.xlu0 %v5068_v23  ;;  %4934 = vadd.xlane.f32.xlu1 %v4933_v27  ;;  %v4577_v23 = vmul.f32 %v5641_v5, %v7961_v33  ;;  %v4440_v27 = vmul.f32 %v5622_v25, %v7994_v13  ;;  %v4992_v25 = vmul.f32 %v5702_v8, %v7994_v13 }
 0x45f   : > { %v4591_v28 = vsel %vm2874_vm2, %v4577_v23, 0.0  ;;  %v4456_v45 = vsel %vm2874_vm2, %v4440_v27, 0.0  ;;  %v5693_v23 = vld [vmem:[%s8876_s7 + $0x390] sm:$0xff]  ;;  %v5008_v27 = vsel %vm2874_vm2, %v4992_v25, 0.0 }
 0x461   : > { %5138 = vadd.xlane.f32.xlu0 %v5137_v9  ;;  %5072 = vadd.xlane.f32.xlu1 %v5071_v36  ;;  %v4646_v9 = vmul.f32 %v5651_v21, %v7961_v33  ;;  %v4509_v36 = vmul.f32 %v5632_v6, %v7994_v13 }
 0x463   : > { %v4660_v57 = vsel %vm2874_vm2, %v4646_v9, 0.0  ;;  %v4525_v12 = vsel %vm2874_vm2, %v4509_v36, 0.0  ;;  %v4155_v9 = vld [vmem:[%s8876_s7 + $0x20] sm:$0xff]  ;;  %v8160_v36 = vmax.f32 %v7850_v22, 0.0 }
 0x465   : > { %5141 = vadd.xlane.f32.xlu1 %v5140_v11  ;;  %4175 = vadd.xlane.f32.xlu0 %v4174_v14  ;;  %v4715_v11 = vmul.f32 %v5661_v24, %v7961_v33  ;;  %v4578_v14 = vmul.f32 %v5642_v39, %v7994_v13 }
 0x467   : > { %v4729_v63 = vsel %vm2874_vm2, %v4715_v11, 0.0  ;;  %v4594_v16 = vsel %vm2874_vm2, %v4578_v14, 0.0  ;;  %v4156_v11 = vld [vmem:[%s8876_s7 + $0x28] sm:$0xff] }
 0x469   : > { %5003 = vadd.xlane.f32.xlu0 %v5002_v41  ;;  %4178 = vadd.xlane.f32.xlu1 %v4177_v54  ;;  %v4784_v41 = vmul.f32 %v5671_v60, %v7961_v33  ;;  %v4647_v54 = vmul.f32 %v5652_v0, %v7994_v13  ;;  %v4166_v0 = vmul.f32 %v4156_v11, %v8160_v36 }
 0x46b   : > { %v4798_v2 = vsel %vm2874_vm2, %v4784_v41, 0.0  ;;  %v4663_v59 = vsel %vm2874_vm2, %v4647_v54, 0.0  ;;  %v4186_v54 = vsel %vm2874_vm2, %v4166_v0, 0.0 }
 0x46d   : > { %5210 = vadd.xlane.f32.xlu0 %v5209_v3  ;;  %5006 = vadd.xlane.f32.xlu1 %v5005_v37  ;;  %v4853_v3 = vmul.f32 %v5681_v40, %v7961_v33  ;;  %v4716_v37 = vmul.f32 %v5662_v49, %v7994_v13 }
 0x46f   : > { %v4867_v47 = vsel %vm2874_vm2, %v4853_v3, 0.0  ;;  %v4732_v61 = vsel %vm2874_vm2, %v4716_v37, 0.0 }
 0x471   : > { %4247 = vadd.xlane.f32.xlu0 %v4246_v10  ;;  %5075 = vadd.xlane.f32.xlu1 %v5074_v38  ;;  %v4922_v10 = vmul.f32 %v5691_v55, %v7961_v33  ;;  %v4785_v38 = vmul.f32 %v5672_v56, %v7994_v13 }
 0x473   : > { %v4936_v50 = vsel %vm2874_vm2, %v4922_v10, 0.0  ;;  %v4801_v48 = vsel %vm2874_vm2, %v4785_v38, 0.0  ;;  %v5623_v10 = vld [vmem:[%s8876_s7 + $0x160] sm:$0xff]  ;;  %v5614_v38 = vld [vmem:[%s8876_s7 + $0x118] sm:$0xff] }
 0x475   : > { %4316 = vadd.xlane.f32.xlu0 %v4315_v34  ;;  %4181 = vadd.xlane.f32.xlu1 %v4180_v51  ;;  %v5129_v34 = vmul.f32 %v5721_v19, %v7961_v33  ;;  %v4854_v51 = vmul.f32 %v5682_v32, %v7994_v13 }
 0x477   : > { %v5143_v4 = vsel %vm2874_vm2, %v5129_v34, 0.0  ;;  %v4870_v44 = vsel %vm2874_vm2, %v4854_v51, 0.0  ;;  %v4441_v34 = vmul.f32 %v5623_v10, %v8127_v26  ;;  %v4373_v51 = vmul.f32 %v5614_v38, %v8160_v36 }
 0x479   : > { %4385 = vadd.xlane.f32.xlu0 %v4384_v42  ;;  %4250 = vadd.xlane.f32.xlu1 %v4249_v1  ;;  %v5198_v42 = vmul.f32 %v5731_v58, %v7961_v33  ;;  %v5061_v1 = vmul.f32 %v5712_v15, %v7994_v13  ;;  %v4923_v33 = vmul.f32 %v5692_v52, %v7994_v13  ;;  %v5633_v58 = vld [vmem:[%s8876_s7 + $0x1b0] sm:$0xff]  ;;  %v5624_v15 = vld [vmem:[%s8876_s7 + $0x168] sm:$0xff]  ;;  %v4393_v52 = vsel %vm2874_vm2, %v4373_v51, 0.0 }
 0x47a   : > { %v5713_v51 = vld [vmem:[%s8876_s7 + $0x430] sm:$0xff] }
 0x47b   : > { %v5212_v46 = vsel %vm2874_vm2, %v5198_v42, 0.0  ;;  %v4939_v43 = vsel %vm2874_vm2, %v4923_v33, 0.0  ;;  %v5634_v33 = vld [vmem:[%s8876_s7 + $0x1b8] sm:$0xff] }
 0x47d   : > { %4454 = vadd.xlane.f32.xlu0 %v4453_v29  ;;  %4319 = vadd.xlane.f32.xlu1 %v4318_v18  ;;  %v5077_v29 = vsel %vm2874_vm2, %v5061_v1, 0.0  ;;  %v5130_v18 = vmul.f32 %v5722_v35, %v7994_v13  ;;  %v4459_v1 = vsel %vm2874_vm2, %v4441_v34, 0.0  ;;  %v4510_v35 = vmul.f32 %v5633_v58, %v8127_v26  ;;  %v5694_v58 = vld [vmem:[%s8876_s7 + $0x398] sm:$0xff] }
 0x47f   : > { %v5146_v5 = vsel %vm2874_vm2, %v5130_v18, 0.0 }
 0x481   : > { %4523 = vadd.xlane.f32.xlu0 %v4522_v17  ;;  %4388 = vadd.xlane.f32.xlu1 %v4387_v20  ;;  %v4855_v17 = vmul.f32 %v5683_v53, %v8127_v26  ;;  %v5732_v20 = vld [vmem:[%s8876_s7 + $0x4c8] sm:$0xff] }
 0x482   : > { %v5199_v6 = vmul.f32 %v5732_v20, %v7994_v13  ;;  %v5653_v20 = vld [vmem:[%s8876_s7 + $0x250] sm:$0xff] }
 0x483   : > { %v4873_v21 = vsel %vm2874_vm2, %v4855_v17, 0.0  ;;  %v4511_v17 = vmul.f32 %v5634_v33, %v8160_v36  ;;  %v5704_v33 = vld [vmem:[%s8876_s7 + $0x3e8] sm:$0xff] }
 0x484   : > { %v5215_v24 = vsel %vm2874_vm2, %v5199_v6, 0.0 }
 0x485   : > { %4592 = vadd.xlane.f32.xlu0 %v4591_v28  ;;  %4457 = vadd.xlane.f32.xlu1 %v4456_v45  ;;  %v4924_v28 = vmul.f32 %v5693_v23, %v8127_v26  ;;  %v5723_v45 = vld [vmem:[%s8876_s7 + $0x480] sm:$0xff]  ;;  %v5644_v23 = vld [vmem:[%s8876_s7 + $0x208] sm:$0xff] }
 0x486   : > { %v5131_v13 = vmul.f32 %v5723_v45, %v8127_v26  ;;  %v4531_v45 = vsel %vm2874_vm2, %v4511_v17, 0.0 }
 0x487   : > { %v4942_v39 = vsel %vm2874_vm2, %v4924_v28, 0.0 }
 0x488   : > { %v5149_v22 = vsel %vm2874_vm2, %v5131_v13, 0.0  ;;  %v5654_v13 = vld [vmem:[%s8876_s7 + $0x258] sm:$0xff] }
 0x489   : > { %4661 = vadd.xlane.f32.xlu0 %v4660_v57  ;;  %4526 = vadd.xlane.f32.xlu1 %v4525_v12  ;;  %v4165_v57 = vmul.f32 %v4155_v9, %v8127_v26  ;;  %v5593_v12 = vld [vmem:[%s8876_s7 + $0x70] sm:$0xff]  ;;  %v4648_v9 = vmul.f32 %v5653_v20, %v8127_v26  ;;  %v4649_v0 = vmul.f32 %v5654_v13, %v8160_v36  ;;  %v5714_v13 = vld [vmem:[%s8876_s7 + $0x438] sm:$0xff] }
 0x48a   : > { %v4234_v60 = vmul.f32 %v5593_v12, %v8127_v26  ;;  %v4994_v20 = vmul.f32 %v5704_v33, %v8160_v36 }
 0x48b   : > { %v4183_v14 = vsel %vm2874_vm2, %v4165_v57, 0.0 }
 0x48c   : > { %v4252_v41 = vsel %vm2874_vm2, %v4234_v60, 0.0 }
 0x48d   : > { %4730 = vadd.xlane.f32.xlu0 %v4729_v63  ;;  %4595 = vadd.xlane.f32.xlu1 %v4594_v16  ;;  %v5603_v63 = vld [vmem:[%s8876_s7 + $0xc0] sm:$0xff]  ;;  %v5594_v16 = vld [vmem:[%s8876_s7 + $0x78] sm:$0xff] }
 0x48e   : > { %v4303_v40 = vmul.f32 %v5603_v63, %v8127_v26  ;;  %v4235_v49 = vmul.f32 %v5594_v16, %v8160_v36  ;;  %v5673_v63 = vld [vmem:[%s8876_s7 + $0x2f0] sm:$0xff]  ;;  %v5664_v16 = vld [vmem:[%s8876_s7 + $0x2a8] sm:$0xff] }
 0x490   : > { %v4321_v55 = vsel %vm2874_vm2, %v4303_v40, 0.0  ;;  %v4255_v56 = vsel %vm2874_vm2, %v4235_v49, 0.0 }
 0x491   : > { %4799 = vadd.xlane.f32.xlu0 %v4798_v2  ;;  %4664 = vadd.xlane.f32.xlu1 %v4663_v59  ;;  %v5613_v2 = vld [vmem:[%s8876_s7 + $0x110] sm:$0xff]  ;;  %v5604_v59 = vld [vmem:[%s8876_s7 + $0xc8] sm:$0xff] }
 0x495   : > { %4868 = vadd.xlane.f32.xlu0 %v4867_v47  ;;  %4733 = vadd.xlane.f32.xlu1 %v4732_v61  ;;  %v4372_v47 = vmul.f32 %v5613_v2, %v8127_v26  ;;  %v4304_v61 = vmul.f32 %v5604_v59, %v8160_v36  ;;  %v4669_v2 = vsel %vm2874_vm2, %v4649_v0, 0.0  ;;  %v4786_v59 = vmul.f32 %v5673_v63, %v8127_v26 }
 0x499   : > { %4937 = vadd.xlane.f32.xlu0 %v4936_v50  ;;  %4802 = vadd.xlane.f32.xlu1 %v4801_v48  ;;  %v4390_v50 = vsel %vm2874_vm2, %v4372_v47, 0.0  ;;  %v4324_v48 = vsel %vm2874_vm2, %v4304_v61, 0.0  ;;  %v5674_v47 = vld [vmem:[%s8876_s7 + $0x2f8] sm:$0xff] }
 0x49a   : > { %v4787_v34 = vmul.f32 %v5674_v47, %v8160_v36 }
 0x49d   : > { %5144 = vadd.xlane.f32.xlu0 %v5143_v4  ;;  %4871 = vadd.xlane.f32.xlu1 %v4870_v44 }
 0x4a1   : > { %5213 = vadd.xlane.f32.xlu0 %v5212_v46  ;;  %5078 = vadd.xlane.f32.xlu1 %v5077_v29  ;;  %v4442_v46 = vmul.f32 %v5624_v15, %v8160_v36  ;;  %v5643_v29 = vld [vmem:[%s8876_s7 + $0x200] sm:$0xff] }
 0x4a2   : > { %v4579_v25 = vmul.f32 %v5643_v29, %v8127_v26  ;;  %v5733_v29 = vld [vmem:[%s8876_s7 + $0x4d0] sm:$0xff] }
 0x4a3   : > { %v5200_v17 = vmul.f32 %v5733_v29, %v8127_v26 }
 0x4a4   : > { %v4597_v28 = vsel %vm2874_vm2, %v4579_v25, 0.0 }
 0x4a5   : > { %4940 = vadd.xlane.f32.xlu0 %v4939_v43  ;;  %5147 = vadd.xlane.f32.xlu1 %v5146_v5  ;;  %v4528_v43 = vsel %vm2874_vm2, %v4510_v35, 0.0  ;;  %v4462_v5 = vsel %vm2874_vm2, %v4442_v46, 0.0  ;;  %v5062_v35 = vmul.f32 %v5713_v51, %v8127_v26  ;;  %v4925_v46 = vmul.f32 %v5694_v58, %v8160_v36 }
 0x4a7   : > { %v4945_v25 = vsel %vm2874_vm2, %v4925_v46, 0.0 }
 0x4a9   : > { %5009 = vadd.xlane.f32.xlu0 %v5008_v27  ;;  %4874 = vadd.xlane.f32.xlu1 %v4873_v21 }
 0x4ad   : > { %5216 = vadd.xlane.f32.xlu0 %v5215_v24  ;;  %4943 = vadd.xlane.f32.xlu1 %v4942_v39  ;;  %v4580_v24 = vmul.f32 %v5644_v23, %v8160_v36  ;;  %v5663_v39 = vld [vmem:[%s8876_s7 + $0x2a0] sm:$0xff]  ;;  %v5684_v23 = vld [vmem:[%s8876_s7 + $0x348] sm:$0xff] }
 0x4ae   : > { %v4717_v60 = vmul.f32 %v5663_v39, %v8127_v26 }
 0x4b0   : > { %v4735_v49 = vsel %vm2874_vm2, %v4717_v60, 0.0 }
 0x4b1   : > { %5150 = vadd.xlane.f32.xlu1 %v5149_v22  ;;  %4184 = vadd.xlane.f32.xlu0 %v4183_v14  ;;  %v4666_v22 = vsel %vm2874_vm2, %v4648_v9, 0.0  ;;  %v4600_v14 = vsel %vm2874_vm2, %v4580_v24, 0.0  ;;  %v5218_v9 = vsel %vm2874_vm2, %v5200_v17, 0.0  ;;  %v4856_v24 = vmul.f32 %v5684_v23, %v8160_v36  ;;  %v5596_v17 = vld [vmem:[%s8876_s7 + $0x88] sm:$0xff] }
 0x4b3   : > { %v4876_v0 = vsel %vm2874_vm2, %v4856_v24, 0.0  ;;  %v5625_v24 = vld [vmem:[%s8876_s7 + $0x170] sm:$0xff] }
 0x4b5   : > { %4253 = vadd.xlane.f32.xlu0 %v4252_v41  ;;  %4187 = vadd.xlane.f32.xlu1 %v4186_v54 }
 0x4b6   : > { %v8192_v3 = vpop.xlane.xlu1 %5000  ;;  %v8194_v37 = vpop.xlane.xlu0 %4172 }
 0x4b9   : > { %4322 = vadd.xlane.f32.xlu0 %v4321_v55  ;;  %4256 = vadd.xlane.f32.xlu1 %v4255_v56  ;;  %v4718_v55 = vmul.f32 %v5664_v16, %v8160_v36  ;;  %v5703_v56 = vld [vmem:[%s8876_s7 + $0x3e0] sm:$0xff]  ;;  %v5063_v16 = vmul.f32 %v5714_v13, %v8160_v36 }
 0x4ba   : > { %v8206_v19 = vpop.xlane.xlu1 %5207  ;;  %v4242_v32 = vpop.xlane.xlu0 %4241 }
 0x4bd   : > { %4391 = vadd.xlane.f32.xlu0 %v4390_v50  ;;  %4325 = vadd.xlane.f32.xlu1 %v4324_v48  ;;  %v4738_v50 = vsel %vm2874_vm2, %v4718_v55, 0.0  ;;  %v4993_v48 = vmul.f32 %v5703_v56, %v8127_v26  ;;  %v5014_v26 = vsel %vm2874_vm2, %v4994_v20, 0.0  ;;  %v5083_v55 = vsel %vm2874_vm2, %v5063_v16, 0.0 }
 0x4be   : > { %v4311_v4 = vpop.xlane.xlu0 %4310  ;;  %v4245_v44 = vpop.xlane.xlu1 %4244 }
 0x4bf   : > { %v8218_v42 = vadd.f32 %v4245_v44, %v4242_v32  ;;  %v4804_v32 = vsel %vm2874_vm2, %v4786_v59, 0.0 }
 0x4c1   : > { %4460 = vadd.xlane.f32.xlu0 %v4459_v1  ;;  %4394 = vadd.xlane.f32.xlu1 %v4393_v52  ;;  %v5011_v1 = vsel %vm2874_vm2, %v4993_v48, 0.0  ;;  %v4807_v52 = vsel %vm2874_vm2, %v4787_v34, 0.0  ;;  %v8354_v48 = vmax.f32 %v7878_v7, 0.0  ;;  %v4158_v7 = vld [vmem:[%s8876_s7 + $0x38] sm:$0xff] }
 0x4c2   : > { %v4380_v18 = vpop.xlane.xlu0 %4379  ;;  %v4314_v8 = vpop.xlane.xlu1 %4313 }
 0x4c3   : > { %v8230_v53 = vadd.f32 %v4314_v8, %v4311_v4 }
 0x4c5   : > { %4529 = vadd.xlane.f32.xlu0 %v4528_v43  ;;  %4463 = vadd.xlane.f32.xlu1 %v4462_v5  ;;  %v5080_v5 = vsel %vm2874_vm2, %v5062_v35, 0.0 }
 0x4c6   : > { %v4449_v27 = vpop.xlane.xlu0 %4448  ;;  %v4383_v21 = vpop.xlane.xlu1 %4382 }
 0x4c7   : > { %v8242_v6 = vadd.f32 %v4383_v21, %v4380_v18 }
 0x4c9   : > { %4598 = vadd.xlane.f32.xlu0 %v4597_v28  ;;  %4532 = vadd.xlane.f32.xlu1 %v4531_v45 }
 0x4ca   : > { %v4518_v57 = vpop.xlane.xlu0 %4517  ;;  %v4452_v12 = vpop.xlane.xlu1 %4451 }
 0x4cb   : > { %v8254_v11 = vadd.f32 %v4452_v12, %v4449_v27  ;;  %v5724_v27 = vld [vmem:[%s8876_s7 + $0x488] sm:$0xff] }
 0x4cc   : > { %v5132_v39 = vmul.f32 %v5724_v27, %v8160_v36 }
 0x4cd   : > { %4667 = vadd.xlane.f32.xlu0 %v4666_v22  ;;  %4601 = vadd.xlane.f32.xlu1 %v4600_v14  ;;  %v8327_v14 = vmax.f32 %v7864_v62, 0.0  ;;  %v4157_v62 = vld [vmem:[%s8876_s7 + $0x30] sm:$0xff] }
 0x4ce   : > { %v4587_v41 = vpop.xlane.xlu0 %4586  ;;  %v4521_v54 = vpop.xlane.xlu1 %4520  ;;  %v5152_v63 = vsel %vm2874_vm2, %v5132_v39, 0.0  ;;  %v5606_v39 = vld [vmem:[%s8876_s7 + $0xd8] sm:$0xff] }
 0x4cf   : > { %v8266_v40 = vadd.f32 %v4521_v54, %v4518_v57  ;;  %v5734_v57 = vld [vmem:[%s8876_s7 + $0x4d8] sm:$0xff]  ;;  %v5705_v54 = vld [vmem:[%s8876_s7 + $0x3f0] sm:$0xff]  ;;  %v4167_v47 = vmul.f32 %v4157_v62, %v8327_v14  ;;  %v4306_v16 = vmul.f32 %v5606_v39, %v8354_v48 }
 0x4d1   : > { %4736 = vadd.xlane.f32.xlu0 %v4735_v49  ;;  %4670 = vadd.xlane.f32.xlu1 %v4669_v2  ;;  %v4189_v58 = vsel %vm2874_vm2, %v4167_v47, 0.0 }
 0x4d2   : > { %v4656_v61 = vpop.xlane.xlu0 %4655  ;;  %v4590_v10 = vpop.xlane.xlu1 %4589 }
 0x4d3   : > { %v8278_v38 = vadd.f32 %v4590_v10, %v4587_v41  ;;  %v5201_v41 = vmul.f32 %v5734_v57, %v8160_v36  ;;  %v4995_v36 = vmul.f32 %v5705_v54, %v8327_v14  ;;  %v5595_v10 = vld [vmem:[%s8876_s7 + $0x80] sm:$0xff] }
 0x4d5   : > { %4805 = vadd.xlane.f32.xlu0 %v4804_v32  ;;  %4739 = vadd.xlane.f32.xlu1 %v4738_v50  ;;  %v5221_v56 = vsel %vm2874_vm2, %v5201_v41, 0.0  ;;  %v5017_v51 = vsel %vm2874_vm2, %v4995_v36, 0.0  ;;  %v5635_v41 = vld [vmem:[%s8876_s7 + $0x1c0] sm:$0xff] }
 0x4d6   : > { %v4725_v15 = vpop.xlane.xlu0 %4724  ;;  %v4659_v4 = vpop.xlane.xlu1 %4658  ;;  %v4512_v36 = vmul.f32 %v5635_v41, %v8327_v14  ;;  %v5685_v41 = vld [vmem:[%s8876_s7 + $0x350] sm:$0xff] }
 0x4d7   : > { %v8290_v44 = vadd.f32 %v4659_v4, %v4656_v61  ;;  %v5735_v61 = vld [vmem:[%s8876_s7 + $0x4e0] sm:$0xff]  ;;  %v4236_v4 = vmul.f32 %v5595_v10, %v8327_v14 }
 0x4d9   : > { %5012 = vadd.xlane.f32.xlu0 %v5011_v1  ;;  %4808 = vadd.xlane.f32.xlu1 %v4807_v52  ;;  %v5605_v1 = vld [vmem:[%s8876_s7 + $0xd0] sm:$0xff] }
 0x4da   : > { %v4794_v18 = vpop.xlane.xlu0 %4793  ;;  %v4728_v8 = vpop.xlane.xlu1 %4727 }
 0x4db   : > { %v8302_v43 = vadd.f32 %v4728_v8, %v4725_v15  ;;  %v5202_v15 = vmul.f32 %v5735_v61, %v8327_v14  ;;  %v4305_v8 = vmul.f32 %v5605_v1, %v8327_v14  ;;  %v5645_v61 = vld [vmem:[%s8876_s7 + $0x210] sm:$0xff]  ;;  %v5655_v1 = vld [vmem:[%s8876_s7 + $0x260] sm:$0xff] }
 0x4dd   : > { %5081 = vadd.xlane.f32.xlu0 %v5080_v5  ;;  %4946 = vadd.xlane.f32.xlu1 %v4945_v25  ;;  %v5224_v33 = vsel %vm2874_vm2, %v5202_v15, 0.0  ;;  %v4168_v5 = vmul.f32 %v4158_v7, %v8354_v48  ;;  %v5615_v25 = vld [vmem:[%s8876_s7 + $0x120] sm:$0xff]  ;;  %v4581_v15 = vmul.f32 %v5645_v61, %v8327_v14 }
 0x4de   : > { %v4863_v21 = vpop.xlane.xlu0 %4862  ;;  %v4797_v28 = vpop.xlane.xlu1 %4796  ;;  %v5695_v61 = vld [vmem:[%s8876_s7 + $0x3a0] sm:$0xff] }
 0x4df   : > { %v8314_v45 = vadd.f32 %v4797_v28, %v4794_v18  ;;  %v4258_v18 = vsel %vm2874_vm2, %v4236_v4, 0.0  ;;  %v4192_v28 = vsel %vm2874_vm2, %v4168_v5, 0.0 }
 0x4e1   : > { %5219 = vadd.xlane.f32.xlu0 %v5218_v9  ;;  %5015 = vadd.xlane.f32.xlu1 %v5014_v26  ;;  %v4374_v9 = vmul.f32 %v5615_v25, %v8327_v14  ;;  %v4237_v26 = vmul.f32 %v5596_v17, %v8354_v48  ;;  %v5665_v25 = vld [vmem:[%s8876_s7 + $0x2b0] sm:$0xff] }
 0x4e2   : > { %v4932_v12 = vpop.xlane.xlu0 %4931  ;;  %v4866_v22 = vpop.xlane.xlu1 %4865 }
 0x4e3   : > { %v8329_v60 = vadd.f32 %v4866_v22, %v4863_v21  ;;  %v4327_v21 = vsel %vm2874_vm2, %v4305_v8, 0.0  ;;  %v4396_v22 = vsel %vm2874_vm2, %v4374_v9, 0.0  ;;  %v4650_v8 = vmul.f32 %v5655_v1, %v8327_v14  ;;  %v5715_v1 = vld [vmem:[%s8876_s7 + $0x440] sm:$0xff] }
 0x4e5   : > { %4877 = vadd.xlane.f32.xlu0 %v4876_v0  ;;  %5153 = vadd.xlane.f32.xlu1 %v5152_v63  ;;  %v4261_v0 = vsel %vm2874_vm2, %v4237_v26, 0.0  ;;  %v4443_v63 = vmul.f32 %v5625_v24, %v8327_v14  ;;  %v5675_v26 = vld [vmem:[%s8876_s7 + $0x300] sm:$0xff] }
 0x4e6   : > { %v5070_v49 = vpop.xlane.xlu0 %5069  ;;  %v4935_v2 = vpop.xlane.xlu1 %4934 }
 0x4e7   : > { %v8341_v59 = vadd.f32 %v4935_v2, %v4932_v12 }
 0x4e9   : > { %5084 = vadd.xlane.f32.xlu0 %v5083_v55  ;;  %5222 = vadd.xlane.f32.xlu1 %v5221_v56  ;;  %v4465_v55 = vsel %vm2874_vm2, %v4443_v63, 0.0  ;;  %v4330_v56 = vsel %vm2874_vm2, %v4306_v16, 0.0  ;;  %v4788_v63 = vmul.f32 %v5675_v26, %v8327_v14  ;;  %v5696_v26 = vld [vmem:[%s8876_s7 + $0x3a8] sm:$0xff] }
 0x4ea   : > { %v5139_v32 = vpop.xlane.xlu0 %5138  ;;  %v5073_v50 = vpop.xlane.xlu1 %5072 }
 0x4eb   : > { %v5098_v34 = vadd.f32 %v5073_v50, %v5070_v49 }
 0x4ed   : > { %5018 = vadd.xlane.f32.xlu1 %v5017_v51  ;;  %4190 = vadd.xlane.f32.xlu0 %v4189_v58  ;;  %v4534_v51 = vsel %vm2874_vm2, %v4512_v36, 0.0  ;;  %v4857_v36 = vmul.f32 %v5685_v41, %v8327_v14  ;;  %v5726_v41 = vld [vmem:[%s8876_s7 + $0x498] sm:$0xff] }
 0x4ee   : > { %v5142_v52 = vpop.xlane.xlu1 %5141  ;;  %v4176_v35 = vpop.xlane.xlu0 %4175 }
 0x4ef   : > { %v8366_v46 = vadd.f32 %v5142_v52, %v5139_v32  ;;  %v4201_v29 = vadd.f32 %v4176_v35, %v8194_v37 }
 0x4f1   : > { %5225 = vadd.xlane.f32.xlu1 %v5224_v33  ;;  %4259 = vadd.xlane.f32.xlu0 %v4258_v18  ;;  %v4603_v33 = vsel %vm2874_vm2, %v4581_v15, 0.0  ;;  %v4926_v15 = vmul.f32 %v5695_v61, %v8327_v14 }
 0x4f2   : > { %v5004_v20 = vpop.xlane.xlu0 %5003  ;;  %v4179_v37 = vpop.xlane.xlu1 %4178 }
 0x4f3   : > { %v5029_v23 = vadd.f32 %v5004_v20, %v8192_v3  ;;  %v4202_v27 = vadd.f32 %v4201_v29, %v4179_v37 }
 0x4f5   : > { %4328 = vadd.xlane.f32.xlu0 %v4327_v21  ;;  %4193 = vadd.xlane.f32.xlu1 %v4192_v28  ;;  %v4719_v28 = vmul.f32 %v5665_v25, %v8327_v14  ;;  %v5725_v25 = vld [vmem:[%s8876_s7 + $0x490] sm:$0xff] }
 0x4f6   : > { %v5211_v3 = vpop.xlane.xlu0 %5210  ;;  %v5007_v13 = vpop.xlane.xlu1 %5006 }
 0x4f7   : > { %v8391_v57 = vadd.f32 %v5211_v3, %v8206_v19  ;;  %v8393_v12 = vadd.f32 %v5029_v23, %v5007_v13  ;;  %v5616_v19 = vld [vmem:[%s8876_s7 + $0x128] sm:$0xff] }
 0x4f8   : > { %v4375_v47 = vmul.f32 %v5616_v19, %v8354_v48 }
 0x4f9   : > { %4397 = vadd.xlane.f32.xlu0 %v4396_v22  ;;  %4262 = vadd.xlane.f32.xlu1 %v4261_v0  ;;  %v4741_v22 = vsel %vm2874_vm2, %v4719_v28, 0.0  ;;  %v5133_v28 = vmul.f32 %v5725_v25, %v8327_v14 }
 0x4fa   : > { %v4248_v54 = vpop.xlane.xlu0 %4247  ;;  %v5076_v62 = vpop.xlane.xlu1 %5075  ;;  %v4399_v58 = vsel %vm2874_vm2, %v4375_v47, 0.0 }
 0x4fb   : > { %v4271_v49 = vadd.f32 %v8218_v42, %v4248_v54  ;;  %v8406_v2 = vadd.f32 %v5098_v34, %v5076_v62  ;;  %v5626_v42 = vld [vmem:[%s8876_s7 + $0x178] sm:$0xff] }
 0x4fc   : > { %v4444_v4 = vmul.f32 %v5626_v42, %v8354_v48 }
 0x4fd   : > { %4466 = vadd.xlane.f32.xlu0 %v4465_v55  ;;  %4331 = vadd.xlane.f32.xlu1 %v4330_v56  ;;  %v4810_v55 = vsel %vm2874_vm2, %v4788_v63, 0.0  ;;  %v4927_v63 = vmul.f32 %v5696_v26, %v8354_v48 }
 0x4fe   : > { %v4317_v10 = vpop.xlane.xlu0 %4316  ;;  %v4182_v32 = vpop.xlane.xlu1 %4181  ;;  %v4468_v18 = vsel %vm2874_vm2, %v4444_v4, 0.0 }
 0x4ff   : > { %v4340_v50 = vadd.f32 %v8230_v53, %v4317_v10  ;;  %v8419_v34 = vadd.f32 %v4202_v27, %v4182_v32  ;;  %v5636_v53 = vld [vmem:[%s8876_s7 + $0x1c8] sm:$0xff]  ;;  %v4672_v27 = vsel %vm2874_vm2, %v4650_v8, 0.0  ;;  %v5064_v8 = vmul.f32 %v5715_v1, %v8327_v14  ;;  %v4159_v1 = vld [vmem:[%s8876_s7 + $0x40] sm:$0xff] }
 0x500   : > { %v4513_v5 = vmul.f32 %v5636_v53, %v8354_v48 }
 0x501   : > { %4535 = vadd.xlane.f32.xlu0 %v4534_v51  ;;  %4400 = vadd.xlane.f32.xlu1 %v4399_v58  ;;  %v4879_v51 = vsel %vm2874_vm2, %v4857_v36, 0.0 }
 0x502   : > { %v4386_v7 = vpop.xlane.xlu0 %4385  ;;  %v4251_v52 = vpop.xlane.xlu1 %4250  ;;  %v4537_v21 = vsel %vm2874_vm2, %v4513_v5, 0.0 }
 0x503   : > { %v4409_v35 = vadd.f32 %v8242_v6, %v4386_v7  ;;  %v8432_v29 = vadd.f32 %v4271_v49, %v4251_v52  ;;  %v5646_v6 = vld [vmem:[%s8876_s7 + $0x218] sm:$0xff] }
 0x504   : > { %v4582_v9 = vmul.f32 %v5646_v6, %v8354_v48 }
 0x505   : > { %4604 = vadd.xlane.f32.xlu0 %v4603_v33  ;;  %4469 = vadd.xlane.f32.xlu1 %v4468_v18  ;;  %v4948_v33 = vsel %vm2874_vm2, %v4926_v15, 0.0 }
 0x506   : > { %v4455_v17 = vpop.xlane.xlu0 %4454  ;;  %v4320_v20 = vpop.xlane.xlu1 %4319  ;;  %v4606_v0 = vsel %vm2874_vm2, %v4582_v9, 0.0 }
 0x507   : > { %v4478_v37 = vadd.f32 %v8254_v11, %v4455_v17  ;;  %v8445_v23 = vadd.f32 %v4340_v50, %v4320_v20  ;;  %v5656_v11 = vld [vmem:[%s8876_s7 + $0x268] sm:$0xff] }
 0x508   : > { %v4651_v16 = vmul.f32 %v5656_v11, %v8354_v48 }
 0x509   : > { %4673 = vadd.xlane.f32.xlu0 %v4672_v27  ;;  %4538 = vadd.xlane.f32.xlu1 %v4537_v21  ;;  %v5086_v27 = vsel %vm2874_vm2, %v5064_v8, 0.0 }
 0x50a   : > { %v4524_v24 = vpop.xlane.xlu0 %4523  ;;  %v4389_v39 = vpop.xlane.xlu1 %4388  ;;  %v4675_v56 = vsel %vm2874_vm2, %v4651_v16, 0.0 }
 0x50b   : > { %v4547_v3 = vadd.f32 %v8266_v40, %v4524_v24  ;;  %v8458_v13 = vadd.f32 %v4409_v35, %v4389_v39  ;;  %v5666_v40 = vld [vmem:[%s8876_s7 + $0x2b8] sm:$0xff]  ;;  %v8523_v39 = vmax.f32 %v7892_v31, 0.0  ;;  %v5687_v31 = vld [vmem:[%s8876_s7 + $0x360] sm:$0xff] }
 0x50c   : > { %v4720_v47 = vmul.f32 %v5666_v40, %v8354_v48 }
 0x50d   : > { %4742 = vadd.xlane.f32.xlu0 %v4741_v22  ;;  %4607 = vadd.xlane.f32.xlu1 %v4606_v0  ;;  %v5155_v22 = vsel %vm2874_vm2, %v5133_v28, 0.0  ;;  %v4859_v36 = vmul.f32 %v5687_v31, %v8523_v39  ;;  %v4169_v8 = vmul.f32 %v4159_v1, %v8523_v39  ;;  %v5598_v28 = vld [vmem:[%s8876_s7 + $0x98] sm:$0xff] }
 0x50e   : > { %v4593_v19 = vpop.xlane.xlu0 %4592  ;;  %v4458_v54 = vpop.xlane.xlu1 %4457  ;;  %v4744_v58 = vsel %vm2874_vm2, %v4720_v47, 0.0  ;;  %v5736_v47 = vld [vmem:[%s8876_s7 + $0x4e8] sm:$0xff] }
 0x50f   : > { %v4616_v62 = vadd.f32 %v8278_v38, %v4593_v19  ;;  %v8471_v49 = vadd.f32 %v4478_v37, %v4458_v54  ;;  %v5676_v38 = vld [vmem:[%s8876_s7 + $0x308] sm:$0xff] }
 0x510   : > { %v4789_v4 = vmul.f32 %v5676_v38, %v8354_v48 }
 0x511   : > { %4811 = vadd.xlane.f32.xlu0 %v4810_v55  ;;  %4676 = vadd.xlane.f32.xlu1 %v4675_v56  ;;  %v5134_v56 = vmul.f32 %v5726_v41, %v8354_v48 }
 0x512   : > { %v4662_v42 = vpop.xlane.xlu0 %4661  ;;  %v4527_v10 = vpop.xlane.xlu1 %4526  ;;  %v4813_v18 = vsel %vm2874_vm2, %v4789_v4, 0.0  ;;  %v5727_v4 = vld [vmem:[%s8876_s7 + $0x4a0] sm:$0xff] }
 0x513   : > { %v4685_v32 = vadd.f32 %v8290_v44, %v4662_v42  ;;  %v8484_v50 = vadd.f32 %v4547_v3, %v4527_v10  ;;  %v5686_v44 = vld [vmem:[%s8876_s7 + $0x358] sm:$0xff] }
 0x514   : > { %v4858_v5 = vmul.f32 %v5686_v44, %v8354_v48 }
 0x515   : > { %4880 = vadd.xlane.f32.xlu0 %v4879_v51  ;;  %4745 = vadd.xlane.f32.xlu1 %v4744_v58  ;;  %v4885_v51 = vsel %vm2874_vm2, %v4859_v36, 0.0  ;;  %v5203_v58 = vmul.f32 %v5736_v47, %v8354_v48  ;;  %v5618_v36 = vld [vmem:[%s8876_s7 + $0x138] sm:$0xff] }
 0x516   : > { %v4731_v53 = vpop.xlane.xlu0 %4730  ;;  %v4596_v7 = vpop.xlane.xlu1 %4595  ;;  %v4882_v21 = vsel %vm2874_vm2, %v4858_v5, 0.0 }
 0x517   : > { %v4754_v52 = vadd.f32 %v8302_v43, %v4731_v53  ;;  %v8497_v35 = vadd.f32 %v4616_v62, %v4596_v7  ;;  %v5706_v43 = vld [vmem:[%s8876_s7 + $0x3f8] sm:$0xff]  ;;  %v4951_v62 = vsel %vm2874_vm2, %v4927_v63, 0.0  ;;  %v8563_v53 = vmax.f32 %v7906_v30, 0.0  ;;  %v5597_v30 = vld [vmem:[%s8876_s7 + $0x90] sm:$0xff] }
 0x518   : > { %v4996_v9 = vmul.f32 %v5706_v43, %v8354_v48  ;;  %v5617_v63 = vld [vmem:[%s8876_s7 + $0x130] sm:$0xff] }
 0x519   : > { %4949 = vadd.xlane.f32.xlu0 %v4948_v33  ;;  %4814 = vadd.xlane.f32.xlu1 %v4813_v18  ;;  %v5135_v18 = vmul.f32 %v5727_v4, %v8523_v39 }
 0x51a   : > { %v4800_v6 = vpop.xlane.xlu0 %4799  ;;  %v4665_v17 = vpop.xlane.xlu1 %4664  ;;  %v5020_v0 = vsel %vm2874_vm2, %v4996_v9, 0.0 }
 0x51b   : > { %v4823_v20 = vadd.f32 %v8314_v45, %v4800_v6  ;;  %v8510_v37 = vadd.f32 %v4685_v32, %v4665_v17  ;;  %v5716_v45 = vld [vmem:[%s8876_s7 + $0x448] sm:$0xff]  ;;  %v5158_v32 = vsel %vm2874_vm2, %v5134_v56, 0.0  ;;  %v5161_v6 = vsel %vm2874_vm2, %v5135_v18, 0.0  ;;  %v5627_v56 = vld [vmem:[%s8876_s7 + $0x180] sm:$0xff] }
 0x51c   : > { %v5065_v16 = vmul.f32 %v5716_v45, %v8354_v48  ;;  %v4195_v17 = vsel %vm2874_vm2, %v4169_v8, 0.0  ;;  %v5647_v18 = vld [vmem:[%s8876_s7 + $0x220] sm:$0xff] }
 0x51d   : > { %5087 = vadd.xlane.f32.xlu0 %v5086_v27  ;;  %4883 = vadd.xlane.f32.xlu1 %v4882_v21  ;;  %v5607_v21 = vld [vmem:[%s8876_s7 + $0xe0] sm:$0xff] }
 0x51e   : > { %v4869_v11 = vpop.xlane.xlu0 %4868  ;;  %v4734_v24 = vpop.xlane.xlu1 %4733  ;;  %v5089_v55 = vsel %vm2874_vm2, %v5065_v16, 0.0 }
 0x51f   : > { %v4892_v3 = vadd.f32 %v8329_v60, %v4869_v11  ;;  %v8526_v14 = vadd.f32 %v4754_v52, %v4734_v24  ;;  %v5227_v52 = vsel %vm2874_vm2, %v5203_v58, 0.0  ;;  %v5637_v58 = vld [vmem:[%s8876_s7 + $0x1d0] sm:$0xff] }
 0x521   : > { %5156 = vadd.xlane.f32.xlu0 %v5155_v22  ;;  %5021 = vadd.xlane.f32.xlu1 %v5020_v0  ;;  %v4307_v22 = vmul.f32 %v5607_v21, %v8523_v39  ;;  %v4239_v0 = vmul.f32 %v5598_v28, %v8563_v53 }
 0x522   : > { %v4938_v60 = vpop.xlane.xlu0 %4937  ;;  %v4803_v40 = vpop.xlane.xlu1 %4802 }
 0x523   : > { %v4961_v19 = vadd.f32 %v8341_v59, %v4938_v60  ;;  %v8539_v54 = vadd.f32 %v4823_v20, %v4803_v40  ;;  %v5717_v59 = vld [vmem:[%s8876_s7 + $0x450] sm:$0xff]  ;;  %v4238_v20 = vmul.f32 %v5597_v30, %v8523_v39  ;;  %v4333_v40 = vsel %vm2874_vm2, %v4307_v22, 0.0  ;;  %v5667_v22 = vld [vmem:[%s8876_s7 + $0x2c0] sm:$0xff] }
 0x524   : > { %v5066_v15 = vmul.f32 %v5717_v59, %v8523_v39 }
 0x525   : > { %4952 = vadd.xlane.f32.xlu0 %v4951_v62  ;;  %5090 = vadd.xlane.f32.xlu1 %v5089_v55  ;;  %v4264_v24 = vsel %vm2874_vm2, %v4238_v20, 0.0  ;;  %v4376_v62 = vmul.f32 %v5617_v63, %v8523_v39 }
 0x526   : > { %v5145_v61 = vpop.xlane.xlu0 %5144  ;;  %v4872_v38 = vpop.xlane.xlu1 %4871  ;;  %v5092_v33 = vsel %vm2874_vm2, %v5066_v15, 0.0  ;;  %v5628_v15 = vld [vmem:[%s8876_s7 + $0x188] sm:$0xff] }
 0x527   : > { %v5168_v42 = vadd.f32 %v8366_v46, %v5145_v61  ;;  %v4893_v10 = vadd.f32 %v4892_v3, %v4872_v38 }
 0x529   : > { %5159 = vadd.xlane.f32.xlu0 %v5158_v32  ;;  %4886 = vadd.xlane.f32.xlu1 %v4885_v51  ;;  %v4445_v32 = vmul.f32 %v5627_v56, %v8523_v39  ;;  %v4377_v51 = vmul.f32 %v5618_v36, %v8563_v53 }
 0x52a   : > { %v5214_v46 = vpop.xlane.xlu0 %5213  ;;  %v5079_v44 = vpop.xlane.xlu1 %5078 }
 0x52b   : > { %v5237_v7 = vadd.f32 %v8391_v57, %v5214_v46  ;;  %v8567_v48 = vadd.f32 %v8406_v2, %v5079_v44  ;;  %v4160_v57 = vld [vmem:[%s8876_s7 + $0x48] sm:$0xff]  ;;  %v4471_v44 = vsel %vm2874_vm2, %v4445_v32, 0.0 }
 0x52c   : > { %v4170_v27 = vmul.f32 %v4160_v57, %v8563_v53 }
 0x52d   : > { %5228 = vadd.xlane.f32.xlu0 %v5227_v52  ;;  %5093 = vadd.xlane.f32.xlu1 %v5092_v33  ;;  %v4514_v52 = vmul.f32 %v5637_v58, %v8523_v39  ;;  %v4446_v33 = vmul.f32 %v5628_v15, %v8563_v53 }
 0x52e   : > { %v4941_v2 = vpop.xlane.xlu0 %4940  ;;  %v5148_v5 = vpop.xlane.xlu1 %5147  ;;  %v4198_v3 = vsel %vm2874_vm2, %v4170_v27, 0.0 }
 0x52f   : > { %v4962_v25 = vadd.f32 %v4961_v19, %v4941_v2  ;;  %v5169_v43 = vadd.f32 %v5168_v42, %v5148_v5  ;;  %v4267_v19 = vsel %vm2874_vm2, %v4239_v0, 0.0  ;;  %v4402_v42 = vsel %vm2874_vm2, %v4376_v62, 0.0 }
 0x530   : > { %v4540_v5 = vsel %vm2874_vm2, %v4514_v52, 0.0 }
 0x531   : > { %5162 = vadd.xlane.f32.xlu1 %v5161_v6  ;;  %4196 = vadd.xlane.f32.xlu0 %v4195_v17  ;;  %v5657_v17 = vld [vmem:[%s8876_s7 + $0x270] sm:$0xff] }
 0x532   : > { %v5010_v9 = vpop.xlane.xlu0 %5009  ;;  %v4875_v26 = vpop.xlane.xlu1 %4874 }
 0x533   : > { %v8590_v45 = vadd.f32 %v8393_v12, %v5010_v9  ;;  %v8592_v11 = vadd.f32 %v4893_v10, %v4875_v26  ;;  %v5608_v12 = vld [vmem:[%s8876_s7 + $0xe8] sm:$0xff] }
 0x534   : > { %v4308_v55 = vmul.f32 %v5608_v12, %v8563_v53 }
 0x535   : > { %4265 = vadd.xlane.f32.xlu0 %v4264_v24  ;;  %4199 = vadd.xlane.f32.xlu1 %v4198_v3  ;;  %v4652_v24 = vmul.f32 %v5657_v17, %v8523_v39 }
 0x536   : > { %v5217_v16 = vpop.xlane.xlu0 %5216  ;;  %v4944_v41 = vpop.xlane.xlu1 %4943  ;;  %v4336_v10 = vsel %vm2874_vm2, %v4308_v55, 0.0  ;;  %v5677_v55 = vld [vmem:[%s8876_s7 + $0x310] sm:$0xff] }
 0x537   : > { %v8604_v31 = vadd.f32 %v5237_v7, %v5217_v16  ;;  %v8606_v60 = vadd.f32 %v4962_v25, %v4944_v41  ;;  %v4405_v7 = vsel %vm2874_vm2, %v4377_v51, 0.0  ;;  %v4474_v25 = vsel %vm2874_vm2, %v4446_v33, 0.0  ;;  %v5697_v51 = vld [vmem:[%s8876_s7 + $0x3b0] sm:$0xff]  ;;  %v5707_v33 = vld [vmem:[%s8876_s7 + $0x400] sm:$0xff] }
 0x538   : > { %v4678_v41 = vsel %vm2874_vm2, %v4652_v24, 0.0 }
 0x539   : > { %4334 = vadd.xlane.f32.xlu0 %v4333_v40  ;;  %4268 = vadd.xlane.f32.xlu1 %v4267_v19  ;;  %v4721_v19 = vmul.f32 %v5667_v22, %v8523_v39 }
 0x53a   : > { %v5151_v47 = vpop.xlane.xlu1 %5150  ;;  %v4185_v59 = vpop.xlane.xlu0 %4184 }
 0x53b   : > { %v8618_v61 = vadd.f32 %v5169_v43, %v5151_v47  ;;  %v4204_v38 = vadd.f32 %v8419_v34, %v4185_v59  ;;  %v4583_v43 = vmul.f32 %v5647_v18, %v8523_v39 }
 0x53d   : > { %4403 = vadd.xlane.f32.xlu0 %v4402_v42  ;;  %4337 = vadd.xlane.f32.xlu1 %v4336_v10  ;;  %v4609_v9 = vsel %vm2874_vm2, %v4583_v43, 0.0  ;;  %v4790_v10 = vmul.f32 %v5677_v55, %v8523_v39 }
 0x53e   : > { %v4254_v4 = vpop.xlane.xlu0 %4253  ;;  %v4188_v34 = vpop.xlane.xlu1 %4187 }
 0x53f   : > { %v4273_v1 = vadd.f32 %v8432_v29, %v4254_v4  ;;  %v8632_v46 = vadd.f32 %v4204_v38, %v4188_v34  ;;  %v5638_v29 = vld [vmem:[%s8876_s7 + $0x1d8] sm:$0xff]  ;;  %v4747_v38 = vsel %vm2874_vm2, %v4721_v19, 0.0 }
 0x540   : > { %v4515_v6 = vmul.f32 %v5638_v29, %v8563_v53 }
 0x541   : > { %4472 = vadd.xlane.f32.xlu0 %v4471_v44  ;;  %4406 = vadd.xlane.f32.xlu1 %v4405_v7  ;;  %v4928_v7 = vmul.f32 %v5697_v51, %v8523_v39 }
 0x542   : > { %v4323_v8 = vpop.xlane.xlu0 %4322  ;;  %v4257_v30 = vpop.xlane.xlu1 %4256  ;;  %v4543_v26 = vsel %vm2874_vm2, %v4515_v6, 0.0  ;;  %v5708_v6 = vld [vmem:[%s8876_s7 + $0x408] sm:$0xff] }
 0x543   : > { %v4342_v57 = vadd.f32 %v8445_v23, %v4323_v8  ;;  %v8645_v2 = vadd.f32 %v4273_v1, %v4257_v30  ;;  %v5648_v23 = vld [vmem:[%s8876_s7 + $0x228] sm:$0xff]  ;;  %v4816_v1 = vsel %vm2874_vm2, %v4790_v10, 0.0 }
 0x544   : > { %v4584_v3 = vmul.f32 %v5648_v23, %v8563_v53 }
 0x545   : > { %4541 = vadd.xlane.f32.xlu0 %v4540_v5  ;;  %4475 = vadd.xlane.f32.xlu1 %v4474_v25  ;;  %v4997_v25 = vmul.f32 %v5707_v33, %v8523_v39 }
 0x546   : > { %v4392_v20 = vpop.xlane.xlu0 %4391  ;;  %v4326_v27 = vpop.xlane.xlu1 %4325  ;;  %v4612_v40 = vsel %vm2874_vm2, %v4584_v3, 0.0  ;;  %v5718_v3 = vld [vmem:[%s8876_s7 + $0x458] sm:$0xff] }
 0x547   : > { %v4411_v21 = vadd.f32 %v8458_v13, %v4392_v20  ;;  %v8658_v28 = vadd.f32 %v4342_v57, %v4326_v27  ;;  %v5658_v13 = vld [vmem:[%s8876_s7 + $0x278] sm:$0xff]  ;;  %v4954_v57 = vsel %vm2874_vm2, %v4928_v7, 0.0 }
 0x548   : > { %v4653_v62 = vmul.f32 %v5658_v13, %v8563_v53 }
 0x549   : > { %4610 = vadd.xlane.f32.xlu0 %v4609_v9  ;;  %4544 = vadd.xlane.f32.xlu1 %v4543_v26  ;;  %v4998_v26 = vmul.f32 %v5708_v6, %v8563_v53 }
 0x54a   : > { %v4461_v0 = vpop.xlane.xlu0 %4460  ;;  %v4395_v63 = vpop.xlane.xlu1 %4394  ;;  %v4681_v42 = vsel %vm2874_vm2, %v4653_v62, 0.0  ;;  %v5737_v62 = vld [vmem:[%s8876_s7 + $0x4f0] sm:$0xff] }
 0x54b   : > { %v4480_v12 = vadd.f32 %v8471_v49, %v4461_v0  ;;  %v8671_v16 = vadd.f32 %v4411_v21, %v4395_v63  ;;  %v5668_v49 = vld [vmem:[%s8876_s7 + $0x2c8] sm:$0xff]  ;;  %v5023_v21 = vsel %vm2874_vm2, %v4997_v25, 0.0 }
 0x54c   : > { %v4722_v32 = vmul.f32 %v5668_v49, %v8563_v53 }
 0x54d   : > { %4679 = vadd.xlane.f32.xlu0 %v4678_v41  ;;  %4613 = vadd.xlane.f32.xlu1 %v4612_v40  ;;  %v5067_v40 = vmul.f32 %v5718_v3, %v8563_v53 }
 0x54e   : > { %v4530_v56 = vpop.xlane.xlu0 %4529  ;;  %v4464_v36 = vpop.xlane.xlu1 %4463  ;;  %v4750_v44 = vsel %vm2874_vm2, %v4722_v32, 0.0 }
 0x54f   : > { %v4549_v47 = vadd.f32 %v8484_v50, %v4530_v56  ;;  %v8684_v59 = vadd.f32 %v4480_v12, %v4464_v36  ;;  %v5678_v50 = vld [vmem:[%s8876_s7 + $0x318] sm:$0xff]  ;;  %v5026_v12 = vsel %vm2874_vm2, %v4998_v26, 0.0 }
 0x550   : > { %v4791_v52 = vmul.f32 %v5678_v50, %v8563_v53 }
 0x551   : > { %4748 = vadd.xlane.f32.xlu0 %v4747_v38  ;;  %4682 = vadd.xlane.f32.xlu1 %v4681_v42  ;;  %v5204_v42 = vmul.f32 %v5737_v62, %v8523_v39 }
 0x552   : > { %v4599_v58 = vpop.xlane.xlu0 %4598  ;;  %v4533_v15 = vpop.xlane.xlu1 %4532  ;;  %v4819_v5 = vsel %vm2874_vm2, %v4791_v52, 0.0 }
 0x553   : > { %v4618_v4 = vadd.f32 %v8497_v35, %v4599_v58  ;;  %v8697_v34 = vadd.f32 %v4549_v47, %v4533_v15  ;;  %v5688_v35 = vld [vmem:[%s8876_s7 + $0x368] sm:$0xff]  ;;  %v5095_v47 = vsel %vm2874_vm2, %v5067_v40, 0.0 }
 0x554   : > { %v4860_v43 = vmul.f32 %v5688_v35, %v8563_v53 }
 0x555   : > { %4817 = vadd.xlane.f32.xlu0 %v4816_v1  ;;  %4751 = vadd.xlane.f32.xlu1 %v4750_v44 }
 0x556   : > { %v4668_v18 = vpop.xlane.xlu0 %4667  ;;  %v4602_v29 = vpop.xlane.xlu1 %4601  ;;  %v4888_v9 = vsel %vm2874_vm2, %v4860_v43, 0.0 }
 0x557   : > { %v4687_v8 = vadd.f32 %v8510_v37, %v4668_v18  ;;  %v8710_v30 = vadd.f32 %v4618_v4, %v4602_v29  ;;  %v5698_v37 = vld [vmem:[%s8876_s7 + $0x3b8] sm:$0xff] }
 0x558   : > { %v4929_v24 = vmul.f32 %v5698_v37, %v8563_v53 }
 0x559   : > { %4955 = vadd.xlane.f32.xlu0 %v4954_v57  ;;  %4820 = vadd.xlane.f32.xlu1 %v4819_v5 }
 0x55a   : > { %v4737_v17 = vpop.xlane.xlu0 %4736  ;;  %v4671_v23 = vpop.xlane.xlu1 %4670  ;;  %v4957_v41 = vsel %vm2874_vm2, %v4929_v24, 0.0 }
 0x55b   : > { %v4756_v20 = vadd.f32 %v8526_v14, %v4737_v17  ;;  %v8723_v27 = vadd.f32 %v4687_v8, %v4671_v23  ;;  %v5728_v14 = vld [vmem:[%s8876_s7 + $0x4a8] sm:$0xff] }
 0x55c   : > { %v5136_v19 = vmul.f32 %v5728_v14, %v8563_v53 }
 0x55d   : > { %5024 = vadd.xlane.f32.xlu0 %v5023_v21  ;;  %4889 = vadd.xlane.f32.xlu1 %v4888_v9 }
 0x55e   : > { %v4806_v22 = vpop.xlane.xlu0 %4805  ;;  %v4740_v13 = vpop.xlane.xlu1 %4739  ;;  %v5164_v38 = vsel %vm2874_vm2, %v5136_v19, 0.0 }
 0x55f   : > { %v4825_v0 = vadd.f32 %v8539_v54, %v4806_v22  ;;  %v8736_v63 = vadd.f32 %v4756_v20, %v4740_v13  ;;  %v5738_v54 = vld [vmem:[%s8876_s7 + $0x4f8] sm:$0xff] }
 0x560   : > { %v5205_v10 = vmul.f32 %v5738_v54, %v8563_v53 }
 0x561   : > { %5027 = vadd.xlane.f32.xlu0 %v5026_v12  ;;  %4958 = vadd.xlane.f32.xlu1 %v4957_v41 }
 0x562   : > { %v5013_v55 = vpop.xlane.xlu0 %5012  ;;  %v4809_v49 = vpop.xlane.xlu1 %4808  ;;  %v5233_v15 = vsel %vm2874_vm2, %v5205_v10, 0.0 }
 0x563   : > { %v5032_v56 = vadd.f32 %v8590_v45, %v5013_v55  ;;  %v8749_v36 = vadd.f32 %v4825_v0, %v4809_v49  ;;  %v5230_v45 = vsel %vm2874_vm2, %v5204_v42, 0.0 }
 0x565   : > { %5096 = vadd.xlane.f32.xlu0 %v5095_v47  ;;  %5165 = vadd.xlane.f32.xlu1 %v5164_v38 }
 0x566   : > { %v5082_v32 = vpop.xlane.xlu0 %5081  ;;  %v4947_v51 = vpop.xlane.xlu1 %4946 }
 0x567   : > { %v5101_v50 = vadd.f32 %v8567_v48, %v5082_v32  ;;  %v8757_v58 = vadd.f32 %v8606_v60, %v4947_v51 }
 0x569   : > { %5231 = vadd.xlane.f32.xlu0 %v5230_v45  ;;  %5234 = vadd.xlane.f32.xlu1 %v5233_v15 }
 0x56a   : > { %v5220_v4 = vpop.xlane.xlu0 %5219  ;;  %v5016_v1 = vpop.xlane.xlu1 %5015 }
 0x56b   : > { %v5239_v39 = vadd.f32 %v8604_v31, %v5220_v4  ;;  %v5033_v53 = vadd.f32 %v5032_v56, %v5016_v1 }
 0x56e   : > { %v4878_v44 = vpop.xlane.xlu0 %4877  ;;  %v5154_v7 = vpop.xlane.xlu1 %5153 }
 0x56f   : > { %v4895_v52 = vadd.f32 %v8592_v11, %v4878_v44  ;;  %v5171_v48 = vadd.f32 %v8618_v61, %v5154_v7 }
 0x572   : > { %v5085_v33 = vpop.xlane.xlu0 %5084  ;;  %v5223_v60 = vpop.xlane.xlu1 %5222 }
 0x573   : > { %v5102_v35 = vadd.f32 %v5101_v50, %v5085_v33  ;;  %v5240_v18 = vadd.f32 %v5239_v39, %v5223_v60 }
 0x576   : > { %v5019_v29 = vpop.xlane.xlu1 %5018  ;;  %v4191_v8 = vpop.xlane.xlu0 %4190 }
 0x577   : > { %v8764_v57 = vadd.f32 %v5033_v53, %v5019_v29  ;;  %v4206_v5 = vadd.f32 %v8632_v46, %v4191_v8 }
 0x57a   : > { %v5226_v25 = vpop.xlane.xlu1 %5225  ;;  %v4260_v43 = vpop.xlane.xlu0 %4259 }
 0x57b   : > { %v8767_v31 = vadd.f32 %v5240_v18, %v5226_v25  ;;  %v4275_v6 = vadd.f32 %v8645_v2, %v4260_v43 }
 0x57e   : > { %v4329_v37 = vpop.xlane.xlu0 %4328  ;;  %v4194_v11 = vpop.xlane.xlu1 %4193 }
 0x57f   : > { %v4344_v61 = vadd.f32 %v8658_v28, %v4329_v37  ;;  %v4207_v17 = vadd.f32 %v4206_v5, %v4194_v11 }
 0x582   : > { %v4398_v23 = vpop.xlane.xlu0 %4397  ;;  %v4263_v20 = vpop.xlane.xlu1 %4262 }
 0x583   : > { %v4413_v21 = vadd.f32 %v8671_v16, %v4398_v23  ;;  %v4276_v9 = vadd.f32 %v4275_v6, %v4263_v20 }
 0x586   : > { %v4467_v26 = vpop.xlane.xlu0 %4466  ;;  %v4332_v24 = vpop.xlane.xlu1 %4331 }
 0x587   : > { %v4482_v46 = vadd.f32 %v8684_v59, %v4467_v26  ;;  %v4345_v3 = vadd.f32 %v4344_v61, %v4332_v24  ;;  %v4149_v61 = vlaneseq }
 0x58a   : > { %v4536_v14 = vpop.xlane.xlu0 %4535  ;;  %v4401_v22 = vpop.xlane.xlu1 %4400 }
 0x58b   : > { %v4551_v13 = vadd.f32 %v8697_v34, %v4536_v14  ;;  %v4414_v2 = vadd.f32 %v4413_v21, %v4401_v22 }
 0x58e   : > { %v4605_v0 = vpop.xlane.xlu0 %4604  ;;  %v4470_v12 = vpop.xlane.xlu1 %4469 }
 0x58f   : > { %v4620_v28 = vadd.f32 %v8710_v30, %v4605_v0  ;;  %v8775_v41 = vadd.f32 %v4482_v46, %v4470_v12 }
 0x592   : > { %v4674_v40 = vpop.xlane.xlu0 %4673  ;;  %v4539_v19 = vpop.xlane.xlu1 %4538 }
 0x593   : > { %v4689_v16 = vadd.f32 %v8723_v27, %v4674_v40  ;;  %v8778_v62 = vadd.f32 %v4551_v13, %v4539_v19  ;;  %v8817_v13 = vand.u32 127, %v4149_v61 }
 0x595   : > { %vm4216_vm10 = vcmp.eq.s32.totalorder %v8817_v13, 0  ;;  %vm4285_vm2 = vcmp.eq.s32.totalorder %v8817_v13, 1  ;;  %vm4354_vm1 = vcmp.eq.s32.totalorder %v8817_v13, 2  ;;  %vm4423_vm0 = vcmp.eq.s32.totalorder %v8817_v13, 3 }
 0x596   : > { %v4743_v54 = vpop.xlane.xlu0 %4742  ;;  %v4608_v59 = vpop.xlane.xlu1 %4607  ;;  %vm4492_vm8 = vcmp.eq.s32.totalorder %v8817_v13, 4  ;;  %vm4561_vm6 = vcmp.eq.s32.totalorder %v8817_v13, 5  ;;  %vm4630_vm9 = vcmp.eq.s32.totalorder %v8817_v13, 6  ;;  %vm4699_vm13 = vcmp.eq.s32.totalorder %v8817_v13, 7 }
 0x597   : > { %v4758_v55 = vadd.f32 %v8736_v63, %v4743_v54  ;;  %v8781_v49 = vadd.f32 %v4620_v28, %v4608_v59  ;;  %vm4768_vm11 = vcmp.eq.s32.totalorder %v8817_v13, 8  ;;  %vm4837_vm3 = vcmp.eq.s32.totalorder %v8817_v13, 9 }
 0x598   : > { %vm4906_vm15 = vcmp.eq.s32.totalorder %v8817_v13, 10  ;;  %vm4975_vm7 = vcmp.eq.s32.totalorder %v8817_v13, 11  ;;  %vm5044_vm5 = vcmp.eq.s32.totalorder %v8817_v13, 12  ;;  %vm5113_vm4 = vcmp.eq.s32.totalorder %v8817_v13, 13 }
 0x599   : > { %vm5182_vm12 = vcmp.eq.s32.totalorder %v8817_v13, 14  ;;  %vm5251_vm14 = vcmp.eq.s32.totalorder %v8817_v13, 15 }
 0x59a   : > { %v4812_v34 = vpop.xlane.xlu0 %4811  ;;  %v4677_v56 = vpop.xlane.xlu1 %4676 }
 0x59b   : > { %v4827_v47 = vadd.f32 %v8749_v36, %v4812_v34  ;;  %v8784_v38 = vadd.f32 %v4689_v16, %v4677_v56 }
 0x59e   : > { %v4881_v30 = vpop.xlane.xlu0 %4880  ;;  %v4746_v42 = vpop.xlane.xlu1 %4745 }
 0x59f   : > { %v8786_v10 = vadd.f32 %v4895_v52, %v4881_v30  ;;  %v8788_v32 = vadd.f32 %v4758_v55, %v4746_v42 }
 0x5a2   : > { %v4950_v27 = vpop.xlane.xlu0 %4949  ;;  %v4815_v51 = vpop.xlane.xlu1 %4814 }
 0x5a3   : > { %v8791_v50 = vadd.f32 %v8757_v58, %v4950_v27  ;;  %v8793_v63 = vadd.f32 %v4827_v47, %v4815_v51 }
 0x5a6   : > { %v5088_v45 = vpop.xlane.xlu0 %5087  ;;  %v8795_v15 = vpop.xlane.xlu1 %4883 }
 0x5a7   : > { %v8797_v4 = vadd.f32 %v5102_v35, %v5088_v45 }
 0x5aa   : > { %v5157_v36 = vpop.xlane.xlu0 %5156  ;;  %v8799_v1 = vpop.xlane.xlu1 %5021 }
 0x5ab   : > { %v8801_v39 = vadd.f32 %v5171_v48, %v5157_v36 }
 0x5ae   : > { %v8803_v53 = vpop.xlane.xlu0 %4952  ;;  %v8805_v44 = vpop.xlane.xlu1 %5090 }
 0x5b2   : > { %v8807_v7 = vpop.xlane.xlu0 %5159  ;;  %v8809_v58 = vpop.xlane.xlu1 %4886 }
 0x5b6   : > { %v8811_v52 = vpop.xlane.xlu0 %5228  ;;  %v8813_v33 = vpop.xlane.xlu1 %5093 }
 0x5ba   : > { %v8815_v60 = vpop.xlane.xlu1 %5162  ;;  %v4197_v35 = vpop.xlane.xlu0 %4196 }
 0x5bb   : > { %v4208_v18 = vadd.f32 %v4207_v17, %v4197_v35 }
 0x5be   : > { %v4266_v29 = vpop.xlane.xlu0 %4265  ;;  %v4200_v8 = vpop.xlane.xlu1 %4199 }
 0x5bf   : > { %v4209_v48 = vadd.f32 %v4208_v18, %v4200_v8  ;;  %v4277_v5 = vadd.f32 %v4276_v9, %v4266_v29 }
 0x5c1   : > { %v4210_v25 = vrot.slane %v4209_v48, 4 }
 0x5c2   : > { %v4335_v43 = vpop.xlane.xlu0 %4334  ;;  %v4269_v6 = vpop.xlane.xlu1 %4268 }
 0x5c3   : > { %v4211_v37 = vadd.f32 %v4210_v25, %v4209_v48  ;;  %v4278_v11 = vadd.f32 %v4277_v5, %v4269_v6  ;;  %v4346_v20 = vadd.f32 %v4345_v3, %v4335_v43 }
 0x5c5   : > { %v4212_v23 = vrot.slane %v4211_v37, 2  ;;  %v4279_v21 = vrot.slane %v4278_v11, 4 }
 0x5c6   : > { %v4404_v26 = vpop.xlane.xlu0 %4403  ;;  %v4338_v24 = vpop.xlane.xlu1 %4337 }
 0x5c7   : > { %v4213_v46 = vadd.f32 %v4212_v23, %v4211_v37  ;;  %v4280_v14 = vadd.f32 %v4279_v21, %v4278_v11  ;;  %v4347_v22 = vadd.f32 %v4346_v20, %v4338_v24  ;;  %v4415_v9 = vadd.f32 %v4414_v2, %v4404_v26 }
 0x5c9   : > { %v4214_v17 = vrot.slane %v4213_v46, 1  ;;  %v4281_v0 = vrot.slane %v4280_v14, 2  ;;  %v4348_v12 = vrot.slane %v4347_v22, 4 }
 0x5ca   : > { %v4473_v28 = vpop.xlane.xlu0 %4472  ;;  %v4407_v40 = vpop.xlane.xlu1 %4406 }
 0x5cb   : > { %v4282_v19 = vadd.f32 %v4281_v0, %v4280_v14  ;;  %v4349_v16 = vadd.f32 %v4348_v12, %v4347_v22  ;;  %v4215_v54 = vadd.f32 %v4214_v17, %v4213_v46  ;;  %v4416_v59 = vadd.f32 %v4415_v9, %v4407_v40 }
 0x5cc   : > { %v4484_v34 = vadd.f32 %v8775_v41, %v4473_v28 }
 0x5cd   : > { %v4283_v3 = vrot.slane %v4282_v19, 1  ;;  %v4350_v55 = vrot.slane %v4349_v16, 2  ;;  %v4417_v56 = vrot.slane %v4416_v59, 4  ;;  %v4217_v51 = vsel %vm4216_vm10, %v4215_v54, 0.0 }
 0x5ce   : > { %v4542_v47 = vpop.xlane.xlu0 %4541  ;;  %v4476_v30 = vpop.xlane.xlu1 %4475  ;;  %vm9041_vm10 = vcmask 122880  }
 0x5cf   : > { %v4284_v42 = vadd.f32 %v4283_v3, %v4282_v19  ;;  %v4351_v27 = vadd.f32 %v4350_v55, %v4349_v16  ;;  %v4485_v2 = vadd.f32 %v4484_v34, %v4476_v30  ;;  %v4418_v45 = vadd.f32 %v4417_v56, %v4416_v59 }
 0x5d0   : > { %v4553_v18 = vadd.f32 %v8778_v62, %v4542_v47 }
 0x5d1   : > { %v4286_v36 = vsel %vm4285_vm2, %v4284_v42, 0.0  ;;  %v4352_v35 = vrot.slane %v4351_v27, 1  ;;  %v4486_v29 = vrot.slane %v4485_v2, 4  ;;  %v4419_v48 = vrot.slane %v4418_v45, 2 }
 0x5d2   : > { %v4287_v8 = vadd.f32 %v4286_v36, %v4217_v51  ;;  %v4611_v41 = vpop.xlane.xlu0 %4610  ;;  %v4545_v5 = vpop.xlane.xlu1 %4544 }
 0x5d3   : > { %v4353_v25 = vadd.f32 %v4352_v35, %v4351_v27  ;;  %v4487_v43 = vadd.f32 %v4486_v29, %v4485_v2  ;;  %v4554_v6 = vadd.f32 %v4553_v18, %v4545_v5  ;;  %v4420_v37 = vadd.f32 %v4419_v48, %v4418_v45 }
 0x5d4   : > { %v4622_v23 = vadd.f32 %v8781_v49, %v4611_v41 }
 0x5d5   : > { %v4355_v11 = vsel %vm4354_vm1, %v4353_v25, 0.0  ;;  %v4488_v61 = vrot.slane %v4487_v43, 2  ;;  %v4555_v20 = vrot.slane %v4554_v6, 4  ;;  %v4421_v26 = vrot.slane %v4420_v37, 1 }
 0x5d6   : > { %v4356_v21 = vadd.f32 %v4355_v11, %v4287_v8  ;;  %v4680_v24 = vpop.xlane.xlu0 %4679  ;;  %v4614_v62 = vpop.xlane.xlu1 %4613 }
 0x5d7   : > { %v4489_v46 = vadd.f32 %v4488_v61, %v4487_v43  ;;  %v4556_v14 = vadd.f32 %v4555_v20, %v4554_v6  ;;  %v4623_v22 = vadd.f32 %v4622_v23, %v4614_v62  ;;  %v4422_v17 = vadd.f32 %v4421_v26, %v4420_v37 }
 0x5d8   : > { %v4691_v40 = vadd.f32 %v8784_v38, %v4680_v24  ;;  %v4897_v43 = vadd.f32 %v8786_v10, %v8795_v15  ;;  %v5035_v10 = vadd.f32 %v8764_v57, %v8799_v1  ;;  %v4966_v15 = vadd.f32 %v8791_v50, %v8803_v53 }
 0x5d9   : > { %v4490_v0 = vrot.slane %v4489_v46, 1  ;;  %v4557_v12 = vrot.slane %v4556_v14, 2  ;;  %v4624_v9 = vrot.slane %v4623_v22, 4  ;;  %v4424_v28 = vsel %vm4423_vm0, %v4422_v17, 0.0 }
 0x5da   : > { %v4749_v49 = vpop.xlane.xlu0 %4748  ;;  %v4683_v19 = vpop.xlane.xlu1 %4682  ;;  %v4425_v16 = vadd.f32 %v4424_v28, %v4356_v21  ;;  %v4898_v23 = vadd.f32 %v4897_v43, %v8809_v58  ;;  %v5104_v58 = vadd.f32 %v8797_v4, %v8805_v44 }
 0x5db   : > { %v4491_v54 = vadd.f32 %v4490_v0, %v4489_v46  ;;  %v4558_v59 = vadd.f32 %v4557_v12, %v4556_v14  ;;  %v4625_v3 = vadd.f32 %v4624_v9, %v4623_v22  ;;  %v4692_v55 = vadd.f32 %v4691_v40, %v4683_v19 }
 0x5dc   : > { %v4760_v30 = vadd.f32 %v8788_v32, %v4749_v49  ;;  %v5173_v40 = vadd.f32 %v8801_v39, %v8807_v7 }
 0x5dd   : > { %v4493_v34 = vsel %vm4492_vm8, %v4491_v54, 0.0  ;;  %v4559_v56 = vrot.slane %v4558_v59, 1  ;;  %v4626_v47 = vrot.slane %v4625_v3, 2  ;;  %v4693_v27 = vrot.slane %v4692_v55, 4 }
 0x5de   : > { %v4494_v42 = vadd.f32 %v4493_v34, %v4425_v16  ;;  %v4818_v2 = vpop.xlane.xlu0 %4817  ;;  %v4752_v51 = vpop.xlane.xlu1 %4751  ;;  %v5174_v4 = vadd.f32 %v5173_v40, %v8815_v60 }
 0x5df   : > { %v4560_v45 = vadd.f32 %v4559_v56, %v4558_v59  ;;  %v4627_v38 = vadd.f32 %v4626_v47, %v4625_v3  ;;  %v4761_v36 = vadd.f32 %v4760_v30, %v4752_v51  ;;  %v4694_v35 = vadd.f32 %v4693_v27, %v4692_v55 }
 0x5e0   : > { %v4829_v8 = vadd.f32 %v8793_v63, %v4818_v2  ;;  %v5105_v3 = vadd.f32 %v5104_v58, %v8813_v33 }
 0x5e1   : > { %v4562_v18 = vsel %vm4561_vm6, %v4560_v45, 0.0  ;;  %v4628_v29 = vrot.slane %v4627_v38, 1  ;;  %v4762_v48 = vrot.slane %v4761_v36, 4  ;;  %v4695_v5 = vrot.slane %v4694_v35, 2 }
 0x5e2   : > { %v4563_v41 = vadd.f32 %v4562_v18, %v4494_v42  ;;  %v4956_v32 = vpop.xlane.xlu0 %4955  ;;  %v4821_v25 = vpop.xlane.xlu1 %4820 }
 0x5e3   : > { %v4629_v6 = vadd.f32 %v4628_v29, %v4627_v38  ;;  %v4763_v37 = vadd.f32 %v4762_v48, %v4761_v36  ;;  %v4830_v11 = vadd.f32 %v4829_v8, %v4821_v25  ;;  %v4696_v61 = vadd.f32 %v4695_v5, %v4694_v35 }
 0x5e4   : > { %v4967_v19 = vadd.f32 %v4966_v15, %v4956_v32  ;;  %v5242_v38 = vadd.f32 %v8767_v31, %v8811_v52 }
 0x5e5   : > { %v4631_v20 = vsel %vm4630_vm9, %v4629_v6, 0.0  ;;  %v4764_v21 = vrot.slane %v4763_v37, 2  ;;  %v4831_v26 = vrot.slane %v4830_v11, 4  ;;  %v4697_v24 = vrot.slane %v4696_v61, 1 }
 0x5e6   : > { %v4632_v63 = vadd.f32 %v4631_v20, %v4563_v41  ;;  %v5025_v62 = vpop.xlane.xlu0 %5024  ;;  %v4890_v46 = vpop.xlane.xlu1 %4889 }
 0x5e7   : > { %v4765_v14 = vadd.f32 %v4764_v21, %v4763_v37  ;;  %v4832_v22 = vadd.f32 %v4831_v26, %v4830_v11  ;;  %v4899_v17 = vadd.f32 %v4898_v23, %v4890_v46  ;;  %v4698_v0 = vadd.f32 %v4697_v24, %v4696_v61 }
 0x5e8   : > { %v5036_v16 = vadd.f32 %v5035_v10, %v5025_v62 }
 0x5e9   : > { %v4766_v12 = vrot.slane %v4765_v14, 1  ;;  %v4833_v9 = vrot.slane %v4832_v22, 2  ;;  %v4900_v28 = vrot.slane %v4899_v17, 4  ;;  %v4700_v49 = vsel %vm4699_vm13, %v4698_v0, 0.0 }
 0x5ea   : > { %v5028_v54 = vpop.xlane.xlu0 %5027  ;;  %v4959_v57 = vpop.xlane.xlu1 %4958  ;;  %v4701_v1 = vadd.f32 %v4700_v49, %v4632_v63 }
 0x5eb   : > { %v4767_v59 = vadd.f32 %v4766_v12, %v4765_v14  ;;  %v4834_v50 = vadd.f32 %v4833_v9, %v4832_v22  ;;  %v4901_v53 = vadd.f32 %v4900_v28, %v4899_v17  ;;  %v5037_v55 = vadd.f32 %v5036_v16, %v5028_v54 }
 0x5ec   : > { %v4968_v34 = vadd.f32 %v4967_v19, %v4959_v57 }
 0x5ed   : > { %v4769_v44 = vsel %vm4768_vm11, %v4767_v59, 0.0  ;;  %v4835_v56 = vrot.slane %v4834_v50, 1  ;;  %v4902_v39 = vrot.slane %v4901_v53, 2  ;;  %v5038_v47 = vrot.slane %v5037_v55, 4 }
 0x5ee   : > { %v4770_v7 = vadd.f32 %v4769_v44, %v4701_v1  ;;  %v4969_v30 = vrot.slane %v4968_v34, 4  ;;  %v5097_v42 = vpop.xlane.xlu0 %5096  ;;  %v5166_v27 = vpop.xlane.xlu1 %5165 }
 0x5ef   : > { %v4836_v2 = vadd.f32 %v4835_v56, %v4834_v50  ;;  %v4903_v51 = vadd.f32 %v4902_v39, %v4901_v53  ;;  %v5106_v45 = vadd.f32 %v5105_v3, %v5097_v42  ;;  %v5175_v33 = vadd.f32 %v5174_v4, %v5166_v27  ;;  %v5254_v3 = vld [vmem:[%s8877_s8] sm:$0x1] }
 0x5f0   : > { %v5039_v60 = vadd.f32 %v5038_v47, %v5037_v55  ;;  %v4970_v36 = vadd.f32 %v4969_v30, %v4968_v34 }
 0x5f1   : > { %v4838_v35 = vsel %vm4837_vm3, %v4836_v2, 0.0  ;;  %v4904_v18 = vrot.slane %v4903_v51, 1  ;;  %v5107_v29 = vrot.slane %v5106_v45, 4  ;;  %v5176_v8 = vrot.slane %v5175_v33, 4 }
 0x5f2   : > { %v4839_v48 = vadd.f32 %v4838_v35, %v4770_v7  ;;  %v5040_v41 = vrot.slane %v5039_v60, 2  ;;  %v4971_v5 = vrot.slane %v4970_v36, 2  ;;  %v5232_v32 = vpop.xlane.xlu0 %5231  ;;  %v5235_v23 = vpop.xlane.xlu1 %5234 }
 0x5f3   : > { %v4905_v25 = vadd.f32 %v4904_v18, %v4903_v51  ;;  %v5108_v43 = vadd.f32 %v5107_v29, %v5106_v45  ;;  %v5177_v6 = vadd.f32 %v5176_v8, %v5175_v33  ;;  %v5243_v37 = vadd.f32 %v5242_v38, %v5232_v32 }
 0x5f4   : > { %v5041_v11 = vadd.f32 %v5040_v41, %v5039_v60  ;;  %v4972_v61 = vadd.f32 %v4971_v5, %v4970_v36 }
 0x5f5   : > { %v4907_v31 = vsel %vm4906_vm15, %v4905_v25, 0.0  ;;  %v5109_v52 = vrot.slane %v5108_v43, 2  ;;  %v5178_v20 = vrot.slane %v5177_v6, 2  ;;  %v5244_v21 = vadd.f32 %v5243_v37, %v5235_v23 }
 0x5f6   : > { %v4908_v26 = vadd.f32 %v4907_v31, %v4839_v48  ;;  %v5042_v63 = vrot.slane %v5041_v11, 1  ;;  %v4973_v24 = vrot.slane %v4972_v61, 1 }
 0x5f7   : > { %v5110_v62 = vadd.f32 %v5109_v52, %v5108_v43  ;;  %v5179_v46 = vadd.f32 %v5178_v20, %v5177_v6  ;;  %v5245_v14 = vrot.slane %v5244_v21, 4 }
 0x5f8   : > { %v5043_v22 = vadd.f32 %v5042_v63, %v5041_v11  ;;  %v4974_v17 = vadd.f32 %v4973_v24, %v4972_v61 }
 0x5f9   : > { %v5111_v10 = vrot.slane %v5110_v62, 1  ;;  %v5180_v15 = vrot.slane %v5179_v46, 1  ;;  %v5246_v0 = vadd.f32 %v5245_v14, %v5244_v21 }
 0x5fa   : > { %v4976_v58 = vsel %vm4975_vm7, %v4974_v17, 0.0  ;;  %v5045_v40 = vsel %vm5044_vm5, %v5043_v22, 0.0 }
 0x5fb   : > { %v4977_v12 = vadd.f32 %v4976_v58, %v4908_v26  ;;  %v5112_v9 = vadd.f32 %v5111_v10, %v5110_v62  ;;  %v5247_v28 = vrot.slane %v5246_v0, 2  ;;  %v5181_v49 = vadd.f32 %v5180_v15, %v5179_v46 }
 0x5fd   : > { %v5046_v19 = vadd.f32 %v5045_v40, %v4977_v12  ;;  %v5114_v16 = vsel %vm5113_vm4, %v5112_v9, 0.0  ;;  %v5248_v54 = vadd.f32 %v5247_v28, %v5246_v0  ;;  %v5183_v59 = vsel %vm5182_vm12, %v5181_v49, 0.0 }
 0x5ff   : > { %v5115_v57 = vadd.f32 %v5114_v16, %v5046_v19  ;;  %v5249_v1 = vrot.slane %v5248_v54, 1 }
 0x601   : > { %v5184_v50 = vadd.f32 %v5183_v59, %v5115_v57  ;;  %v5250_v53 = vadd.f32 %v5249_v1, %v5248_v54 }
 0x603   : > { %v5252_v55 = vsel %vm5251_vm14, %v5250_v53, 0.0 }
 0x604   : > { %v5253_v34 = vadd.f32 %v5252_v55, %v5184_v50 }
 0x606   : > { %v5255_v4 = vadd.f32 %v5254_v3, %v5253_v34 }
 0x608   : > { %5257 = vst.msk [vmem:[%s328_s27] sm:$0x1] %vm9041_vm10, %v5255_v4 }
 0x609 PF: > { %s19_s30 = sadd.s32 1, %s6509_s30  }
 0x60a   : > { %p16_p4 = scmp.ge.s32.totalorder %s19_s30, 4  }
 0x60c   :  { %18 = sbr.rel (!%p16_p4) target bundleno = 1 (0x1), region = 120 }

</bundles_post_ra>
